<compile_context>
chip_gen: v6e
topology: v6e:2x2x1
jax: 0.10.0
libtpu: 0.0.40
codegen_flags: <defaults>
</compile_context>

<pallas_src>
import numpy as np
import jax
import jax.numpy as jnp
from jax.experimental import pallas as pl
from jax.experimental.pallas import tpu as pltpu


# ---------------------------------------------------------------------------
# Static problem geometry (module input is (B, 16, 16), unsqueezed to NCHW).
# Feature maps are stored "at full row width" so every shifted conv/pool window
# is a contiguous sublane slice; garbage columns are discarded by construction.
# ---------------------------------------------------------------------------
H_IN, W_IN = 16, 16
KH = KW = 3
C1, C2 = 32, 16                                         # conv1 / conv2 out channels

H1 = H_IN - KH + 1                                      # 14 conv1 valid height
W1 = W_IN - KW + 1                                      # 14 conv1 valid width
R1 = H1 * W_IN                                          # 224 conv1 rows (full width)
XR = -(-(R1 + (KH - 1) * W_IN + (KW - 1)) // 8) * 8     # 264 zero-padded input rows

P1H, P1W = H1 // 2, W1 // 2                             # 7 x 7 after MaxPool(2,2)
W1P = 8                                                 # storage width of pooled map
LM1 = 2 * (P1H - 1) * W_IN + 2 * (P1W - 1) + 1          # 205 window-max rows needed

H2, W2 = P1H - KH + 1, P1W - KW + 1                     # 5 x 5 after conv2
R2 = H2 * W1P                                           # 40 conv2 rows (width W1P)
P1R = -(-((KH - 1) * W1P + (KW - 1) + R2) // 8) * 8     # 64 pooled-map scratch rows
P2H = H2 // 2                                           # 2 rows after MaxPool(2,1)
N_MEAN = P2H * W2                                       # 10 positions in .mean([2,3])

NEG_SLOPE = 0.1                                         # nn.LeakyReLU(0.1) in the module


# ---------------------------------------------------------------------------
# The fused kernel (one grid step == Bt lane-packed batch elements)
# ---------------------------------------------------------------------------
def _make_kernel(bt):
    bc1, bc2 = bt * C1, bt * C2

    def kernel(x_ref, expand_ref, w1t_ref, b1t_ref, sel1_ref, w2blk_ref,
               b2t_ref, mpool2_ref, blkmask_ref, collapse_ref,
               fc1w_ref, fc1b_ref, fc2w_ref, fc2b_ref, fc3w_ref, fc3b_ref,
               out_ref, xe_ref, h1_ref, p1_ref):
        # ---- Lane-expand the Bt samples --------------------------------------
        # xe[r, b*C1 + c] = x[r, b] for every c: one 0/1 matmul on the MXU, so
        # conv1 below runs at full lane occupancy with no in-kernel relayouts.
        xe_ref[...] = jnp.dot(x_ref[...], expand_ref[...],
                              preferred_element_type=jnp.float32)

        # ---- Conv2d(1, 32, 3x3) + folded BN2d + LeakyReLU(0.1) ----------------
        # 9 shift / broadcast-multiply / accumulate steps on the VPU over the
        # lane-packed (R1, Bt*C1) slab (K=9 would waste >95% of an MXU pass).
        acc1 = jnp.zeros((R1, bc1), jnp.float32)
        for di in range(KH):
            for dj in range(KW):
                k = di * KW + dj
                xs = xe_ref[pl.ds(di * W_IN + dj, R1), :]          # (R1, Bt*C1)
                acc1 = acc1 + xs * w1t_ref[pl.ds(k, 1), :]         # (1, Bt*C1)
        h1 = acc1 + b1t_ref[...]
        h1_ref[...] = jnp.where(h1 > 0, h1, NEG_SLOPE * h1)        # LeakyReLU(0.1)

        # ---- MaxPool2d(2, 2) --------------------------------------------------
        # Window max = elementwise max of 4 shifted slices of the conv1 slab; the
        # stride-2 downsample + relayout to width W1P is a 0/1 selection matmul
        # (exact, sample-agnostic) on the otherwise idle MXU.
        mfull = jnp.maximum(
            jnp.maximum(h1_ref[pl.ds(0, LM1), :], h1_ref[pl.ds(1, LM1), :]),
            jnp.maximum(h1_ref[pl.ds(W_IN, LM1), :], h1_ref[pl.ds(W_IN + 1, LM1), :]))
        p1_ref[...] = jnp.dot(sel1_ref[...], mfull, preferred_element_type=jnp.float32)

        # ---- Conv2d(32, 16, 3x3) + folded BN2d + LeakyReLU(0.1) ---------------
        # 9 MXU matmuls with block-diagonal (per-sample) packed weights:
        # K = Bt*C1, N = Bt*C2  (full K/N fill at Bt=8), one set per Bt samples.
        acc2 = jnp.zeros((R2, bc2), jnp.float32)
        for di in range(KH):
            for dj in range(KW):
                patch = p1_ref[pl.ds(di * W1P + dj, R2), :]        # (R2, Bt*C1)
                acc2 = acc2 + jnp.dot(patch, w2blk_ref[di * KW + dj],
                                      preferred_element_type=jnp.float32)
        h2 = acc2 + b2t_ref[...]
        h2 = jnp.where(h2 > 0, h2, NEG_SLOPE * h2)                 # LeakyReLU(0.1)

        # ---- MaxPool2d(2, 1) + global spatial mean (fused) --------------------
        rows = 2 * W1P * P2H
        pairmax = jnp.maximum(h2[0:rows, :], h2[W1P:W1P + rows, :])      # (32, Bt*C2)
        featp = jnp.sum(pairmax * mpool2_ref[...], axis=0, keepdims=True)  # (1, Bt*C2)

        # ---- Un-pack lanes -> sample rows without a relayout ------------------
        # feat[b, c] = featp[b*C2 + c]:  broadcast + block mask + 0/1 collapse
        # matmul (all standard ops, no reshape/transpose of lane data).
        feat = jnp.dot(featp * blkmask_ref[...], collapse_ref[...],
                       preferred_element_type=jnp.float32)               # (Bt, C2)

        # ---- Regressor (BN1d pre-folded), batched over Bt: M = Bt -------------
        z = jnp.dot(feat, fc1w_ref[...], preferred_element_type=jnp.float32) + fc1b_ref[...]
        z = jnp.maximum(z, 0.0)
        z = jnp.dot(z, fc2w_ref[...], preferred_element_type=jnp.float32) + fc2b_ref[...]
        z = jnp.maximum(z, 0.0)
        out_ref[...] = jnp.dot(z, fc3w_ref[...],
                               preferred_element_type=jnp.float32) + fc3b_ref[...]

    return kernel


# ---------------------------------------------------------------------------
# One-time parameter preparation (outside the forward hot path)
# ---------------------------------------------------------------------------
def prepare_inputs(p, batch_tile, eps=1e-5):
    """Fold eval-mode BatchNorms into adjacent conv/linear weights, lay weights
    out for the lane-packed kernel (tiled / block-diagonal over `batch_tile`
    samples), and build the constant pooling / packing matrices."""
    bt = int(batch_tile)

    def fold(g, b, m, v, prior_b):
        s = g / jnp.sqrt(v + eps)
        return s, (prior_b - m) * s + b

    out_dim = p["fc3_w"].shape[0]
    s1, b1 = fold(p["bn1_g"], p["bn1_b"], p["bn1_m"], p["bn1_v"], p["c1_b"])
    w1 = p["c1_w"].reshape(C1, KH * KW).T * s1[None, :]                     # (9, 32)
    s2, b2 = fold(p["bn2_g"], p["bn2_b"], p["bn2_m"], p["bn2_v"], p["c2_b"])
    w2 = p["c2_w"].transpose(2, 3, 1, 0).reshape(KH * KW, C1, C2) * s2[None, None, :]
    s3, b3 = fold(p["bn3_g"], p["bn3_b"], p["bn3_m"], p["bn3_v"], p["fc1_b"])
    fc1w = p["fc1_w"].T * s3[None, :]                                       # (16, 128)
    s4, b4 = fold(p["bn4_g"], p["bn4_b"], p["bn4_m"], p["bn4_v"], p["fc2_b"])
    fc2w = p["fc2_w"].T * s4[None, :]                                       # (128, 64)

    # Lane expansion: sample b of the packed input goes to lanes [b*C1, (b+1)*C1).
    expand = np.zeros((bt, bt * C1), np.float32)
    for b in range(bt):
        expand[b, b * C1:(b + 1) * C1] = 1.0

    # conv1 weights / bias lane-tiled across the Bt samples.
    w1t = jnp.tile(jnp.asarray(w1, jnp.float32), (1, bt))                   # (9, Bt*C1)
    b1t = jnp.tile(b1.reshape(1, C1).astype(jnp.float32), (1, bt))          # (1, Bt*C1)

    # MaxPool(2,2): 0/1 selection matrix doing the stride-2 downsample and the
    # relayout of the 7x7 pooled map to storage width W1P (sample-agnostic).
    sel1 = np.zeros((P1R, LM1), np.float32)
    for pp in range(P1H):
        for qq in range(P1W):
            sel1[pp * W1P + qq, 2 * pp * W_IN + 2 * qq] = 1.0

    # conv2 weights block-diagonal over samples so the packed matmul never
    # mixes lanes of different samples; bias lane-tiled.
    w2_np = np.asarray(w2, np.float32)
    w2blk = np.zeros((KH * KW, bt * C1, bt * C2), np.float32)
    for b in range(bt):
        w2blk[:, b * C1:(b + 1) * C1, b * C2:(b + 1) * C2] = w2_np
    b2t = jnp.tile(b2.reshape(1, C2).astype(jnp.float32), (1, bt))          # (1, Bt*C2)

    # MaxPool(2,1) + spatial mean: valid rows of the pair-max slab, pre-scaled
    # by 1/N so the mean becomes a masked sum.
    mpool2 = np.zeros((2 * W1P * P2H, 1), np.float32)
    for pp in range(P2H):
        for qq in range(W2):
            mpool2[2 * pp * W1P + qq, 0] = 1.0 / N_MEAN

    # Lane-packed (1, Bt*C2) features -> (Bt, C2) rows: per-sample block mask
    # followed by a 0/1 "collapse" matmul.
    blkmask = np.zeros((bt, bt * C2), np.float32)
    for b in range(bt):
        blkmask[b, b * C2:(b + 1) * C2] = 1.0
    collapse = np.tile(np.eye(C2, dtype=np.float32), (bt, 1))               # (Bt*C2, C2)

    f32 = jnp.float32
    return dict(
        expand=jnp.asarray(expand),
        w1t=w1t.astype(f32), b1t=b1t.astype(f32),
        sel1=jnp.asarray(sel1),
        w2blk=jnp.asarray(w2blk), b2t=b2t.astype(f32),
        mpool2=jnp.asarray(mpool2),
        blkmask=jnp.asarray(blkmask), collapse=jnp.asarray(collapse),
        fc1w=fc1w.astype(f32), fc1b=b3.reshape(1, 128).astype(f32),
        fc2w=fc2w.astype(f32), fc2b=b4.reshape(1, 64).astype(f32),
        fc3w=p["fc3_w"].T.astype(f32), fc3b=p["fc3_b"].reshape(1, out_dim).astype(f32))


# ---------------------------------------------------------------------------
# Forward pass (matches AuxiliaryRegressor.forward in eval mode)
# ---------------------------------------------------------------------------
def aux_regressor_forward(x, prep):
    """x: (B, 16, 16) -> coords (B, output_dim)."""
    assert x.shape[1:] == (H_IN, W_IN)
    B = x.shape[0]
    bt = prep["expand"].shape[0]                 # batch tile (static, from prep layout)
    out_dim = prep["fc3w"].shape[1]
    nblk = -(-B // bt)                           # grid steps (>= 2 for B >= 2*bt -> both
    bpad = nblk * bt                             #   v7x TensorCores get work)

    # Only host-side glue: flatten + zero-pad the tiny input and lane-pack Bt
    # samples per grid block so each step is one DMA and every conv tap is an
    # in-bounds contiguous sublane slice inside the kernel.
    xflat = x.reshape(B, H_IN * W_IN).astype(jnp.float32)
    xflat = jnp.pad(xflat, ((0, bpad - B), (0, XR - H_IN * W_IN)))   # (bpad, XR)
    xcols = xflat.reshape(nblk, bt, XR).transpose(0, 2, 1)           # (nblk, XR, bt)

    flops = int(nblk * 2 * (XR * bt * bt * C1
                            + KH * KW * R1 * bt * C1
                            + P1R * LM1 * bt * C1
                            + KH * KW * R2 * bt * C1 * bt * C2
                            + bt * bt * C2 * C2
                            + bt * (C2 * 128 + 128 * 64 + 64 * out_dim)))
    bytes_accessed = int(4 * (nblk * (XR * bt + bt * out_dim)
                              + sum(int(np.prod(v.shape)) for v in prep.values())))

    bc1, bc2 = bt * C1, bt * C2
    out = pl.pallas_call(
        _make_kernel(bt),
        out_shape=jax.ShapeDtypeStruct((nblk, bt, out_dim), jnp.float32),
        grid=(nblk,),
        in_specs=[
            pl.BlockSpec((None, XR, bt), lambda i: (i, 0, 0)),        # x, Bt lane-packed
            pl.BlockSpec((bt, bc1), lambda i: (0, 0)),                # lane-expansion 0/1
            pl.BlockSpec((KH * KW, bc1), lambda i: (0, 0)),           # conv1 w (BN folded, tiled)
            pl.BlockSpec((1, bc1), lambda i: (0, 0)),                 # conv1 b (tiled)
            pl.BlockSpec((P1R, LM1), lambda i: (0, 0)),               # pool1 selection
            pl.BlockSpec((KH * KW, bc1, bc2), lambda i: (0, 0, 0)),   # conv2 w (block-diag)
            pl.BlockSpec((1, bc2), lambda i: (0, 0)),                 # conv2 b (tiled)
            pl.BlockSpec((2 * W1P * P2H, 1), lambda i: (0, 0)),       # pool2 + mean mask
            pl.BlockSpec((bt, bc2), lambda i: (0, 0)),                # per-sample block mask
            pl.BlockSpec((bc2, C2), lambda i: (0, 0)),                # lane->row collapse
            pl.BlockSpec((C2, 128), lambda i: (0, 0)),                # fc1 w
            pl.BlockSpec((1, 128), lambda i: (0, 0)),                 # fc1 b
            pl.BlockSpec((128, 64), lambda i: (0, 0)),                # fc2 w
            pl.BlockSpec((1, 64), lambda i: (0, 0)),                  # fc2 b
            pl.BlockSpec((64, out_dim), lambda i: (0, 0)),            # fc3 w
            pl.BlockSpec((1, out_dim), lambda i: (0, 0)),             # fc3 b
        ],
        out_specs=pl.BlockSpec((None, bt, out_dim), lambda i: (i, 0, 0)),
        scratch_shapes=[pltpu.VMEM((XR, bc1), jnp.float32),           # lane-expanded input
                        pltpu.VMEM((R1, bc1), jnp.float32),           # conv1 slab
                        pltpu.VMEM((P1R, bc1), jnp.float32)],         # pooled map
        compiler_params=pltpu.CompilerParams(
            dimension_semantics=("parallel",)),                       # sample tiles independent
        cost_estimate=pl.CostEstimate(flops=flops, transcendentals=0,
                                      bytes_accessed=bytes_accessed),
    )(xcols, prep["expand"], prep["w1t"], prep["b1t"], prep["sel1"],
      prep["w2blk"], prep["b2t"], prep["mpool2"], prep["blkmask"],
      prep["collapse"], prep["fc1w"], prep["fc1b"], prep["fc2w"], prep["fc2b"],
      prep["fc3w"], prep["fc3b"])
    return out.reshape(bpad, out_dim)[:B]


# ---------------------------------------------------------------------------
# Deterministic parameter init (PyTorch parameter shapes) + plain-JAX reference
# ---------------------------------------------------------------------------
def init_params(key, feature_dim=16, output_dim=2):
    ks = iter(jax.random.split(key, 32))

    def nrm(shape, s=0.1):
        return jax.random.normal(next(ks), shape, jnp.float32) * s

    p = {}
    p["c1_w"], p["c1_b"] = nrm((32, 1, 3, 3)), nrm((32,))
    p["bn1_g"], p["bn1_b"] = 1.0 + nrm((32,)), nrm((32,))
    p["bn1_m"], p["bn1_v"] = nrm((32,)), 1.0 + jnp.abs(nrm((32,)))
    p["c2_w"], p["c2_b"] = nrm((16, 32, 3, 3)), nrm((16,))
    p["bn2_g"], p["bn2_b"] = 1.0 + nrm((16,)), nrm((16,))
    p["bn2_m"], p["bn2_v"] = nrm((16,)), 1.0 + jnp.abs(nrm((16,)))
    p["fc1_w"], p["fc1_b"] = nrm((128, feature_dim)), nrm((128,))
    p["bn3_g"], p["bn3_b"] = 1.0 + nrm((128,)), nrm((128,))
    p["bn3_m"], p["bn3_v"] = nrm((128,)), 1.0 + jnp.abs(nrm((128,)))
    p["fc2_w"], p["fc2_b"] = nrm((64, 128)), nrm((64,))
    p["bn4_g"], p["bn4_b"] = 1.0 + nrm((64,)), nrm((64,))
    p["bn4_m"], p["bn4_v"] = nrm((64,)), 1.0 + jnp.abs(nrm((64,)))
    p["fc3_w"], p["fc3_b"] = nrm((output_dim, 64)), nrm((output_dim,))
    return p


def reference_forward(x, p, eps=1e-5):
    """Plain-JAX/XLA eval-mode reference, used only to validate the kernel."""
    def bn2d(y, g, b, m, v):
        inv = g / jnp.sqrt(v + eps)
        return y * inv[None, :, None, None] + (b - m * inv)[None, :, None, None]

    def bn1d(z, g, b, m, v):
        inv = g / jnp.sqrt(v + eps)
        return z * inv[None, :] + (b - m * inv)[None, :]

    with jax.default_matmul_precision("highest"):
        y = jax.lax.conv_general_dilated(
            x[:, None].astype(jnp.float32), p["c1_w"], (1, 1), "VALID",
            dimension_numbers=("NCHW", "OIHW", "NCHW"))
        y = y + p["c1_b"][None, :, None, None]
        y = bn2d(y, p["bn1_g"], p["bn1_b"], p["bn1_m"], p["bn1_v"])
        y = jnp.where(y > 0, y, NEG_SLOPE * y)
        y = jax.lax.reduce_window(y, -jnp.inf, jax.lax.max,
                                  (1, 1, 2, 2), (1, 1, 2, 2), "VALID")
        y = jax.lax.conv_general_dilated(
            y, p["c2_w"], (1, 1), "VALID",
            dimension_numbers=("NCHW", "OIHW", "NCHW"))
        y = y + p["c2_b"][None, :, None, None]
        y = bn2d(y, p["bn2_g"], p["bn2_b"], p["bn2_m"], p["bn2_v"])
        y = jnp.where(y > 0, y, NEG_SLOPE * y)
        y = jax.lax.reduce_window(y, -jnp.inf, jax.lax.max,
                                  (1, 1, 2, 1), (1, 1, 2, 1), "VALID")
        feat = y.mean(axis=(2, 3))
        z = feat @ p["fc1_w"].T + p["fc1_b"]
        z = jnp.maximum(bn1d(z, p["bn3_g"], p["bn3_b"], p["bn3_m"], p["bn3_v"]), 0.0)
        z = z @ p["fc2_w"].T + p["fc2_b"]
        z = jnp.maximum(bn1d(z, p["bn4_g"], p["bn4_b"], p["bn4_m"], p["bn4_v"]), 0.0)
        return z @ p["fc3_w"].T + p["fc3_b"]


if __name__ == "__main__":
    key = jax.random.PRNGKey(0)
    kx, kp, kx2 = jax.random.split(key, 3)

    feature_dim, output_dim = 16, 2            # FeatureExtractor emits 16 channels
    params = init_params(kp, feature_dim=feature_dim, output_dim=output_dim)
    fwd = jax.jit(aux_regressor_forward)

    # Small demo batch (B=2): one grid step with Bt=2 lane-packed samples.
    B = 2
    x = jax.random.normal(kx, (B, H_IN, W_IN), jnp.float32)
    prep = prepare_inputs(params, batch_tile=min(8, B))     # BN folding / packing: once
    coords = jax.block_until_ready(fwd(x, prep))
    assert coords.shape == (B, output_dim), coords.shape
    ref = jax.block_until_ready(reference_forward(x, params))
    np.testing.assert_allclose(np.asarray(coords), np.asarray(ref),
                               rtol=5e-2, atol=5e-3)

    # Larger batch: exercises the multi-step grid (sharded across v7x TCs) and
    # the batch-padding path (B=11 -> Bt=8, 2 grid steps, 5 padded samples).
    B2 = 11
    x2 = jax.random.normal(kx2, (B2, H_IN, W_IN), jnp.float32)
    prep8 = prepare_inputs(params, batch_tile=8)
    coords2 = jax.block_until_ready(fwd(x2, prep8))
    assert coords2.shape == (B2, output_dim), coords2.shape
    ref2 = jax.block_until_ready(reference_forward(x2, params))
    np.testing.assert_allclose(np.asarray(coords2), np.asarray(ref2),
                               rtol=5e-2, atol=5e-3)

    print("KERNEL_OK")
</pallas_src>

<mosaic_0001>
module attributes {stable_mosaic.version = 11 : i64} {
  func.func @kernel(%arg0: i32, %arg1: memref<1x264x2xf32, #tpu.memory_space<vmem>>, %arg2: memref<2x64xf32, #tpu.memory_space<vmem>>, %arg3: memref<9x64xf32, #tpu.memory_space<vmem>>, %arg4: memref<1x64xf32, #tpu.memory_space<vmem>>, %arg5: memref<64x205xf32, #tpu.memory_space<vmem>>, %arg6: memref<9x64x32xf32, #tpu.memory_space<vmem>>, %arg7: memref<1x32xf32, #tpu.memory_space<vmem>>, %arg8: memref<32x1xf32, #tpu.memory_space<vmem>>, %arg9: memref<2x32xf32, #tpu.memory_space<vmem>>, %arg10: memref<32x16xf32, #tpu.memory_space<vmem>>, %arg11: memref<16x128xf32, #tpu.memory_space<vmem>>, %arg12: memref<1x128xf32, #tpu.memory_space<vmem>>, %arg13: memref<128x64xf32, #tpu.memory_space<vmem>>, %arg14: memref<1x64xf32, #tpu.memory_space<vmem>>, %arg15: memref<64x2xf32, #tpu.memory_space<vmem>>, %arg16: memref<1x2xf32, #tpu.memory_space<vmem>>, %arg17: memref<1x2x2xf32, #tpu.memory_space<vmem>>, %arg18: memref<264x64xf32, #tpu.memory_space<vmem>>, %arg19: memref<224x64xf32, #tpu.memory_space<vmem>>, %arg20: memref<64x64xf32, #tpu.memory_space<vmem>>) attributes {dimension_semantics = [#tpu.dimension_semantics<parallel>], iteration_bounds = array<i64: 1>, scalar_prefetch = 0 : i64, scratch_operands = 3 : i64, tpu.core_type = #tpu.core_type<tc>, window_params = [{transform_indices = @transform_0, window_bounds = array<i64: 1, 264, 2>}, {pipeline_mode = #tpu.pipeline_mode<synchronous>, transform_indices = @transform_1, window_bounds = array<i64: 2, 64>}, {pipeline_mode = #tpu.pipeline_mode<synchronous>, transform_indices = @transform_2, window_bounds = array<i64: 9, 64>}, {pipeline_mode = #tpu.pipeline_mode<synchronous>, transform_indices = @transform_3, window_bounds = array<i64: 1, 64>}, {pipeline_mode = #tpu.pipeline_mode<synchronous>, transform_indices = @transform_4, window_bounds = array<i64: 64, 205>}, {pipeline_mode = #tpu.pipeline_mode<synchronous>, transform_indices = @transform_5, window_bounds = array<i64: 9, 64, 32>}, {pipeline_mode = #tpu.pipeline_mode<synchronous>, transform_indices = @transform_6, window_bounds = array<i64: 1, 32>}, {pipeline_mode = #tpu.pipeline_mode<synchronous>, transform_indices = @transform_7, window_bounds = array<i64: 32, 1>}, {pipeline_mode = #tpu.pipeline_mode<synchronous>, transform_indices = @transform_8, window_bounds = array<i64: 2, 32>}, {pipeline_mode = #tpu.pipeline_mode<synchronous>, transform_indices = @transform_9, window_bounds = array<i64: 32, 16>}, {pipeline_mode = #tpu.pipeline_mode<synchronous>, transform_indices = @transform_10, window_bounds = array<i64: 16, 128>}, {pipeline_mode = #tpu.pipeline_mode<synchronous>, transform_indices = @transform_11, window_bounds = array<i64: 1, 128>}, {pipeline_mode = #tpu.pipeline_mode<synchronous>, transform_indices = @transform_12, window_bounds = array<i64: 128, 64>}, {pipeline_mode = #tpu.pipeline_mode<synchronous>, transform_indices = @transform_13, window_bounds = array<i64: 1, 64>}, {pipeline_mode = #tpu.pipeline_mode<synchronous>, transform_indices = @transform_14, window_bounds = array<i64: 64, 2>}, {pipeline_mode = #tpu.pipeline_mode<synchronous>, transform_indices = @transform_15, window_bounds = array<i64: 1, 2>}, {transform_indices = @transform_16, window_bounds = array<i64: 1, 2, 2>}]} {
    %c0 = arith.constant 0 : index
    %c0_0 = arith.constant 0 : index
    %c0_1 = arith.constant 0 : index
    %0 = vector.load %arg1[%c0, %c0_0, %c0_1] : memref<1x264x2xf32, #tpu.memory_space<vmem>>, vector<1x264x2xf32>
    %1 = vector.shape_cast %0 : vector<1x264x2xf32> to vector<264x2xf32>
    %c0_2 = arith.constant 0 : index
    %c0_3 = arith.constant 0 : index
    %2 = vector.load %arg2[%c0_2, %c0_3] : memref<2x64xf32, #tpu.memory_space<vmem>>, vector<2x64xf32>
    %cst = arith.constant dense<0.000000e+00> : vector<264x64xf32>
    %3 = tpu.matmul %1, %2, %cst {dimension_numbers = #tpu.dot_dimension_numbers<[1], [0], [0], [1], [0, 0, 1, 1], [], []>} : vector<264x2xf32>, vector<2x64xf32>, vector<264x64xf32> -> vector<264x64xf32>
    %c0_4 = arith.constant 0 : index
    %c0_5 = arith.constant 0 : index
    %4 = vector.load %arg18[%c0_4, %c0_5] : memref<264x64xf32, #tpu.memory_space<vmem>>, vector<264x64xf32>
    tpu.vector_store %arg18[%c0_4, %c0_5], %3 {strides = array<i32>} : memref<264x64xf32, #tpu.memory_space<vmem>>, vector<264x64xf32>,
    %cst_6 = arith.constant 0.000000e+00 : f32
    %5 = vector.broadcast %cst_6 : f32 to vector<224x64xf32>
    %c0_7 = arith.constant 0 : index
    %c0_8 = arith.constant 0 : index
    %6 = vector.load %arg18[%c0_7, %c0_8] : memref<264x64xf32, #tpu.memory_space<vmem>>, vector<224x64xf32>
    %c0_9 = arith.constant 0 : index
    %c0_10 = arith.constant 0 : index
    %7 = vector.load %arg3[%c0_9, %c0_10] : memref<9x64xf32, #tpu.memory_space<vmem>>, vector<1x64xf32>
    %8 = vector.broadcast %7 : vector<1x64xf32> to vector<224x64xf32>
    %9 = arith.mulf %6, %8 : vector<224x64xf32>
    %10 = arith.addf %5, %9 : vector<224x64xf32>
    %c1 = arith.constant 1 : index
    %c0_11 = arith.constant 0 : index
    %11 = vector.load %arg18[%c1, %c0_11] : memref<264x64xf32, #tpu.memory_space<vmem>>, vector<224x64xf32>
    %c1_12 = arith.constant 1 : index
    %c0_13 = arith.constant 0 : index
    %12 = vector.load %arg3[%c1_12, %c0_13] : memref<9x64xf32, #tpu.memory_space<vmem>>, vector<1x64xf32>
    %13 = vector.broadcast %12 : vector<1x64xf32> to vector<224x64xf32>
    %14 = arith.mulf %11, %13 : vector<224x64xf32>
    %15 = arith.addf %10, %14 : vector<224x64xf32>
    %c2 = arith.constant 2 : index
    %c0_14 = arith.constant 0 : index
    %16 = vector.load %arg18[%c2, %c0_14] : memref<264x64xf32, #tpu.memory_space<vmem>>, vector<224x64xf32>
    %c2_15 = arith.constant 2 : index
    %c0_16 = arith.constant 0 : index
    %17 = vector.load %arg3[%c2_15, %c0_16] : memref<9x64xf32, #tpu.memory_space<vmem>>, vector<1x64xf32>
    %18 = vector.broadcast %17 : vector<1x64xf32> to vector<224x64xf32>
    %19 = arith.mulf %16, %18 : vector<224x64xf32>
    %20 = arith.addf %15, %19 : vector<224x64xf32>
    %c16 = arith.constant 16 : index
    %c0_17 = arith.constant 0 : index
    %21 = vector.load %arg18[%c16, %c0_17] : memref<264x64xf32, #tpu.memory_space<vmem>>, vector<224x64xf32>
    %c3 = arith.constant 3 : index
    %c0_18 = arith.constant 0 : index
    %22 = vector.load %arg3[%c3, %c0_18] : memref<9x64xf32, #tpu.memory_space<vmem>>, vector<1x64xf32>
    %23 = vector.broadcast %22 : vector<1x64xf32> to vector<224x64xf32>
    %24 = arith.mulf %21, %23 : vector<224x64xf32>
    %25 = arith.addf %20, %24 : vector<224x64xf32>
    %c17 = arith.constant 17 : index
    %c0_19 = arith.constant 0 : index
    %26 = vector.load %arg18[%c17, %c0_19] : memref<264x64xf32, #tpu.memory_space<vmem>>, vector<224x64xf32>
    %c4 = arith.constant 4 : index
    %c0_20 = arith.constant 0 : index
    %27 = vector.load %arg3[%c4, %c0_20] : memref<9x64xf32, #tpu.memory_space<vmem>>, vector<1x64xf32>
    %28 = vector.broadcast %27 : vector<1x64xf32> to vector<224x64xf32>
    %29 = arith.mulf %26, %28 : vector<224x64xf32>
    %30 = arith.addf %25, %29 : vector<224x64xf32>
    %c18 = arith.constant 18 : index
    %c0_21 = arith.constant 0 : index
    %31 = vector.load %arg18[%c18, %c0_21] : memref<264x64xf32, #tpu.memory_space<vmem>>, vector<224x64xf32>
    %c5 = arith.constant 5 : index
    %c0_22 = arith.constant 0 : index
    %32 = vector.load %arg3[%c5, %c0_22] : memref<9x64xf32, #tpu.memory_space<vmem>>, vector<1x64xf32>
    %33 = vector.broadcast %32 : vector<1x64xf32> to vector<224x64xf32>
    %34 = arith.mulf %31, %33 : vector<224x64xf32>
    %35 = arith.addf %30, %34 : vector<224x64xf32>
    %c32 = arith.constant 32 : index
    %c0_23 = arith.constant 0 : index
    %36 = vector.load %arg18[%c32, %c0_23] : memref<264x64xf32, #tpu.memory_space<vmem>>, vector<224x64xf32>
    %c6 = arith.constant 6 : index
    %c0_24 = arith.constant 0 : index
    %37 = vector.load %arg3[%c6, %c0_24] : memref<9x64xf32, #tpu.memory_space<vmem>>, vector<1x64xf32>
    %38 = vector.broadcast %37 : vector<1x64xf32> to vector<224x64xf32>
    %39 = arith.mulf %36, %38 : vector<224x64xf32>
    %40 = arith.addf %35, %39 : vector<224x64xf32>
    %c33 = arith.constant 33 : index
    %c0_25 = arith.constant 0 : index
    %41 = vector.load %arg18[%c33, %c0_25] : memref<264x64xf32, #tpu.memory_space<vmem>>, vector<224x64xf32>
    %c7 = arith.constant 7 : index
    %c0_26 = arith.constant 0 : index
    %42 = vector.load %arg3[%c7, %c0_26] : memref<9x64xf32, #tpu.memory_space<vmem>>, vector<1x64xf32>
    %43 = vector.broadcast %42 : vector<1x64xf32> to vector<224x64xf32>
    %44 = arith.mulf %41, %43 : vector<224x64xf32>
    %45 = arith.addf %40, %44 : vector<224x64xf32>
    %c34 = arith.constant 34 : index
    %c0_27 = arith.constant 0 : index
    %46 = vector.load %arg18[%c34, %c0_27] : memref<264x64xf32, #tpu.memory_space<vmem>>, vector<224x64xf32>
    %c8 = arith.constant 8 : index
    %c0_28 = arith.constant 0 : index
    %47 = vector.load %arg3[%c8, %c0_28] : memref<9x64xf32, #tpu.memory_space<vmem>>, vector<1x64xf32>
    %48 = vector.broadcast %47 : vector<1x64xf32> to vector<224x64xf32>
    %49 = arith.mulf %46, %48 : vector<224x64xf32>
    %50 = arith.addf %45, %49 : vector<224x64xf32>
    %c0_29 = arith.constant 0 : index
    %c0_30 = arith.constant 0 : index
    %51 = vector.load %arg4[%c0_29, %c0_30] : memref<1x64xf32, #tpu.memory_space<vmem>>, vector<1x64xf32>
    %52 = vector.broadcast %51 : vector<1x64xf32> to vector<224x64xf32>
    %53 = arith.addf %50, %52 : vector<224x64xf32>
    %cst_31 = arith.constant 0.000000e+00 : f32
    %54 = vector.broadcast %cst_31 : f32 to vector<224x64xf32>
    %55 = arith.cmpf ogt, %53, %54 : vector<224x64xf32>
    %cst_32 = arith.constant 1.000000e-01 : f32
    %56 = vector.broadcast %cst_32 : f32 to vector<224x64xf32>
    %57 = arith.mulf %56, %53 : vector<224x64xf32>
    %58 = arith.select %55, %53, %57 : vector<224x64xi1>, vector<224x64xf32>
    %c0_33 = arith.constant 0 : index
    %c0_34 = arith.constant 0 : index
    %59 = vector.load %arg19[%c0_33, %c0_34] : memref<224x64xf32, #tpu.memory_space<vmem>>, vector<224x64xf32>
    tpu.vector_store %arg19[%c0_33, %c0_34], %58 {strides = array<i32>} : memref<224x64xf32, #tpu.memory_space<vmem>>, vector<224x64xf32>,
    %c0_35 = arith.constant 0 : index
    %c0_36 = arith.constant 0 : index
    %60 = vector.load %arg19[%c0_35, %c0_36] : memref<224x64xf32, #tpu.memory_space<vmem>>, vector<205x64xf32>
    %c1_37 = arith.constant 1 : index
    %c0_38 = arith.constant 0 : index
    %61 = vector.load %arg19[%c1_37, %c0_38] : memref<224x64xf32, #tpu.memory_space<vmem>>, vector<205x64xf32>
    %62 = arith.maximumf %60, %61 : vector<205x64xf32>
    %c16_39 = arith.constant 16 : index
    %c0_40 = arith.constant 0 : index
    %63 = vector.load %arg19[%c16_39, %c0_40] : memref<224x64xf32, #tpu.memory_space<vmem>>, vector<205x64xf32>
    %c17_41 = arith.constant 17 : index
    %c0_42 = arith.constant 0 : index
    %64 = vector.load %arg19[%c17_41, %c0_42] : memref<224x64xf32, #tpu.memory_space<vmem>>, vector<205x64xf32>
    %65 = arith.maximumf %63, %64 : vector<205x64xf32>
    %66 = arith.maximumf %62, %65 : vector<205x64xf32>
    %c0_43 = arith.constant 0 : index
    %c0_44 = arith.constant 0 : index
    %67 = vector.load %arg5[%c0_43, %c0_44] : memref<64x205xf32, #tpu.memory_space<vmem>>, vector<64x205xf32>
    %cst_45 = arith.constant dense<0.000000e+00> : vector<64x64xf32>
    %68 = tpu.matmul %67, %66, %cst_45 {dimension_numbers = #tpu.dot_dimension_numbers<[1], [0], [0], [1], [0, 0, 1, 1], [], []>} : vector<64x205xf32>, vector<205x64xf32>, vector<64x64xf32> -> vector<64x64xf32>
    %c0_46 = arith.constant 0 : index
    %c0_47 = arith.constant 0 : index
    %69 = vector.load %arg20[%c0_46, %c0_47] : memref<64x64xf32, #tpu.memory_space<vmem>>, vector<64x64xf32>
    tpu.vector_store %arg20[%c0_46, %c0_47], %68 {strides = array<i32>} : memref<64x64xf32, #tpu.memory_space<vmem>>, vector<64x64xf32>,
    %cst_48 = arith.constant 0.000000e+00 : f32
    %70 = vector.broadcast %cst_48 : f32 to vector<40x32xf32>
    %c0_49 = arith.constant 0 : index
    %c0_50 = arith.constant 0 : index
    %71 = vector.load %arg20[%c0_49, %c0_50] : memref<64x64xf32, #tpu.memory_space<vmem>>, vector<40x64xf32>
    %c0_51 = arith.constant 0 : index
    %c0_52 = arith.constant 0 : index
    %c0_53 = arith.constant 0 : index
    %72 = vector.load %arg6[%c0_51, %c0_52, %c0_53] : memref<9x64x32xf32, #tpu.memory_space<vmem>>, vector<1x64x32xf32>
    %73 = vector.shape_cast %72 : vector<1x64x32xf32> to vector<64x32xf32>
    %cst_54 = arith.constant dense<0.000000e+00> : vector<40x32xf32>
    %74 = tpu.matmul %71, %73, %cst_54 {dimension_numbers = #tpu.dot_dimension_numbers<[1], [0], [0], [1], [0, 0, 1, 1], [], []>} : vector<40x64xf32>, vector<64x32xf32>, vector<40x32xf32> -> vector<40x32xf32>
    %75 = arith.addf %70, %74 : vector<40x32xf32>
    %c1_55 = arith.constant 1 : index
    %c0_56 = arith.constant 0 : index
    %76 = vector.load %arg20[%c1_55, %c0_56] : memref<64x64xf32, #tpu.memory_space<vmem>>, vector<40x64xf32>
    %c1_57 = arith.constant 1 : index
    %c0_58 = arith.constant 0 : index
    %c0_59 = arith.constant 0 : index
    %77 = vector.load %arg6[%c1_57, %c0_58, %c0_59] : memref<9x64x32xf32, #tpu.memory_space<vmem>>, vector<1x64x32xf32>
    %78 = vector.shape_cast %77 : vector<1x64x32xf32> to vector<64x32xf32>
    %cst_60 = arith.constant dense<0.000000e+00> : vector<40x32xf32>
    %79 = tpu.matmul %76, %78, %cst_60 {dimension_numbers = #tpu.dot_dimension_numbers<[1], [0], [0], [1], [0, 0, 1, 1], [], []>} : vector<40x64xf32>, vector<64x32xf32>, vector<40x32xf32> -> vector<40x32xf32>
    %80 = arith.addf %75, %79 : vector<40x32xf32>
    %c2_61 = arith.constant 2 : index
    %c0_62 = arith.constant 0 : index
    %81 = vector.load %arg20[%c2_61, %c0_62] : memref<64x64xf32, #tpu.memory_space<vmem>>, vector<40x64xf32>
    %c2_63 = arith.constant 2 : index
    %c0_64 = arith.constant 0 : index
    %c0_65 = arith.constant 0 : index
    %82 = vector.load %arg6[%c2_63, %c0_64, %c0_65] : memref<9x64x32xf32, #tpu.memory_space<vmem>>, vector<1x64x32xf32>
    %83 = vector.shape_cast %82 : vector<1x64x32xf32> to vector<64x32xf32>
    %cst_66 = arith.constant dense<0.000000e+00> : vector<40x32xf32>
    %84 = tpu.matmul %81, %83, %cst_66 {dimension_numbers = #tpu.dot_dimension_numbers<[1], [0], [0], [1], [0, 0, 1, 1], [], []>} : vector<40x64xf32>, vector<64x32xf32>, vector<40x32xf32> -> vector<40x32xf32>
    %85 = arith.addf %80, %84 : vector<40x32xf32>
    %c8_67 = arith.constant 8 : index
    %c0_68 = arith.constant 0 : index
    %86 = vector.load %arg20[%c8_67, %c0_68] : memref<64x64xf32, #tpu.memory_space<vmem>>, vector<40x64xf32>
    %c3_69 = arith.constant 3 : index
    %c0_70 = arith.constant 0 : index
    %c0_71 = arith.constant 0 : index
    %87 = vector.load %arg6[%c3_69, %c0_70, %c0_71] : memref<9x64x32xf32, #tpu.memory_space<vmem>>, vector<1x64x32xf32>
    %88 = vector.shape_cast %87 : vector<1x64x32xf32> to vector<64x32xf32>
    %cst_72 = arith.constant dense<0.000000e+00> : vector<40x32xf32>
    %89 = tpu.matmul %86, %88, %cst_72 {dimension_numbers = #tpu.dot_dimension_numbers<[1], [0], [0], [1], [0, 0, 1, 1], [], []>} : vector<40x64xf32>, vector<64x32xf32>, vector<40x32xf32> -> vector<40x32xf32>
    %90 = arith.addf %85, %89 : vector<40x32xf32>
    %c9 = arith.constant 9 : index
    %c0_73 = arith.constant 0 : index
    %91 = vector.load %arg20[%c9, %c0_73] : memref<64x64xf32, #tpu.memory_space<vmem>>, vector<40x64xf32>
    %c4_74 = arith.constant 4 : index
    %c0_75 = arith.constant 0 : index
    %c0_76 = arith.constant 0 : index
    %92 = vector.load %arg6[%c4_74, %c0_75, %c0_76] : memref<9x64x32xf32, #tpu.memory_space<vmem>>, vector<1x64x32xf32>
    %93 = vector.shape_cast %92 : vector<1x64x32xf32> to vector<64x32xf32>
    %cst_77 = arith.constant dense<0.000000e+00> : vector<40x32xf32>
    %94 = tpu.matmul %91, %93, %cst_77 {dimension_numbers = #tpu.dot_dimension_numbers<[1], [0], [0], [1], [0, 0, 1, 1], [], []>} : vector<40x64xf32>, vector<64x32xf32>, vector<40x32xf32> -> vector<40x32xf32>
    %95 = arith.addf %90, %94 : vector<40x32xf32>
    %c10 = arith.constant 10 : index
    %c0_78 = arith.constant 0 : index
    %96 = vector.load %arg20[%c10, %c0_78] : memref<64x64xf32, #tpu.memory_space<vmem>>, vector<40x64xf32>
    %c5_79 = arith.constant 5 : index
    %c0_80 = arith.constant 0 : index
    %c0_81 = arith.constant 0 : index
    %97 = vector.load %arg6[%c5_79, %c0_80, %c0_81] : memref<9x64x32xf32, #tpu.memory_space<vmem>>, vector<1x64x32xf32>
    %98 = vector.shape_cast %97 : vector<1x64x32xf32> to vector<64x32xf32>
    %cst_82 = arith.constant dense<0.000000e+00> : vector<40x32xf32>
    %99 = tpu.matmul %96, %98, %cst_82 {dimension_numbers = #tpu.dot_dimension_numbers<[1], [0], [0], [1], [0, 0, 1, 1], [], []>} : vector<40x64xf32>, vector<64x32xf32>, vector<40x32xf32> -> vector<40x32xf32>
    %100 = arith.addf %95, %99 : vector<40x32xf32>
    %c16_83 = arith.constant 16 : index
    %c0_84 = arith.constant 0 : index
    %101 = vector.load %arg20[%c16_83, %c0_84] : memref<64x64xf32, #tpu.memory_space<vmem>>, vector<40x64xf32>
    %c6_85 = arith.constant 6 : index
    %c0_86 = arith.constant 0 : index
    %c0_87 = arith.constant 0 : index
    %102 = vector.load %arg6[%c6_85, %c0_86, %c0_87] : memref<9x64x32xf32, #tpu.memory_space<vmem>>, vector<1x64x32xf32>
    %103 = vector.shape_cast %102 : vector<1x64x32xf32> to vector<64x32xf32>
    %cst_88 = arith.constant dense<0.000000e+00> : vector<40x32xf32>
    %104 = tpu.matmul %101, %103, %cst_88 {dimension_numbers = #tpu.dot_dimension_numbers<[1], [0], [0], [1], [0, 0, 1, 1], [], []>} : vector<40x64xf32>, vector<64x32xf32>, vector<40x32xf32> -> vector<40x32xf32>
    %105 = arith.addf %100, %104 : vector<40x32xf32>
    %c17_89 = arith.constant 17 : index
    %c0_90 = arith.constant 0 : index
    %106 = vector.load %arg20[%c17_89, %c0_90] : memref<64x64xf32, #tpu.memory_space<vmem>>, vector<40x64xf32>
    %c7_91 = arith.constant 7 : index
    %c0_92 = arith.constant 0 : index
    %c0_93 = arith.constant 0 : index
    %107 = vector.load %arg6[%c7_91, %c0_92, %c0_93] : memref<9x64x32xf32, #tpu.memory_space<vmem>>, vector<1x64x32xf32>
    %108 = vector.shape_cast %107 : vector<1x64x32xf32> to vector<64x32xf32>
    %cst_94 = arith.constant dense<0.000000e+00> : vector<40x32xf32>
    %109 = tpu.matmul %106, %108, %cst_94 {dimension_numbers = #tpu.dot_dimension_numbers<[1], [0], [0], [1], [0, 0, 1, 1], [], []>} : vector<40x64xf32>, vector<64x32xf32>, vector<40x32xf32> -> vector<40x32xf32>
    %110 = arith.addf %105, %109 : vector<40x32xf32>
    %c18_95 = arith.constant 18 : index
    %c0_96 = arith.constant 0 : index
    %111 = vector.load %arg20[%c18_95, %c0_96] : memref<64x64xf32, #tpu.memory_space<vmem>>, vector<40x64xf32>
    %c8_97 = arith.constant 8 : index
    %c0_98 = arith.constant 0 : index
    %c0_99 = arith.constant 0 : index
    %112 = vector.load %arg6[%c8_97, %c0_98, %c0_99] : memref<9x64x32xf32, #tpu.memory_space<vmem>>, vector<1x64x32xf32>
    %113 = vector.shape_cast %112 : vector<1x64x32xf32> to vector<64x32xf32>
    %cst_100 = arith.constant dense<0.000000e+00> : vector<40x32xf32>
    %114 = tpu.matmul %111, %113, %cst_100 {dimension_numbers = #tpu.dot_dimension_numbers<[1], [0], [0], [1], [0, 0, 1, 1], [], []>} : vector<40x64xf32>, vector<64x32xf32>, vector<40x32xf32> -> vector<40x32xf32>
    %115 = arith.addf %110, %114 : vector<40x32xf32>
    %c0_101 = arith.constant 0 : index
    %c0_102 = arith.constant 0 : index
    %116 = vector.load %arg7[%c0_101, %c0_102] : memref<1x32xf32, #tpu.memory_space<vmem>>, vector<1x32xf32>
    %117 = vector.broadcast %116 : vector<1x32xf32> to vector<40x32xf32>
    %118 = arith.addf %115, %117 : vector<40x32xf32>
    %cst_103 = arith.constant 0.000000e+00 : f32
    %119 = vector.broadcast %cst_103 : f32 to vector<40x32xf32>
    %120 = arith.cmpf ogt, %118, %119 : vector<40x32xf32>
    %cst_104 = arith.constant 1.000000e-01 : f32
    %121 = vector.broadcast %cst_104 : f32 to vector<40x32xf32>
    %122 = arith.mulf %121, %118 : vector<40x32xf32>
    %123 = arith.select %120, %118, %122 : vector<40x32xi1>, vector<40x32xf32>
    %124 = vector.extract_strided_slice %123 {offsets = [0, 0], sizes = [32, 32], strides = [1, 1]} : vector<40x32xf32> to vector<32x32xf32>
    %125 = vector.extract_strided_slice %123 {offsets = [8, 0], sizes = [32, 32], strides = [1, 1]} : vector<40x32xf32> to vector<32x32xf32>
    %126 = arith.maximumf %124, %125 : vector<32x32xf32>
    %c0_105 = arith.constant 0 : index
    %c0_106 = arith.constant 0 : index
    %127 = vector.load %arg8[%c0_105, %c0_106] : memref<32x1xf32, #tpu.memory_space<vmem>>, vector<32x1xf32>
    %128 = vector.broadcast %127 : vector<32x1xf32> to vector<32x32xf32>
    %129 = arith.mulf %126, %128 : vector<32x32xf32>
    %cst_107 = arith.constant dense<0.000000e+00> : vector<32xf32>
    %130 = vector.multi_reduction <add>, %129, %cst_107 [0] : vector<32x32xf32> to vector<32xf32>
    %131 = vector.shape_cast %130 : vector<32xf32> to vector<1x32xf32>
    %c0_108 = arith.constant 0 : index
    %c0_109 = arith.constant 0 : index
    %132 = vector.load %arg9[%c0_108, %c0_109] : memref<2x32xf32, #tpu.memory_space<vmem>>, vector<2x32xf32>
    %133 = vector.broadcast %131 : vector<1x32xf32> to vector<2x32xf32>
    %134 = arith.mulf %133, %132 : vector<2x32xf32>
    %c0_110 = arith.constant 0 : index
    %c0_111 = arith.constant 0 : index
    %135 = vector.load %arg10[%c0_110, %c0_111] : memref<32x16xf32, #tpu.memory_space<vmem>>, vector<32x16xf32>
    %cst_112 = arith.constant dense<0.000000e+00> : vector<2x16xf32>
    %136 = tpu.matmul %134, %135, %cst_112 {dimension_numbers = #tpu.dot_dimension_numbers<[1], [0], [0], [1], [0, 0, 1, 1], [], []>} : vector<2x32xf32>, vector<32x16xf32>, vector<2x16xf32> -> vector<2x16xf32>
    %c0_113 = arith.constant 0 : index
    %c0_114 = arith.constant 0 : index
    %137 = vector.load %arg11[%c0_113, %c0_114] : memref<16x128xf32, #tpu.memory_space<vmem>>, vector<16x128xf32>
    %cst_115 = arith.constant dense<0.000000e+00> : vector<2x128xf32>
    %138 = tpu.matmul %136, %137, %cst_115 {dimension_numbers = #tpu.dot_dimension_numbers<[1], [0], [0], [1], [0, 0, 1, 1], [], []>} : vector<2x16xf32>, vector<16x128xf32>, vector<2x128xf32> -> vector<2x128xf32>
    %c0_116 = arith.constant 0 : index
    %c0_117 = arith.constant 0 : index
    %139 = vector.load %arg12[%c0_116, %c0_117] : memref<1x128xf32, #tpu.memory_space<vmem>>, vector<1x128xf32>
    %140 = vector.broadcast %139 : vector<1x128xf32> to vector<2x128xf32>
    %141 = arith.addf %138, %140 : vector<2x128xf32>
    %cst_118 = arith.constant 0.000000e+00 : f32
    %142 = vector.broadcast %cst_118 : f32 to vector<2x128xf32>
    %143 = arith.maximumf %141, %142 : vector<2x128xf32>
    %c0_119 = arith.constant 0 : index
    %c0_120 = arith.constant 0 : index
    %144 = vector.load %arg13[%c0_119, %c0_120] : memref<128x64xf32, #tpu.memory_space<vmem>>, vector<128x64xf32>
    %cst_121 = arith.constant dense<0.000000e+00> : vector<2x64xf32>
    %145 = tpu.matmul %143, %144, %cst_121 {dimension_numbers = #tpu.dot_dimension_numbers<[1], [0], [0], [1], [0, 0, 1, 1], [], []>} : vector<2x128xf32>, vector<128x64xf32>, vector<2x64xf32> -> vector<2x64xf32>
    %c0_122 = arith.constant 0 : index
    %c0_123 = arith.constant 0 : index
    %146 = vector.load %arg14[%c0_122, %c0_123] : memref<1x64xf32, #tpu.memory_space<vmem>>, vector<1x64xf32>
    %147 = vector.broadcast %146 : vector<1x64xf32> to vector<2x64xf32>
    %148 = arith.addf %145, %147 : vector<2x64xf32>
    %cst_124 = arith.constant 0.000000e+00 : f32
    %149 = vector.broadcast %cst_124 : f32 to vector<2x64xf32>
    %150 = arith.maximumf %148, %149 : vector<2x64xf32>
    %c0_125 = arith.constant 0 : index
    %c0_126 = arith.constant 0 : index
    %151 = vector.load %arg15[%c0_125, %c0_126] : memref<64x2xf32, #tpu.memory_space<vmem>>, vector<64x2xf32>
    %cst_127 = arith.constant dense<0.000000e+00> : vector<2x2xf32>
    %152 = tpu.matmul %150, %151, %cst_127 {dimension_numbers = #tpu.dot_dimension_numbers<[1], [0], [0], [1], [0, 0, 1, 1], [], []>} : vector<2x64xf32>, vector<64x2xf32>, vector<2x2xf32> -> vector<2x2xf32>
    %c0_128 = arith.constant 0 : index
    %c0_129 = arith.constant 0 : index
    %153 = vector.load %arg16[%c0_128, %c0_129] : memref<1x2xf32, #tpu.memory_space<vmem>>, vector<1x2xf32>
    %154 = vector.broadcast %153 : vector<1x2xf32> to vector<2x2xf32>
    %155 = arith.addf %152, %154 : vector<2x2xf32>
    %c0_130 = arith.constant 0 : index
    %c0_131 = arith.constant 0 : index
    %c0_132 = arith.constant 0 : index
    %156 = vector.load %arg17[%c0_130, %c0_131, %c0_132] : memref<1x2x2xf32, #tpu.memory_space<vmem>>, vector<1x2x2xf32>
    %157 = vector.shape_cast %156 : vector<1x2x2xf32> to vector<2x2xf32>
    %158 = vector.shape_cast %155 : vector<2x2xf32> to vector<1x2x2xf32>
    tpu.vector_store %arg17[%c0_130, %c0_131, %c0_132], %158 {strides = array<i32>} : memref<1x2x2xf32, #tpu.memory_space<vmem>>, vector<1x2x2xf32>,
    return
  }
  func.func @transform_0(%arg0: i32) -> (i32, i32, i32) {
    %c0_i32 = arith.constant 0 : i32
    %c0_i32_0 = arith.constant 0 : i32
    %c0_i32_1 = arith.constant 0 : i32
    return %arg0, %c0_i32, %c0_i32_0 : i32, i32, i32
  }
  func.func @transform_1(%arg0: i32) -> (i32, i32) {
    %c0_i32 = arith.constant 0 : i32
    %c0_i32_0 = arith.constant 0 : i32
    %c0_i32_1 = arith.constant 0 : i32
    return %c0_i32, %c0_i32_0 : i32, i32
  }
  func.func @transform_2(%arg0: i32) -> (i32, i32) {
    %c0_i32 = arith.constant 0 : i32
    %c0_i32_0 = arith.constant 0 : i32
    %c0_i32_1 = arith.constant 0 : i32
    return %c0_i32, %c0_i32_0 : i32, i32
  }
  func.func @transform_3(%arg0: i32) -> (i32, i32) {
    %c0_i32 = arith.constant 0 : i32
    %c0_i32_0 = arith.constant 0 : i32
    %c0_i32_1 = arith.constant 0 : i32
    return %c0_i32, %c0_i32_0 : i32, i32
  }
  func.func @transform_4(%arg0: i32) -> (i32, i32) {
    %c0_i32 = arith.constant 0 : i32
    %c0_i32_0 = arith.constant 0 : i32
    %c0_i32_1 = arith.constant 0 : i32
    return %c0_i32, %c0_i32_0 : i32, i32
  }
  func.func @transform_5(%arg0: i32) -> (i32, i32, i32) {
    %c0_i32 = arith.constant 0 : i32
    %c0_i32_0 = arith.constant 0 : i32
    %c0_i32_1 = arith.constant 0 : i32
    %c0_i32_2 = arith.constant 0 : i32
    return %c0_i32, %c0_i32_0, %c0_i32_1 : i32, i32, i32
  }
  func.func @transform_6(%arg0: i32) -> (i32, i32) {
    %c0_i32 = arith.constant 0 : i32
    %c0_i32_0 = arith.constant 0 : i32
    %c0_i32_1 = arith.constant 0 : i32
    return %c0_i32, %c0_i32_0 : i32, i32
  }
  func.func @transform_7(%arg0: i32) -> (i32, i32) {
    %c0_i32 = arith.constant 0 : i32
    %c0_i32_0 = arith.constant 0 : i32
    %c0_i32_1 = arith.constant 0 : i32
    return %c0_i32, %c0_i32_0 : i32, i32
  }
  func.func @transform_8(%arg0: i32) -> (i32, i32) {
    %c0_i32 = arith.constant 0 : i32
    %c0_i32_0 = arith.constant 0 : i32
    %c0_i32_1 = arith.constant 0 : i32
    return %c0_i32, %c0_i32_0 : i32, i32
  }
  func.func @transform_9(%arg0: i32) -> (i32, i32) {
    %c0_i32 = arith.constant 0 : i32
    %c0_i32_0 = arith.constant 0 : i32
    %c0_i32_1 = arith.constant 0 : i32
    return %c0_i32, %c0_i32_0 : i32, i32
  }
  func.func @transform_10(%arg0: i32) -> (i32, i32) {
    %c0_i32 = arith.constant 0 : i32
    %c0_i32_0 = arith.constant 0 : i32
    %c0_i32_1 = arith.constant 0 : i32
    return %c0_i32, %c0_i32_0 : i32, i32
  }
  func.func @transform_11(%arg0: i32) -> (i32, i32) {
    %c0_i32 = arith.constant 0 : i32
    %c0_i32_0 = arith.constant 0 : i32
    %c0_i32_1 = arith.constant 0 : i32
    return %c0_i32, %c0_i32_0 : i32, i32
  }
  func.func @transform_12(%arg0: i32) -> (i32, i32) {
    %c0_i32 = arith.constant 0 : i32
    %c0_i32_0 = arith.constant 0 : i32
    %c0_i32_1 = arith.constant 0 : i32
    return %c0_i32, %c0_i32_0 : i32, i32
  }
  func.func @transform_13(%arg0: i32) -> (i32, i32) {
    %c0_i32 = arith.constant 0 : i32
    %c0_i32_0 = arith.constant 0 : i32
    %c0_i32_1 = arith.constant 0 : i32
    return %c0_i32, %c0_i32_0 : i32, i32
  }
  func.func @transform_14(%arg0: i32) -> (i32, i32) {
    %c0_i32 = arith.constant 0 : i32
    %c0_i32_0 = arith.constant 0 : i32
    %c0_i32_1 = arith.constant 0 : i32
    return %c0_i32, %c0_i32_0 : i32, i32
  }
  func.func @transform_15(%arg0: i32) -> (i32, i32) {
    %c0_i32 = arith.constant 0 : i32
    %c0_i32_0 = arith.constant 0 : i32
    %c0_i32_1 = arith.constant 0 : i32
    return %c0_i32, %c0_i32_0 : i32, i32
  }
  func.func @transform_16(%arg0: i32) -> (i32, i32, i32) {
    %c0_i32 = arith.constant 0 : i32
    %c0_i32_0 = arith.constant 0 : i32
    %c0_i32_1 = arith.constant 0 : i32
    return %arg0, %c0_i32, %c0_i32_0 : i32, i32, i32
  }
}

</mosaic_0001>

<bundles_post_ra>
// kernel: aux_regressor_forward.1
= control target key start
LH: loop header
LB: loop body
LE: loop exit
PB: predicated region body
PF: predicated region fallthrough
CT: control target
= control target key end

     0   :  { %s5590_s0 = inlined_call_operand.vmem [shape: f32[1,264,2], index: 0, kind: input, shape index: {}]   ;;  %s5591_s1 = inlined_call_operand.vmem [shape: f32[2,64], index: 1, kind: input, shape index: {}]   ;;  %s5592_s2 = inlined_call_operand.vmem [shape: f32[9,64], index: 2, kind: input, shape index: {}]   ;;  %s5593_s3 = inlined_call_operand.vmem [shape: f32[1,64], index: 3, kind: input, shape index: {}]   ;;  %s5594_s4 = inlined_call_operand.vmem [shape: f32[64,205], index: 4, kind: input, shape index: {}]   ;;  %s5595_s5 = inlined_call_operand.vmem [shape: f32[9,64,32], index: 5, kind: input, shape index: {}]   ;;  %s5596_s6 = inlined_call_operand.vmem [shape: f32[1,32], index: 6, kind: input, shape index: {}]   ;;  %s5597_s7 = inlined_call_operand.vmem [shape: f32[32,1], index: 7, kind: input, shape index: {}]   ;;  %s5598_s8 = inlined_call_operand.vmem [shape: f32[2,32], index: 8, kind: input, shape index: {}]   ;;  %s5599_s9 = inlined_call_operand.vmem [shape: f32[32,16], index: 9, kind: input, shape index: {}]   ;;  %s5600_s10 = inlined_call_operand.vmem [shape: f32[16,128], index: 10, kind: input, shape index: {}]   ;;  %s5601_s11 = inlined_call_operand.vmem [shape: f32[1,128], index: 11, kind: input, shape index: {}]   ;;  %s5602_s12 = inlined_call_operand.vmem [shape: f32[128,64], index: 12, kind: input, shape index: {}]   ;;  %s5603_s13 = inlined_call_operand.vmem [shape: f32[1,64], index: 13, kind: input, shape index: {}]   ;;  %s5604_s14 = inlined_call_operand.vmem [shape: f32[64,2], index: 14, kind: input, shape index: {}]   ;;  %s5605_s15 = inlined_call_operand.vmem [shape: f32[1,2], index: 15, kind: input, shape index: {}]   ;;  %s5606_s16 = inlined_call_operand.hbm [shape: f32[1,2,2], index: 16, kind: output, shape index: {}]  }
   0x1   :  { %5621 = sst [smem:[#allocation20_spill]] %s5590_s0 }
   0x2   :  { %v87_v0 = vld [vmem:[%s5591_s1] sm:$0x3]  ;;  %vm188_vm0 = vcmask 1041408   ;;  %s5622_s25 = sld [smem:[#allocation20_spill]]  ;;  %v5608_v2 = vmov 0.0   ;;  %vm3903_vm1 = vmmov 0  }
   0x3   :  { %3412 = vmatprep.subr.mxu0 %v5608_v2  ;;  %3414 = vmatprep.mubr.msk.f32.mxu0 %vm3903_vm1, %v5608_v2  ;;  %vm88_vm2 = vcmask 15360  }
   0x4   :  { %3413 = vmatpush3.msk.msra.mxu0 %vm188_vm0, %v87_v0  ;;  %1406 = vmatprep.subr.mxu1 %v5608_v2 }
   0x5   :  { %3606 = vmatprep.subr.mxu0 %v5608_v2 }
   0x8   :  { %v54_v1 = vld [vmem:[%s5622_s25] sm:$0xff]  ;;  %v55_v3 = vld [vmem:[%s5622_s25 + $0x8] sm:$0xff]  ;;  %v56_v4 = vld [vmem:[%s5622_s25 + $0x10] sm:$0xff] }
   0x9   :  { %3415 = vmatmul.mubr.msk.f32.vlgmr.msra.gmra.mxu0 %vm88_vm2, %v54_v1 }
   0xa   :  { %3417 = vmatprep.mubr.msk.f32.mxu0 %vm3903_vm1, %v5608_v2 }
   0xd   :  { %3418 = vmatmul.mubr.msk.f32.gmra.mxu0 %vm88_vm2, %v55_v3 }
   0xe   :  { %3420 = vmatprep.mubr.msk.f32.mxu0 %vm3903_vm1, %v5608_v2 }
  0x11   :  { %3421 = vmatmul.mubr.msk.f32.gmra.mxu0 %vm88_vm2, %v56_v4 }
  0x12   :  { %21 = vsyncpa [#allocation6], 0  ;;  %3423 = vmatprep.mubr.msk.f32.mxu0 %vm3903_vm1, %v5608_v2  ;;  %v57_v5 = vld [vmem:[%s5622_s25 + $0x18] sm:$0xff]  ;;  %v58_v6 = vld [vmem:[%s5622_s25 + $0x20] sm:$0xff]  ;;  %vm422_vm3 = vcmask 523264  }
  0x13   :  { %v59_v7 = vld [vmem:[%s5622_s25 + $0x28] sm:$0xff]  ;;  %v60_v8 = vld [vmem:[%s5622_s25 + $0x30] sm:$0xff]  ;;  %v61_v9 = vld [vmem:[%s5622_s25 + $0x38] sm:$0xff] }
  0x14   :  { %v62_v10 = vld [vmem:[%s5622_s25 + $0x40] sm:$0xff]  ;;  %v63_v11 = vld [vmem:[%s5622_s25 + $0x48] sm:$0xff]  ;;  %v64_v12 = vld [vmem:[%s5622_s25 + $0x50] sm:$0xff] }
  0x15   :  { %3424 = vmatmul.mubr.msk.f32.gmra.mxu0 %vm88_vm2, %v57_v5  ;;  %v65_v13 = vld [vmem:[%s5622_s25 + $0x58] sm:$0xff]  ;;  %v66_v14 = vld [vmem:[%s5622_s25 + $0x60] sm:$0xff]  ;;  %v67_v15 = vld [vmem:[%s5622_s25 + $0x68] sm:$0xff] }
  0x16   :  { %3426 = vmatprep.mubr.msk.f32.mxu0 %vm3903_vm1, %v5608_v2  ;;  %v68_v16 = vld [vmem:[%s5622_s25 + $0x70] sm:$0xff]  ;;  %v69_v17 = vld [vmem:[%s5622_s25 + $0x78] sm:$0xff]  ;;  %v70_v18 = vld [vmem:[%s5622_s25 + $0x80] sm:$0xff] }
  0x17   :  { %v71_v19 = vld [vmem:[%s5622_s25 + $0x88] sm:$0xff]  ;;  %v72_v20 = vld [vmem:[%s5622_s25 + $0x90] sm:$0xff]  ;;  %v73_v21 = vld [vmem:[%s5622_s25 + $0x98] sm:$0xff] }
  0x18   :  { %v74_v22 = vld [vmem:[%s5622_s25 + $0xa0] sm:$0xff]  ;;  %v75_v23 = vld [vmem:[%s5622_s25 + $0xa8] sm:$0xff]  ;;  %v76_v24 = vld [vmem:[%s5622_s25 + $0xb0] sm:$0xff] }
  0x19   :  { %3427 = vmatmul.mubr.msk.f32.gmra.mxu0 %vm88_vm2, %v58_v6  ;;  %v77_v25 = vld [vmem:[%s5622_s25 + $0xb8] sm:$0xff]  ;;  %v78_v26 = vld [vmem:[%s5622_s25 + $0xc0] sm:$0xff]  ;;  %v79_v27 = vld [vmem:[%s5622_s25 + $0xc8] sm:$0xff] }
  0x1a   :  { %3429 = vmatprep.mubr.msk.f32.mxu0 %vm3903_vm1, %v5608_v2  ;;  %v80_v28 = vld [vmem:[%s5622_s25 + $0xd0] sm:$0xff]  ;;  %v81_v29 = vld [vmem:[%s5622_s25 + $0xd8] sm:$0xff]  ;;  %v82_v30 = vld [vmem:[%s5622_s25 + $0xe0] sm:$0xff] }
  0x1b   :  { %v83_v31 = vld [vmem:[%s5622_s25 + $0xe8] sm:$0xff]  ;;  %v84_v32 = vld [vmem:[%s5622_s25 + $0xf0] sm:$0xff]  ;;  %v85_v33 = vld [vmem:[%s5622_s25 + $0xf8] sm:$0xff] }
  0x1c   :  { %v86_v34 = vld [vmem:[%s5622_s25 + $0x100] sm:$0xff] }
  0x1d   :  { %3430 = vmatmul.mubr.msk.f32.gmra.mxu0 %vm88_vm2, %v59_v7  ;;  %v4203_v41 = vld [vmem:[%s5592_s2] ss:$0 sm:$0xff]  ;;  %v4208_v42 = vld [vmem:[%s5592_s2 + $0x1] ss:$0 sm:$0xff]  ;;  %v4215_v49 = vld [vmem:[%s5592_s2 + $0x2] ss:$0 sm:$0xff] }
  0x1e   :  { %3432 = vmatprep.mubr.msk.f32.mxu0 %vm3903_vm1, %v5608_v2  ;;  %v4221_v53 = vld [vmem:[%s5592_s2 + $0x3] ss:$0 sm:$0xff]  ;;  %v4231_v1 = vld [vmem:[%s5592_s2 + $0x4] ss:$0 sm:$0xff] }
  0x21   :  { %3433 = vmatmul.mubr.msk.f32.gmra.mxu0 %vm88_vm2, %v60_v8 }
  0x22   :  { %3435 = vmatprep.mubr.msk.f32.mxu0 %vm3903_vm1, %v5608_v2 }
  0x25   :  { %3436 = vmatmul.mubr.msk.f32.gmra.mxu0 %vm88_vm2, %v61_v9 }
  0x26   :  { %3438 = vmatprep.mubr.msk.f32.mxu0 %vm3903_vm1, %v5608_v2 }
  0x29   :  { %3439 = vmatmul.mubr.msk.f32.gmra.mxu0 %vm88_vm2, %v62_v10  ;;  %v4239_v10 = vld [vmem:[%s5592_s2 + $0x5] ss:$0 sm:$0xff] }
  0x2a   :  { %3441 = vmatprep.mubr.msk.f32.mxu0 %vm3903_vm1, %v5608_v2 }
  0x2d   :  { %3442 = vmatmul.mubr.msk.f32.gmra.mxu0 %vm88_vm2, %v63_v11 }
  0x2e   :  { %3444 = vmatprep.mubr.msk.f32.mxu0 %vm3903_vm1, %v5608_v2 }
  0x31   :  { %3445 = vmatmul.mubr.msk.f32.gmra.mxu0 %vm88_vm2, %v64_v12 }
  0x32   :  { %3447 = vmatprep.mubr.msk.f32.mxu0 %vm3903_vm1, %v5608_v2 }
  0x35   :  { %3448 = vmatmul.mubr.msk.f32.gmra.mxu0 %vm88_vm2, %v65_v13 }
  0x36   :  { %3450 = vmatprep.mubr.msk.f32.mxu0 %vm3903_vm1, %v5608_v2 }
  0x39   :  { %3451 = vmatmul.mubr.msk.f32.gmra.mxu0 %vm88_vm2, %v66_v14 }
  0x3a   :  { %3453 = vmatprep.mubr.msk.f32.mxu0 %vm3903_vm1, %v5608_v2 }
  0x3d   :  { %3454 = vmatmul.mubr.msk.f32.gmra.mxu0 %vm88_vm2, %v67_v15 }
  0x3e   :  { %3456 = vmatprep.mubr.msk.f32.mxu0 %vm3903_vm1, %v5608_v2 }
  0x41   :  { %3457 = vmatmul.mubr.msk.f32.gmra.mxu0 %vm88_vm2, %v68_v16 }
  0x42   :  { %3459 = vmatprep.mubr.msk.f32.mxu0 %vm3903_vm1, %v5608_v2 }
  0x45   :  { %3460 = vmatmul.mubr.msk.f32.gmra.mxu0 %vm88_vm2, %v69_v17 }
  0x46   :  { %3462 = vmatprep.mubr.msk.f32.mxu0 %vm3903_vm1, %v5608_v2 }
  0x49   :  { %3463 = vmatmul.mubr.msk.f32.gmra.mxu0 %vm88_vm2, %v70_v18 }
  0x4a   :  { %3465 = vmatprep.mubr.msk.f32.mxu0 %vm3903_vm1, %v5608_v2 }
  0x4d   :  { %3466 = vmatmul.mubr.msk.f32.gmra.mxu0 %vm88_vm2, %v71_v19 }
  0x4e   :  { %3468 = vmatprep.mubr.msk.f32.mxu0 %vm3903_vm1, %v5608_v2 }
  0x51   :  { %3469 = vmatmul.mubr.msk.f32.gmra.mxu0 %vm88_vm2, %v72_v20 }
  0x52   :  { %3471 = vmatprep.mubr.msk.f32.mxu0 %vm3903_vm1, %v5608_v2 }
  0x55   :  { %3472 = vmatmul.mubr.msk.f32.gmra.mxu0 %vm88_vm2, %v73_v21 }
  0x56   :  { %3474 = vmatprep.mubr.msk.f32.mxu0 %vm3903_vm1, %v5608_v2 }
  0x59   :  { %3475 = vmatmul.mubr.msk.f32.gmra.mxu0 %vm88_vm2, %v74_v22  ;;  %v4249_v22 = vld [vmem:[%s5592_s2 + $0x6] ss:$0 sm:$0xff] }
  0x5a   :  { %3477 = vmatprep.mubr.msk.f32.mxu0 %vm3903_vm1, %v5608_v2 }
  0x5d   :  { %3478 = vmatmul.mubr.msk.f32.gmra.mxu0 %vm88_vm2, %v75_v23 }
  0x5e   :  { %3480 = vmatprep.mubr.msk.f32.mxu0 %vm3903_vm1, %v5608_v2 }
  0x61   :  { %3481 = vmatmul.mubr.msk.f32.gmra.mxu0 %vm88_vm2, %v76_v24 }
  0x62   :  { %3483 = vmatprep.mubr.msk.f32.mxu0 %vm3903_vm1, %v5608_v2 }
  0x65   :  { %3484 = vmatmul.mubr.msk.f32.gmra.mxu0 %vm88_vm2, %v77_v25 }
  0x66   :  { %3486 = vmatprep.mubr.msk.f32.mxu0 %vm3903_vm1, %v5608_v2 }
  0x69   :  { %3487 = vmatmul.mubr.msk.f32.gmra.mxu0 %vm88_vm2, %v78_v26 }
  0x6a   :  { %3489 = vmatprep.mubr.msk.f32.mxu0 %vm3903_vm1, %v5608_v2 }
  0x6d   :  { %3490 = vmatmul.mubr.msk.f32.gmra.mxu0 %vm88_vm2, %v79_v27 }
  0x6e   :  { %3492 = vmatprep.mubr.msk.f32.mxu0 %vm3903_vm1, %v5608_v2 }
  0x71   :  { %3493 = vmatmul.mubr.msk.f32.gmra.mxu0 %vm88_vm2, %v80_v28 }
  0x72   :  { %3495 = vmatprep.mubr.msk.f32.mxu0 %vm3903_vm1, %v5608_v2 }
  0x75   :  { %3496 = vmatmul.mubr.msk.f32.gmra.mxu0 %vm88_vm2, %v81_v29 }
  0x76   :  { %3498 = vmatprep.mubr.msk.f32.mxu0 %vm3903_vm1, %v5608_v2 }
  0x79   :  { %3499 = vmatmul.mubr.msk.f32.gmra.mxu0 %vm88_vm2, %v82_v30 }
  0x7a   :  { %3501 = vmatprep.mubr.msk.f32.mxu0 %vm3903_vm1, %v5608_v2 }
  0x7d   :  { %3502 = vmatmul.mubr.msk.f32.gmra.mxu0 %vm88_vm2, %v83_v31 }
  0x7e   :  { %3504 = vmatprep.mubr.msk.f32.mxu0 %vm3903_vm1, %v5608_v2 }
  0x81   :  { %3505 = vmatmul.mubr.msk.f32.gmra.mxu0 %vm88_vm2, %v84_v32 }
  0x82   :  { %3507 = vmatprep.mubr.msk.f32.mxu0 %vm3903_vm1, %v5608_v2 }
  0x85   :  { %3508 = vmatmul.mubr.msk.f32.gmra.mxu0 %vm88_vm2, %v85_v33 }
  0x86   :  { %3510 = vmatprep.mubr.msk.f32.mxu0 %vm3903_vm1, %v5608_v2 }
  0x89   :  { %3511 = vmatmul.mubr.msk.f32.gmra.mxu0 %vm88_vm2, %v86_v34 }
  0x8a   :  { %3622 = vmatprep.mubr.msk.f32.mxu0 %vm3903_vm1, %v5608_v2 }
  0xc9   :  { %v258_v35 = vpop.f32.mrf.mxu0 }
  0xca   :  { %423 = vst.msk [vmem:[#allocation2] sm:$0xff] %vm422_vm3, %v258_v35 }
  0xcb   :  { %v3416_v36 = vpop.f32.mrf.mxu0 }
  0xcd   :  { %v263_v37 = vpop.f32.mrf.mxu0 }
  0xce   :  { %424 = vst.msk [vmem:[#allocation2 + $0x8] sm:$0xff] %vm422_vm3, %v263_v37 }
  0xcf   :  { %v3419_v38 = vpop.f32.mrf.mxu0 }
  0xd1   :  { %v268_v39 = vpop.f32.mrf.mxu0  ;;  %v456_v40 = vld [vmem:[#allocation2] sm:$0xff] }
  0xd2   :  { %425 = vst.msk [vmem:[#allocation2 + $0x10] sm:$0xff] %vm422_vm3, %v268_v39  ;;  %v489_v46 = vmul.f32 %v4203_v41, %v456_v40  ;;  %v4261_v39 = vld [vmem:[%s5592_s2 + $0x7] ss:$0 sm:$0xff] }
  0xd3   :  { %v3422_v43 = vpop.f32.mrf.mxu0 }
  0xd5   :  { %v545_v44 = vld [vmem:[#allocation2 + $0x1] sm:$0xff]  ;;  %v273_v45 = vpop.f32.mrf.mxu0 }
  0xd6   :  { %v578_v47 = vmul.f32 %v4208_v42, %v545_v44  ;;  %v634_v48 = vld [vmem:[#allocation2 + $0x2] sm:$0xff]  ;;  %426 = vst.msk [vmem:[#allocation2 + $0x18] sm:$0xff] %vm422_vm3, %v273_v45 }
  0xd7   :  { %v457_v50 = vld [vmem:[#allocation2 + $0x8] sm:$0xff]  ;;  %v3425_v51 = vpop.f32.mrf.mxu0  ;;  %v667_v54 = vmul.f32 %v4215_v49, %v634_v48 }
  0xd8   :  { %v606_v52 = vadd.f32 %v578_v47, %v489_v46  ;;  %v490_v58 = vmul.f32 %v4203_v41, %v457_v50 }
  0xd9   :  { %v458_v55 = vld [vmem:[#allocation2 + $0x10] sm:$0xff]  ;;  %v278_v57 = vpop.f32.mrf.mxu0 }
  0xda   :  { %v546_v56 = vld [vmem:[#allocation2 + $0x9] sm:$0xff]  ;;  %427 = vst.msk [vmem:[#allocation2 + $0x20] sm:$0xff] %vm422_vm3, %v278_v57  ;;  %v695_v61 = vadd.f32 %v667_v54, %v606_v52  ;;  %v730_v62 = vmul.f32 %v4221_v53, %v458_v55  ;;  %v491_v8 = vmul.f32 %v4203_v41, %v458_v55 }
  0xdb   :  { %v579_v59 = vmul.f32 %v4208_v42, %v546_v56  ;;  %v635_v60 = vld [vmem:[#allocation2 + $0xa] sm:$0xff]  ;;  %v3428_v63 = vpop.f32.mrf.mxu0 }
  0xdc   :  { %v668_v3 = vmul.f32 %v4215_v49, %v635_v60  ;;  %v758_v12 = vadd.f32 %v730_v62, %v695_v61 }
  0xdd   :  { %v607_v0 = vadd.f32 %v579_v59, %v490_v58  ;;  %v459_v4 = vld [vmem:[#allocation2 + $0x18] sm:$0xff]  ;;  %v283_v7 = vpop.f32.mrf.mxu0  ;;  %v4274_v59 = vld [vmem:[%s5592_s2 + $0x8] ss:$0 sm:$0xff] }
  0xde   :  { %v547_v5 = vld [vmem:[#allocation2 + $0x11] sm:$0xff]  ;;  %428 = vst.msk [vmem:[#allocation2 + $0x28] sm:$0xff] %vm422_vm3, %v283_v7  ;;  %v731_v13 = vmul.f32 %v4221_v53, %v459_v4  ;;  %v492_v24 = vmul.f32 %v4203_v41, %v459_v4 }
  0xdf   :  { %v636_v6 = vld [vmem:[#allocation2 + $0x12] sm:$0xff]  ;;  %v580_v9 = vmul.f32 %v4208_v42, %v547_v5  ;;  %v696_v11 = vadd.f32 %v668_v3, %v607_v0  ;;  %v793_v14 = vmul.f32 %v4231_v1, %v547_v5  ;;  %v3431_v15 = vpop.f32.mrf.mxu0 }
  0xe0   :  { %v669_v17 = vmul.f32 %v4215_v49, %v636_v6  ;;  %v856_v19 = vmul.f32 %v4239_v10, %v636_v6 }
  0xe1   :  { %v608_v16 = vadd.f32 %v580_v9, %v491_v8  ;;  %v821_v18 = vadd.f32 %v793_v14, %v758_v12  ;;  %v460_v20 = vld [vmem:[#allocation2 + $0x20] sm:$0xff]  ;;  %v288_v23 = vpop.f32.mrf.mxu0  ;;  %v759_v28 = vadd.f32 %v731_v13, %v696_v11 }
  0xe2   :  { %v548_v21 = vld [vmem:[#allocation2 + $0x19] sm:$0xff]  ;;  %429 = vst.msk [vmem:[#allocation2 + $0x30] sm:$0xff] %vm422_vm3, %v288_v23  ;;  %v732_v30 = vmul.f32 %v4221_v53, %v460_v20  ;;  %v919_v34 = vmul.f32 %v4249_v22, %v460_v20  ;;  %v493_v43 = vmul.f32 %v4203_v41, %v460_v20 }
  0xe3   :  { %v697_v25 = vadd.f32 %v669_v17, %v608_v16  ;;  %v581_v26 = vmul.f32 %v4208_v42, %v548_v21  ;;  %v637_v27 = vld [vmem:[#allocation2 + $0x1a] sm:$0xff]  ;;  %v884_v29 = vadd.f32 %v856_v19, %v821_v18  ;;  %v794_v31 = vmul.f32 %v4231_v1, %v548_v21  ;;  %v3434_v32 = vpop.f32.mrf.mxu0 }
  0xe4   :  { %v670_v35 = vmul.f32 %v4215_v49, %v637_v27  ;;  %v857_v45 = vmul.f32 %v4239_v10, %v637_v27  ;;  %v4289_v23 = vld [vmem:[%s5593_s3] ss:$0 sm:$0xff] }
  0xe5   :  { %v609_v33 = vadd.f32 %v581_v26, %v492_v24  ;;  %v822_v36 = vadd.f32 %v794_v31, %v759_v28  ;;  %v461_v37 = vld [vmem:[#allocation2 + $0x28] sm:$0xff]  ;;  %v293_v40 = vpop.f32.mrf.mxu0  ;;  %v760_v44 = vadd.f32 %v732_v30, %v697_v25  ;;  %v947_v48 = vadd.f32 %v919_v34, %v884_v29 }
  0xe6   :  { %v549_v38 = vld [vmem:[#allocation2 + $0x21] sm:$0xff]  ;;  %430 = vst.msk [vmem:[#allocation2 + $0x38] sm:$0xff] %vm422_vm3, %v293_v40  ;;  %v733_v51 = vmul.f32 %v4221_v53, %v461_v37  ;;  %v920_v57 = vmul.f32 %v4249_v22, %v461_v37  ;;  %v494_v0 = vmul.f32 %v4203_v41, %v461_v37 }
  0xe7   :  { %v582_v46 = vmul.f32 %v4208_v42, %v549_v38  ;;  %v698_v47 = vadd.f32 %v670_v35, %v609_v33  ;;  %v638_v50 = vld [vmem:[#allocation2 + $0x22] sm:$0xff]  ;;  %v795_v52 = vmul.f32 %v4231_v1, %v549_v38  ;;  %v3437_v54 = vpop.f32.mrf.mxu0  ;;  %v885_v55 = vadd.f32 %v857_v45, %v822_v36 }
  0xe8   :  { %v982_v58 = vmul.f32 %v4261_v39, %v549_v38  ;;  %v671_v3 = vmul.f32 %v4215_v49, %v638_v50  ;;  %v858_v6 = vmul.f32 %v4239_v10, %v638_v50  ;;  %v1045_v7 = vmul.f32 %v4274_v59, %v638_v50 }
  0xe9   :  { %v610_v56 = vadd.f32 %v582_v46, %v493_v43  ;;  %v823_v60 = vadd.f32 %v795_v52, %v760_v44  ;;  %v462_v61 = vld [vmem:[#allocation2 + $0x30] sm:$0xff]  ;;  %v298_v63 = vpop.f32.mrf.mxu0  ;;  %v761_v5 = vadd.f32 %v733_v51, %v698_v47  ;;  %v948_v12 = vadd.f32 %v920_v57, %v885_v55 }
  0xea   :  { %v550_v62 = vld [vmem:[#allocation2 + $0x29] sm:$0xff]  ;;  %v1010_v4 = vadd.f32 %v982_v58, %v947_v48  ;;  %431 = vst.msk [vmem:[#allocation2 + $0x40] sm:$0xff] %vm422_vm3, %v298_v63  ;;  %v734_v14 = vmul.f32 %v4221_v53, %v462_v61  ;;  %v921_v18 = vmul.f32 %v4249_v22, %v462_v61  ;;  %v495_v24 = vmul.f32 %v4203_v41, %v462_v61 }
  0xeb   :  { %v583_v8 = vmul.f32 %v4208_v42, %v550_v62  ;;  %v3440_v9 = vpop.f32.mrf.mxu0  ;;  %v699_v11 = vadd.f32 %v671_v3, %v610_v56  ;;  %v639_v13 = vld [vmem:[#allocation2 + $0x2a] sm:$0xff]  ;;  %v796_v15 = vmul.f32 %v4231_v1, %v550_v62  ;;  %v886_v16 = vadd.f32 %v858_v6, %v823_v60 }
  0xec   :  { %v1073_v17 = vadd.f32 %v1045_v7, %v1010_v4  ;;  %v983_v19 = vmul.f32 %v4261_v39, %v550_v62  ;;  %v1046_v28 = vmul.f32 %v4274_v59, %v639_v13  ;;  %v672_v32 = vmul.f32 %v4215_v49, %v639_v13 }
  0xed   :  { %v551_v20 = vld [vmem:[#allocation2 + $0x31] sm:$0xff]  ;;  %v303_v21 = vpop.f32.mrf.mxu0  ;;  %v611_v25 = vadd.f32 %v583_v8, %v494_v0  ;;  %v824_v26 = vadd.f32 %v796_v15, %v761_v5  ;;  %v762_v33 = vadd.f32 %v734_v14, %v699_v11  ;;  %v859_v34 = vmul.f32 %v4239_v10, %v639_v13 }
  0xee   :  { %432 = vst.msk [vmem:[#allocation2 + $0x48] sm:$0xff] %vm422_vm3, %v303_v21  ;;  %v1011_v27 = vadd.f32 %v983_v19, %v948_v12  ;;  %v463_v29 = vld [vmem:[#allocation2 + $0x38] sm:$0xff]  ;;  %v584_v30 = vmul.f32 %v4208_v42, %v551_v20  ;;  %v797_v36 = vmul.f32 %v4231_v1, %v551_v20  ;;  %v4299_v37 = vadd.f32 %v4289_v23, %v1073_v17 }
  0xef   :  { %v3443_v31 = vpop.f32.mrf.mxu0  ;;  %v640_v35 = vld [vmem:[#allocation2 + $0x32] sm:$0xff]  ;;  %v949_v38 = vadd.f32 %v921_v18, %v886_v16  ;;  %v700_v46 = vadd.f32 %v672_v32, %v611_v25  ;;  %v496_v47 = vmul.f32 %v4203_v41, %v463_v29  ;;  %v735_v48 = vmul.f32 %v4221_v53, %v463_v29 }
  0xf0   :  { %5623 = vst [vmem:[#allocation8_spill] sm:$0xff] %v4299_v37  ;;  %v1074_v40 = vadd.f32 %v1046_v28, %v1011_v27  ;;  %v612_v43 = vadd.f32 %v584_v30, %v495_v24  ;;  %v984_v50 = vmul.f32 %v4261_v39, %v551_v20  ;;  %v887_v52 = vadd.f32 %v859_v34, %v824_v26 }
  0xf1   :  { %v552_v44 = vld [vmem:[#allocation2 + $0x39] sm:$0xff]  ;;  %v308_v45 = vpop.f32.mrf.mxu0  ;;  %v673_v54 = vmul.f32 %v4215_v49, %v640_v35  ;;  %v825_v55 = vadd.f32 %v797_v36, %v762_v33  ;;  %v860_v56 = vmul.f32 %v4239_v10, %v640_v35  ;;  %v922_v58 = vmul.f32 %v4249_v22, %v463_v29 }
  0xf2   :  { %v464_v51 = vld [vmem:[#allocation2 + $0x40] sm:$0xff]  ;;  %433 = vst.msk [vmem:[#allocation2 + $0x50] sm:$0xff] %vm422_vm3, %v308_v45  ;;  %v1012_v60 = vadd.f32 %v984_v50, %v949_v38  ;;  %v1047_v61 = vmul.f32 %v4274_v59, %v640_v35  ;;  %v585_v62 = vmul.f32 %v4208_v42, %v552_v44  ;;  %v4311_v63 = vadd.f32 %v4289_v23, %v1074_v40 }
  0xf3   :  { %v3446_v57 = vpop.f32.mrf.mxu0  ;;  %v701_v0 = vadd.f32 %v673_v54, %v612_v43  ;;  %v641_v3 = vld [vmem:[#allocation2 + $0x3a] sm:$0xff]  ;;  %v736_v4 = vmul.f32 %v4221_v53, %v464_v51  ;;  %v798_v5 = vmul.f32 %v4231_v1, %v552_v44  ;;  %v763_v7 = vadd.f32 %v735_v48, %v700_v46 }
  0xf4   :  { %5624 = vst [vmem:[#allocation9_spill] sm:$0xff] %v4311_v63  ;;  %v1075_v8 = vadd.f32 %v1047_v61, %v1012_v60  ;;  %v613_v9 = vadd.f32 %v585_v62, %v496_v47  ;;  %v985_v11 = vmul.f32 %v4261_v39, %v552_v44  ;;  %v4318_v13 = vmul.f32 0.1, %v4299_v37 }
  0xf5   :  { %v313_v6 = vpop.f32.mrf.mxu0  ;;  %v553_v12 = vld [vmem:[#allocation2 + $0x41] sm:$0xff]  ;;  %v888_v14 = vadd.f32 %v860_v56, %v825_v55  ;;  %v923_v15 = vmul.f32 %v4249_v22, %v464_v51  ;;  %v950_v17 = vadd.f32 %v922_v58, %v887_v52  ;;  %v497_v18 = vmul.f32 %v4203_v41, %v464_v51 }
  0xf6   :  { %434 = vst.msk [vmem:[#allocation2 + $0x58] sm:$0xff] %vm422_vm3, %v313_v6  ;;  %5625 = vst [vmem:[#allocation10_spill] sm:$0xff] %v4318_v13  ;;  %v674_v19 = vmul.f32 %v4215_v49, %v641_v3  ;;  %v826_v20 = vadd.f32 %v798_v5, %v763_v7  ;;  %v465_v21 = vld [vmem:[#allocation2 + $0x48] sm:$0xff]  ;;  %v4324_v24 = vmul.f32 0.1, %v4311_v63  ;;  %v764_v25 = vadd.f32 %v736_v4, %v701_v0 }
  0xf7   :  { %v3449_v16 = vpop.f32.mrf.mxu0  ;;  %v861_v26 = vmul.f32 %v4239_v10, %v641_v3  ;;  %v586_v27 = vmul.f32 %v4208_v42, %v553_v12  ;;  %v4329_v29 = vadd.f32 %v4289_v23, %v1075_v8  ;;  %v1013_v31 = vadd.f32 %v985_v11, %v950_v17  ;;  %v642_v32 = vld [vmem:[#allocation2 + $0x42] sm:$0xff] }
  0xf8   :  { %5626 = vst [vmem:[#allocation11_spill] sm:$0xff] %v4324_v24  ;;  %v702_v30 = vadd.f32 %v674_v19, %v613_v9  ;;  %v799_v33 = vmul.f32 %v4231_v1, %v553_v12  ;;  %v951_v35 = vadd.f32 %v923_v15, %v888_v14  ;;  %v737_v38 = vmul.f32 %v4221_v53, %v465_v21 }
  0xf9   :  { %v318_v28 = vpop.f32.mrf.mxu0  ;;  %5627 = vst [vmem:[#allocation12_spill] sm:$0xff] %v4329_v29  ;;  %v554_v34 = vld [vmem:[#allocation2 + $0x49] sm:$0xff]  ;;  %v614_v36 = vadd.f32 %v586_v27, %v497_v18  ;;  %v986_v40 = vmul.f32 %v4261_v39, %v553_v12  ;;  %v889_v44 = vadd.f32 %v861_v26, %v826_v20  ;;  %v1048_v45 = vmul.f32 %v4274_v59, %v641_v3 }
  0xfa   :  { %435 = vst.msk [vmem:[#allocation2 + $0x60] sm:$0xff] %vm422_vm3, %v318_v28  ;;  %v498_v46 = vmul.f32 %v4203_v41, %v465_v21  ;;  %v924_v47 = vmul.f32 %v4249_v22, %v465_v21  ;;  %v466_v48 = vld [vmem:[#allocation2 + $0x50] sm:$0xff]  ;;  %v675_v50 = vmul.f32 %v4215_v49, %v642_v32  ;;  %v827_v51 = vadd.f32 %v799_v33, %v764_v25 }
  0xfb   :  { %v3452_v43 = vpop.f32.mrf.mxu0  ;;  %v1014_v52 = vadd.f32 %v986_v40, %v951_v35  ;;  %v587_v54 = vmul.f32 %v4208_v42, %v554_v34  ;;  %v4341_v56 = vmul.f32 0.1, %v4329_v29  ;;  %v1076_v57 = vadd.f32 %v1048_v45, %v1013_v31  ;;  %v643_v61 = vld [vmem:[#allocation2 + $0x4a] sm:$0xff] }
  0xfc   :  { %v862_v58 = vmul.f32 %v4239_v10, %v642_v32  ;;  %v1049_v60 = vmul.f32 %v4274_v59, %v642_v32  ;;  %v703_v62 = vadd.f32 %v675_v50, %v614_v36  ;;  %v765_v0 = vadd.f32 %v737_v38, %v702_v30 }
  0xfd   :  { %v323_v55 = vpop.f32.mrf.mxu0  ;;  %5628 = vst [vmem:[#allocation13_spill] sm:$0xff] %v4341_v56  ;;  %v738_v3 = vmul.f32 %v4221_v53, %v466_v48  ;;  %v800_v4 = vmul.f32 %v4231_v1, %v554_v34  ;;  %v555_v5 = vld [vmem:[#allocation2 + $0x51] sm:$0xff]  ;;  %v952_v7 = vadd.f32 %v924_v47, %v889_v44  ;;  %v615_v9 = vadd.f32 %v587_v54, %v498_v46 }
  0xfe   :  { %436 = vst.msk [vmem:[#allocation2 + $0x68] sm:$0xff] %vm422_vm3, %v323_v55  ;;  %v1077_v8 = vadd.f32 %v1049_v60, %v1014_v52  ;;  %v987_v11 = vmul.f32 %v4261_v39, %v554_v34  ;;  %v890_v12 = vadd.f32 %v862_v58, %v827_v51  ;;  %v499_v14 = vmul.f32 %v4203_v41, %v466_v48  ;;  %v467_v21 = vld [vmem:[#allocation2 + $0x58] sm:$0xff] }
  0xff   :  { %v3455_v6 = vpop.f32.mrf.mxu0  ;;  %v676_v15 = vmul.f32 %v4215_v49, %v643_v61  ;;  %v925_v16 = vmul.f32 %v4249_v22, %v466_v48  ;;  %v828_v18 = vadd.f32 %v800_v4, %v765_v0  ;;  %v1050_v20 = vmul.f32 %v4274_v59, %v643_v61  ;;  %v644_v30 = vld [vmem:[#allocation2 + $0x52] sm:$0xff] }
 0x100   :  { %v1015_v19 = vadd.f32 %v987_v11, %v952_v7  ;;  %v588_v25 = vmul.f32 %v4208_v42, %v555_v5  ;;  %v4356_v26 = vadd.f32 %v4289_v23, %v1076_v57  ;;  %v766_v27 = vadd.f32 %v738_v3, %v703_v62 }
 0x101   :  { %v328_v17 = vpop.f32.mrf.mxu0  ;;  %v863_v28 = vmul.f32 %v4239_v10, %v643_v61  ;;  %v801_v31 = vmul.f32 %v4231_v1, %v555_v5  ;;  %v4361_v33 = vadd.f32 %v4289_v23, %v1077_v8  ;;  %v704_v34 = vadd.f32 %v676_v15, %v615_v9  ;;  %v556_v38 = vld [vmem:[#allocation2 + $0x59] sm:$0xff] }
 0x102   :  { %437 = vst.msk [vmem:[#allocation2 + $0x70] sm:$0xff] %vm422_vm3, %v328_v17  ;;  %5629 = vst [vmem:[#allocation14_spill] sm:$0xff] %v4356_v26  ;;  %v1078_v35 = vadd.f32 %v1050_v20, %v1015_v19  ;;  %v616_v36 = vadd.f32 %v588_v25, %v499_v14  ;;  %v953_v40 = vadd.f32 %v925_v16, %v890_v12  ;;  %v468_v46 = vld [vmem:[#allocation2 + $0x60] sm:$0xff]  ;;  %v4379_v12 = vmul.f32 0.1, %v4356_v26 }
 0x103   :  { %v3458_v32 = vpop.f32.mrf.mxu0  ;;  %5630 = vst [vmem:[#allocation15_spill] sm:$0xff] %v4361_v33  ;;  %v500_v43 = vmul.f32 %v4203_v41, %v467_v21  ;;  %v739_v44 = vmul.f32 %v4221_v53, %v467_v21  ;;  %v988_v45 = vmul.f32 %v4261_v39, %v555_v5  ;;  %v891_v48 = vadd.f32 %v863_v28, %v828_v18  ;;  %v645_v0 = vld [vmem:[#allocation2 + $0x5a] sm:$0xff] }
 0x104   :  { %v677_v50 = vmul.f32 %v4215_v49, %v644_v30  ;;  %v829_v51 = vadd.f32 %v801_v31, %v766_v27  ;;  %v864_v52 = vmul.f32 %v4239_v10, %v644_v30  ;;  %v926_v54 = vmul.f32 %v4249_v22, %v467_v21  ;;  %5631 = vst [vmem:[#allocation16_spill] sm:$0xff] %v4379_v12 }
 0x105   :  { %v333_v47 = vpop.f32.mrf.mxu0  ;;  %v1016_v55 = vadd.f32 %v988_v45, %v953_v40  ;;  %v1051_v57 = vmul.f32 %v4274_v59, %v644_v30  ;;  %v589_v58 = vmul.f32 %v4208_v42, %v556_v38  ;;  %v4373_v61 = vadd.f32 %v4289_v23, %v1078_v35  ;;  %v557_v9 = vld [vmem:[#allocation2 + $0x61] sm:$0xff] }
 0x106   :  { %438 = vst.msk [vmem:[#allocation2 + $0x78] sm:$0xff] %vm422_vm3, %v333_v47  ;;  %v705_v62 = vadd.f32 %v677_v50, %v616_v36  ;;  %v740_v3 = vmul.f32 %v4221_v53, %v468_v46  ;;  %v802_v4 = vmul.f32 %v4231_v1, %v556_v38  ;;  %v767_v5 = vadd.f32 %v739_v44, %v704_v34  ;;  %v469_v21 = vld [vmem:[#allocation2 + $0x68] sm:$0xff] }
 0x107   :  { %v3461_v60 = vpop.f32.mrf.mxu0  ;;  %v1079_v6 = vadd.f32 %v1051_v57, %v1016_v55  ;;  %v617_v7 = vadd.f32 %v589_v58, %v500_v43  ;;  %v989_v8 = vmul.f32 %v4261_v39, %v556_v38  ;;  %v4382_v14 = vmul.f32 0.1, %v4361_v33  ;;  %v646_v36 = vld [vmem:[#allocation2 + $0x62] sm:$0xff] }
 0x108   :  { %v892_v15 = vadd.f32 %v864_v52, %v829_v51  ;;  %v927_v16 = vmul.f32 %v4249_v22, %v468_v46  ;;  %v954_v17 = vadd.f32 %v926_v54, %v891_v48  ;;  %v501_v18 = vmul.f32 %v4203_v41, %v468_v46 }
 0x109   :  { %v338_v11 = vpop.f32.mrf.mxu0  ;;  %5632 = vst [vmem:[#allocation17_spill] sm:$0xff] %v4382_v14  ;;  %v678_v19 = vmul.f32 %v4215_v49, %v645_v0  ;;  %v830_v20 = vadd.f32 %v802_v4, %v767_v5  ;;  %v4389_v27 = vmul.f32 0.1, %v4373_v61  ;;  %v768_v28 = vadd.f32 %v740_v3, %v705_v62  ;;  %v558_v40 = vld [vmem:[#allocation2 + $0x69] sm:$0xff] }
 0x10a   :  { %439 = vst.msk [vmem:[#allocation2 + $0x80] sm:$0xff] %vm422_vm3, %v338_v11  ;;  %v865_v30 = vmul.f32 %v4239_v10, %v645_v0  ;;  %v590_v31 = vmul.f32 %v4208_v42, %v557_v9  ;;  %v4394_v32 = vadd.f32 %v4289_v23, %v1079_v6  ;;  %v1017_v35 = vadd.f32 %v989_v8, %v954_v17  ;;  %v470_v54 = vld [vmem:[#allocation2 + $0x70] sm:$0xff] }
 0x10b   :  { %v3464_v25 = vpop.f32.mrf.mxu0  ;;  %5633 = vst [vmem:[#allocation18_spill] sm:$0xff] %v4389_v27  ;;  %v706_v34 = vadd.f32 %v678_v19, %v617_v7  ;;  %v803_v38 = vmul.f32 %v4231_v1, %v557_v9  ;;  %v955_v44 = vadd.f32 %v927_v16, %v892_v15  ;;  %v741_v46 = vmul.f32 %v4221_v53, %v469_v21  ;;  %v647_v6 = vld [vmem:[#allocation2 + $0x6a] sm:$0xff] }
 0x10c   :  { %v618_v45 = vadd.f32 %v590_v31, %v501_v18  ;;  %v990_v47 = vmul.f32 %v4261_v39, %v557_v9  ;;  %v893_v48 = vadd.f32 %v865_v30, %v830_v20  ;;  %v1052_v50 = vmul.f32 %v4274_v59, %v645_v0 }
 0x10d   :  { %v343_v43 = vpop.f32.mrf.mxu0  ;;  %v502_v51 = vmul.f32 %v4203_v41, %v469_v21  ;;  %v928_v52 = vmul.f32 %v4249_v22, %v469_v21  ;;  %v679_v57 = vmul.f32 %v4215_v49, %v646_v36  ;;  %v831_v58 = vadd.f32 %v803_v38, %v768_v28  ;;  %v559_v16 = vld [vmem:[#allocation2 + $0x71] sm:$0xff] }
 0x10e   :  { %440 = vst.msk [vmem:[#allocation2 + $0x88] sm:$0xff] %vm422_vm3, %v343_v43  ;;  %v1018_v60 = vadd.f32 %v990_v47, %v955_v44  ;;  %v591_v62 = vmul.f32 %v4208_v42, %v558_v40  ;;  %v4406_v3 = vmul.f32 0.1, %v4394_v32  ;;  %v1080_v4 = vadd.f32 %v1052_v50, %v1017_v35  ;;  %v471_v38 = vld [vmem:[#allocation2 + $0x78] sm:$0xff] }
 0x10f   :  { %v3467_v55 = vpop.f32.mrf.mxu0  ;;  %v866_v5 = vmul.f32 %v4239_v10, %v646_v36  ;;  %v1053_v0 = vmul.f32 %v4274_v59, %v646_v36  ;;  %v707_v8 = vadd.f32 %v679_v57, %v618_v45  ;;  %v769_v9 = vadd.f32 %v741_v46, %v706_v34  ;;  %v648_v47 = vld [vmem:[#allocation2 + $0x72] sm:$0xff] }
 0x110   :  { %v742_v11 = vmul.f32 %v4221_v53, %v470_v54  ;;  %v804_v15 = vmul.f32 %v4231_v1, %v558_v40  ;;  %v956_v17 = vadd.f32 %v928_v52, %v893_v48  ;;  %v619_v19 = vadd.f32 %v591_v62, %v502_v51 }
 0x111   :  { %v348_v7 = vpop.f32.mrf.mxu0  ;;  %v1081_v18 = vadd.f32 %v1053_v0, %v1018_v60  ;;  %v991_v20 = vmul.f32 %v4261_v39, %v558_v40  ;;  %v894_v25 = vadd.f32 %v866_v5, %v831_v58  ;;  %v503_v28 = vmul.f32 %v4203_v41, %v470_v54  ;;  %v560_v55 = vld [vmem:[#allocation2 + $0x79] sm:$0xff] }
 0x112   :  { %441 = vst.msk [vmem:[#allocation2 + $0x90] sm:$0xff] %vm422_vm3, %v348_v7  ;;  %v680_v30 = vmul.f32 %v4215_v49, %v647_v6  ;;  %v929_v31 = vmul.f32 %v4249_v22, %v470_v54  ;;  %v832_v34 = vadd.f32 %v804_v15, %v769_v9  ;;  %v1054_v36 = vmul.f32 %v4274_v59, %v647_v6  ;;  %v472_v5 = vld [vmem:[#allocation2 + $0x80] sm:$0xff] }
 0x113   :  { %v3470_v21 = vpop.f32.mrf.mxu0  ;;  %v1019_v35 = vadd.f32 %v991_v20, %v956_v17  ;;  %v592_v43 = vmul.f32 %v4208_v42, %v559_v16  ;;  %v4420_v45 = vadd.f32 %v4289_v23, %v1080_v4  ;;  %v770_v40 = vadd.f32 %v742_v11, %v707_v8  ;;  %v649_v20 = vld [vmem:[#allocation2 + $0x7a] sm:$0xff] }
 0x114   :  { %v867_v46 = vmul.f32 %v4239_v10, %v647_v6  ;;  %v805_v48 = vmul.f32 %v4231_v1, %v559_v16  ;;  %v4426_v50 = vadd.f32 %v4289_v23, %v1081_v18  ;;  %v708_v51 = vadd.f32 %v680_v30, %v619_v19 }
 0x115   :  { %v353_v44 = vpop.f32.mrf.mxu0  ;;  %v1082_v52 = vadd.f32 %v1054_v36, %v1019_v35  ;;  %v620_v54 = vadd.f32 %v592_v43, %v503_v28  ;;  %v957_v58 = vadd.f32 %v929_v31, %v894_v25  ;;  %v504_v60 = vmul.f32 %v4203_v41, %v471_v38  ;;  %v561_v36 = vld [vmem:[#allocation2 + $0x81] sm:$0xff] }
 0x116   :  { %442 = vst.msk [vmem:[#allocation2 + $0x98] sm:$0xff] %vm422_vm3, %v353_v44  ;;  %v743_v62 = vmul.f32 %v4221_v53, %v471_v38  ;;  %v992_v4 = vmul.f32 %v4261_v39, %v559_v16  ;;  %v895_v0 = vadd.f32 %v867_v46, %v832_v34  ;;  %v681_v6 = vmul.f32 %v4215_v49, %v648_v47  ;;  %v473_v46 = vld [vmem:[#allocation2 + $0x88] sm:$0xff] }
 0x117   :  { %v3473_v57 = vpop.f32.mrf.mxu0  ;;  %v833_v7 = vadd.f32 %v805_v48, %v770_v40  ;;  %v930_v8 = vmul.f32 %v4249_v22, %v471_v38  ;;  %v868_v11 = vmul.f32 %v4239_v10, %v648_v47  ;;  %v1055_v17 = vmul.f32 %v4274_v59, %v648_v47 }
 0x118   :  { %v1020_v15 = vadd.f32 %v992_v4, %v957_v58  ;;  %v593_v18 = vmul.f32 %v4208_v42, %v560_v55  ;;  %v4438_v19 = vadd.f32 %v4289_v23, %v1082_v52  ;;  %v709_v16 = vadd.f32 %v681_v6, %v620_v54  ;;  %v650_v6 = vld [vmem:[#allocation2 + $0x82] sm:$0xff] }
 0x119   :  { %v358_v9 = vpop.f32.mrf.mxu0  ;;  %v744_v21 = vmul.f32 %v4221_v53, %v472_v5  ;;  %v806_v25 = vmul.f32 %v4231_v1, %v560_v55  ;;  %v4443_v30 = vmul.f32 0.1, %v4420_v45  ;;  %v771_v31 = vadd.f32 %v743_v62, %v708_v51 }
 0x11a   :  { %443 = vst.msk [vmem:[#allocation2 + $0xa0] sm:$0xff] %vm422_vm3, %v358_v9  ;;  %v1083_v34 = vadd.f32 %v1055_v17, %v1020_v15  ;;  %v621_v35 = vadd.f32 %v593_v18, %v504_v60  ;;  %v4446_v38 = vmul.f32 0.1, %v4426_v50  ;;  %v896_v43 = vadd.f32 %v868_v11, %v833_v7 }
 0x11b   :  { %v3476_v28 = vpop.f32.mrf.mxu0  ;;  %v958_v44 = vadd.f32 %v930_v8, %v895_v0  ;;  %v931_v40 = vmul.f32 %v4249_v22, %v472_v5  ;;  %v505_v48 = vmul.f32 %v4203_v41, %v472_v5  ;;  %v682_v52 = vmul.f32 %v4215_v49, %v649_v20  ;;  %v562_v8 = vld [vmem:[#allocation2 + $0x89] sm:$0xff] }
 0x11c   :  { %v834_v54 = vadd.f32 %v806_v25, %v771_v31  ;;  %v993_v57 = vmul.f32 %v4261_v39, %v560_v55  ;;  %v4454_v51 = vmul.f32 0.1, %v4438_v19  ;;  %v772_v58 = vadd.f32 %v744_v21, %v709_v16  ;;  %v474_v31 = vld [vmem:[#allocation2 + $0x90] sm:$0xff] }
 0x11d   :  { %v363_v47 = vpop.f32.mrf.mxu0  ;;  %v869_v60 = vmul.f32 %v4239_v10, %v649_v20  ;;  %v594_v62 = vmul.f32 %v4208_v42, %v561_v36  ;;  %v4459_v0 = vadd.f32 %v4289_v23, %v1083_v34  ;;  %v710_v5 = vadd.f32 %v682_v52, %v621_v35  ;;  %v651_v52 = vld [vmem:[#allocation2 + $0x8a] sm:$0xff] }
 0x11e   :  { %444 = vst.msk [vmem:[#allocation2 + $0xa8] sm:$0xff] %vm422_vm3, %v363_v47  ;;  %v745_v7 = vmul.f32 %v4221_v53, %v473_v46  ;;  %v807_v55 = vmul.f32 %v4231_v1, %v561_v36  ;;  %v959_v9 = vadd.f32 %v931_v40, %v896_v43  ;;  %v1056_v11 = vmul.f32 %v4274_v59, %v649_v20 }
 0x11f   :  { %v3479_v4 = vpop.f32.mrf.mxu0  ;;  %v622_v15 = vadd.f32 %v594_v62, %v505_v48  ;;  %v994_v17 = vmul.f32 %v4261_v39, %v561_v36  ;;  %v897_v16 = vadd.f32 %v869_v60, %v834_v54  ;;  %v1021_v21 = vadd.f32 %v993_v57, %v958_v44  ;;  %v563_v60 = vld [vmem:[#allocation2 + $0x91] sm:$0xff] }
 0x120   :  { %v835_v25 = vadd.f32 %v807_v55, %v772_v58  ;;  %v932_v28 = vmul.f32 %v4249_v22, %v473_v46  ;;  %v506_v34 = vmul.f32 %v4203_v41, %v473_v46  ;;  %v683_v35 = vmul.f32 %v4215_v49, %v650_v6 }
 0x121   :  { %v368_v18 = vpop.f32.mrf.mxu0  ;;  %v1022_v47 = vadd.f32 %v994_v17, %v959_v9  ;;  %v595_v43 = vmul.f32 %v4208_v42, %v562_v8  ;;  %v4471_v40 = vmul.f32 0.1, %v4459_v0  ;;  %v773_v36 = vadd.f32 %v745_v7, %v710_v5 }
 0x122   :  { %445 = vst.msk [vmem:[#allocation2 + $0xb0] sm:$0xff] %vm422_vm3, %v368_v18  ;;  %v870_v44 = vmul.f32 %v4239_v10, %v650_v6  ;;  %v1057_v48 = vmul.f32 %v4274_v59, %v650_v6  ;;  %v711_v54 = vadd.f32 %v683_v35, %v622_v15  ;;  %v746_v58 = vmul.f32 %v4221_v53, %v474_v31  ;;  %v475_v18 = vld [vmem:[#allocation2 + $0x98] sm:$0xff] }
 0x123   :  { %v3482_v20 = vpop.f32.mrf.mxu0  ;;  %v623_v57 = vadd.f32 %v595_v43, %v506_v34  ;;  %v808_v46 = vmul.f32 %v4231_v1, %v562_v8  ;;  %v1084_v4 = vadd.f32 %v1056_v11, %v1021_v21  ;;  %v960_v9 = vadd.f32 %v932_v28, %v897_v16 }
 0x124   :  { %v898_v55 = vadd.f32 %v870_v44, %v835_v25  ;;  %v995_v17 = vmul.f32 %v4261_v39, %v562_v8  ;;  %v1085_v5 = vadd.f32 %v1057_v48, %v1022_v47  ;;  %v684_v7 = vmul.f32 %v4215_v49, %v651_v52  ;;  %v652_v25 = vld [vmem:[#allocation2 + $0x92] sm:$0xff] }
 0x125   :  { %v373_v62 = vpop.f32.mrf.mxu0  ;;  %v836_v6 = vadd.f32 %v808_v46, %v773_v36  ;;  %v933_v15 = vmul.f32 %v4249_v22, %v474_v31  ;;  %v507_v35 = vmul.f32 %v4203_v41, %v474_v31  ;;  %v871_v43 = vmul.f32 %v4239_v10, %v651_v52  ;;  %v564_v31 = vld [vmem:[#allocation2 + $0x99] sm:$0xff] }
 0x126   :  { %446 = vst.msk [vmem:[#allocation2 + $0xb8] sm:$0xff] %vm422_vm3, %v373_v62  ;;  %v1023_v20 = vadd.f32 %v995_v17, %v960_v9  ;;  %v596_v11 = vmul.f32 %v4208_v42, %v563_v60  ;;  %v712_v16 = vadd.f32 %v684_v7, %v623_v57  ;;  %v774_v21 = vadd.f32 %v746_v58, %v711_v54 }
 0x127   :  { %v3485_v34 = vpop.f32.mrf.mxu0  ;;  %v1058_v8 = vmul.f32 %v4274_v59, %v651_v52  ;;  %v809_v28 = vmul.f32 %v4231_v1, %v563_v60  ;;  %v899_v36 = vadd.f32 %v871_v43, %v836_v6  ;;  %v747_v48 = vmul.f32 %v4221_v53, %v475_v18 }
 0x128   :  { %v624_v44 = vadd.f32 %v596_v11, %v507_v35  ;;  %v934_v46 = vmul.f32 %v4249_v22, %v475_v18  ;;  %v4490_v62 = vadd.f32 %v4289_v23, %v1084_v4  ;;  %v4493_v54 = vadd.f32 %v4289_v23, %v1085_v5  ;;  %v476_v34 = vld [vmem:[#allocation2 + $0xa0] sm:$0xff] }
 0x129   :  { %v378_v47 = vpop.f32.mrf.mxu0  ;;  %v961_v52 = vadd.f32 %v933_v15, %v898_v55  ;;  %v996_v57 = vmul.f32 %v4261_v39, %v563_v60  ;;  %v1086_v9 = vadd.f32 %v1058_v8, %v1023_v20  ;;  %v508_v17 = vmul.f32 %v4203_v41, %v475_v18  ;;  %v653_v60 = vld [vmem:[#allocation2 + $0x9a] sm:$0xff] }
 0x12a   :  { %447 = vst.msk [vmem:[#allocation2 + $0xc0] sm:$0xff] %vm422_vm3, %v378_v47  ;;  %v685_v7 = vmul.f32 %v4215_v49, %v652_v25  ;;  %v837_v6 = vadd.f32 %v809_v28, %v774_v21  ;;  %v872_v35 = vmul.f32 %v4239_v10, %v652_v25  ;;  %v1059_v4 = vmul.f32 %v4274_v59, %v652_v25 }
 0x12b   :  { %v3488_v58 = vpop.f32.mrf.mxu0  ;;  %v1024_v43 = vadd.f32 %v996_v57, %v961_v52  ;;  %v597_v11 = vmul.f32 %v4208_v42, %v564_v31  ;;  %v775_v55 = vadd.f32 %v747_v48, %v712_v16  ;;  %v962_v15 = vadd.f32 %v934_v46, %v899_v36  ;;  %v565_v52 = vld [vmem:[#allocation2 + $0xa1] sm:$0xff] }
 0x12c   :  { %v713_v47 = vadd.f32 %v685_v7, %v624_v44  ;;  %v810_v20 = vmul.f32 %v4231_v1, %v564_v31  ;;  %v748_v21 = vmul.f32 %v4221_v53, %v476_v34  ;;  %v997_v28 = vmul.f32 %v4261_v39, %v564_v31  ;;  %v477_v7 = vld [vmem:[#allocation2 + $0xa8] sm:$0xff] }
 0x12d   :  { %v383_v5 = vpop.f32.mrf.mxu0  ;;  %v1087_v18 = vadd.f32 %v1059_v4, %v1024_v43  ;;  %v625_v8 = vadd.f32 %v597_v11, %v508_v17  ;;  %v4506_v25 = vmul.f32 0.1, %v4490_v62  ;;  %v4509_v44 = vmul.f32 0.1, %v4493_v54  ;;  %v479_v56 = vld [vmem:[#allocation2 + $0xb8] sm:$0xff] }
 0x12e   :  { %448 = vst.msk [vmem:[#allocation2 + $0xc8] sm:$0xff] %vm422_vm3, %v383_v5  ;;  %v4512_v16 = vadd.f32 %v4289_v23, %v1086_v9  ;;  %v900_v36 = vadd.f32 %v872_v35, %v837_v6  ;;  %v686_v48 = vmul.f32 %v4215_v49, %v653_v60  ;;  %v838_v46 = vadd.f32 %v810_v20, %v775_v55  ;;  %v654_v55 = vld [vmem:[#allocation2 + $0xa2] sm:$0xff] }
 0x12f   :  { %v3491_v57 = vpop.f32.mrf.mxu0  ;;  %v935_v58 = vmul.f32 %v4249_v22, %v476_v34  ;;  %v1025_v17 = vadd.f32 %v997_v28, %v962_v15  ;;  %v509_v43 = vmul.f32 %v4203_v41, %v476_v34  ;;  %v873_v4 = vmul.f32 %v4239_v10, %v653_v60  ;;  %v566_v20 = vld [vmem:[#allocation2 + $0xa9] sm:$0xff] }
 0x130   :  { %v1060_v11 = vmul.f32 %v4274_v59, %v653_v60  ;;  %v598_v5 = vmul.f32 %v4208_v42, %v565_v52  ;;  %v4522_v9 = vadd.f32 %v4289_v23, %v1087_v18  ;;  %v714_v6 = vadd.f32 %v686_v48, %v625_v8  ;;  %v478_v8 = vld [vmem:[#allocation2 + $0xb0] sm:$0xff] }
 0x131   :  { %v388_v31 = vpop.f32.mrf.mxu0  ;;  %v776_v35 = vadd.f32 %v748_v21, %v713_v47  ;;  %v811_v15 = vmul.f32 %v4231_v1, %v565_v52  ;;  %v749_v2 = vmul.f32 %v4221_v53, %v477_v7  ;;  %v998_v60 = vmul.f32 %v4261_v39, %v565_v52 }
 0x132   :  { %449 = vst.msk [vmem:[#allocation2 + $0xd0] sm:$0xff] %vm422_vm3, %v388_v31  ;;  %v1088_v57 = vadd.f32 %v1060_v11, %v1025_v17  ;;  %v626_v34 = vadd.f32 %v598_v5, %v509_v43  ;;  %v4528_v13 = vmul.f32 0.1, %v4512_v16  ;;  %v901_v31 = vadd.f32 %v873_v4, %v838_v46  ;;  %v655_v5 = vld [vmem:[#allocation2 + $0xaa] sm:$0xff] }
 0x133   :  { %v3494_v28 = vpop.f32.mrf.mxu0  ;;  %v963_v37 = vadd.f32 %v935_v58, %v900_v36  ;;  %v510_v18 = vmul.f32 %v4203_v41, %v477_v7  ;;  %v687_v21 = vmul.f32 %v4215_v49, %v654_v55  ;;  %v839_v48 = vadd.f32 %v811_v15, %v776_v35 }
 0x134   :  { %v936_v28 = vmul.f32 %v4249_v22, %v477_v7  ;;  %v599_v17 = vmul.f32 %v4208_v42, %v566_v20  ;;  %v4536_v52 = vmul.f32 0.1, %v4522_v9  ;;  %v874_v43 = vmul.f32 %v4239_v10, %v654_v55  ;;  %v567_v42 = vld [vmem:[#allocation2 + $0xb1] sm:$0xff] }
 0x135   :  { %v393_v47 = vpop.f32.mrf.mxu0  ;;  %v1026_v46 = vadd.f32 %v998_v60, %v963_v37  ;;  %v812_v36 = vmul.f32 %v4231_v1, %v566_v20  ;;  %v4541_v4 = vadd.f32 %v4289_v23, %v1088_v57  ;;  %v715_v49 = vadd.f32 %v687_v21, %v626_v34  ;;  %v656_v21 = vld [vmem:[#allocation2 + $0xb2] sm:$0xff] }
 0x136   :  { %450 = vst.msk [vmem:[#allocation2 + $0xd8] sm:$0xff] %vm422_vm3, %v393_v47  ;;  %v777_v11 = vadd.f32 %v749_v2, %v714_v6  ;;  %v750_v7 = vmul.f32 %v4221_v53, %v478_v8  ;;  %v1061_v35 = vmul.f32 %v4274_v59, %v654_v55  ;;  %v511_v15 = vmul.f32 %v4203_v41, %v478_v8  ;;  %v4552_v53 = vld [vmem:[%s5592_s2 + $0x2] ss:$0 sm:$0xff]  ;;  %v4559_v55 = vld [vmem:[%s5592_s2 + $0x1] ss:$0 sm:$0xff] }
 0x137   :  { %v3497_v58 = vpop.f32.mrf.mxu0  ;;  %v627_v47 = vadd.f32 %v599_v17, %v510_v18  ;;  %v999_v24 = vmul.f32 %v4261_v39, %v566_v20  ;;  %v902_v60 = vadd.f32 %v874_v43, %v839_v48  ;;  %v964_v63 = vadd.f32 %v936_v28, %v901_v31  ;;  %v568_v28 = vld [vmem:[#allocation2 + $0xb9] sm:$0xff] }
 0x138   :  { %v840_v58 = vadd.f32 %v812_v36, %v777_v11  ;;  %v937_v57 = vmul.f32 %v4249_v22, %v478_v8  ;;  %v1089_v2 = vadd.f32 %v1061_v35, %v1026_v46  ;;  %v688_v41 = vmul.f32 %v4552_v53, %v655_v5  ;;  %v4579_v35 = vld [vmem:[%s5592_s2] ss:$0 sm:$0xff] }
 0x139   :  { %v398_v37 = vpop.f32.mrf.mxu0  ;;  %v875_v6 = vmul.f32 %v4239_v10, %v655_v5  ;;  %v600_v20 = vmul.f32 %v4559_v55, %v567_v42  ;;  %v778_v31 = vadd.f32 %v750_v7, %v715_v49  ;;  %v1027_v18 = vadd.f32 %v999_v24, %v964_v63  ;;  %v4567_v10 = vld [vmem:[%s5592_s2 + $0x3] ss:$0 sm:$0xff] }
 0x13a   :  { %451 = vst.msk [vmem:[#allocation2 + $0xe0] sm:$0xff] %vm422_vm3, %v398_v37  ;;  %v1062_v8 = vmul.f32 %v4274_v59, %v655_v5  ;;  %v813_v48 = vmul.f32 %v4231_v1, %v567_v42  ;;  %v716_v17 = vadd.f32 %v688_v41, %v627_v47  ;;  %v751_v46 = vmul.f32 %v4567_v10, %v479_v56  ;;  %v480_v7 = vld [vmem:[#allocation2 + $0xc0] sm:$0xff] }
 0x13b   :  { %v3500_v34 = vpop.f32.mrf.mxu0  ;;  %v628_v43 = vadd.f32 %v600_v20, %v511_v15  ;;  %v1000_v36 = vmul.f32 %v4261_v39, %v567_v42  ;;  %v903_v49 = vadd.f32 %v875_v6, %v840_v58  ;;  %v965_v63 = vadd.f32 %v937_v57, %v902_v60  ;;  %v3148_v60 = vld [vmem:[%s5595_s5 + $0xf0] sm:$0xff]  ;;  %v4593_v57 = vld [vmem:[%s5592_s2 + $0x5] ss:$0 sm:$0xff]  ;;  %v657_v41 = vld [vmem:[#allocation2 + $0xba] sm:$0xff] }
 0x13c   :  { %v841_v24 = vadd.f32 %v813_v48, %v778_v31  ;;  %v938_v5 = vmul.f32 %v4249_v22, %v479_v56  ;;  %v4574_v1 = vadd.f32 %v4289_v23, %v1089_v2  ;;  %v512_v15 = vmul.f32 %v4579_v35, %v479_v56  ;;  %v3149_v22 = vld [vmem:[%s5595_s5 + $0xf8] sm:$0xff]  ;;  %v4599_v6 = vld [vmem:[%s5592_s2 + $0x4] ss:$0 sm:$0xff] }
 0x13d   :  { %v403_v11 = vpop.f32.mrf.mxu0  ;;  %v689_v42 = vmul.f32 %v4552_v53, %v656_v21  ;;  %v601_v47 = vmul.f32 %v4559_v55, %v568_v28  ;;  %v1090_v58 = vadd.f32 %v1062_v8, %v1027_v18  ;;  %v876_v56 = vmul.f32 %v4593_v57, %v656_v21  ;;  %3607 = vmatpush3.msra.mxu0 %v3149_v22  ;;  %v569_v48 = vld [vmem:[#allocation2 + $0xc1] sm:$0xff] }
 0x13e   :  { %452 = vst.msk [vmem:[#allocation2 + $0xe8] sm:$0xff] %vm422_vm3, %v403_v11  ;;  %v1028_v2 = vadd.f32 %v1000_v36, %v965_v63  ;;  %v814_v20 = vmul.f32 %v4599_v6, %v568_v28  ;;  %v779_v31 = vadd.f32 %v751_v46, %v716_v17  ;;  %v752_v8 = vmul.f32 %v4567_v10, %v480_v7  ;;  %v3147_v36 = vld [vmem:[%s5595_s5 + $0xe8] sm:$0xff] }
 0x13f   :  { %v3503_v37 = vpop.f32.mrf.mxu0  ;;  %v717_v34 = vadd.f32 %v689_v42, %v628_v43  ;;  %v629_v18 = vadd.f32 %v601_v47, %v512_v15  ;;  %v904_v63 = vadd.f32 %v876_v56, %v841_v24  ;;  %v966_v12 = vadd.f32 %v938_v5, %v903_v49  ;;  %v4611_v43 = vld [vmem:[%s5592_s2 + $0x6] ss:$0 sm:$0xff]  ;;  %v481_v46 = vld [vmem:[#allocation2 + $0xc8] sm:$0xff] }
 0x140   :  { %v5634_v37 = vmov 0.0   ;;  %v1063_v14 = vmul.f32 %v4274_v59, %v656_v21  ;;  %v939_v17 = vmul.f32 %v4611_v43, %v480_v7  ;;  %v513_v15 = vmul.f32 %v4579_v35, %v480_v7  ;;  %v3146_v21 = vld [vmem:[%s5595_s5 + $0xe0] sm:$0xff] }
 0x141   :  { %v408_v11 = vpop.f32.mrf.mxu0  ;;  %3608 = vmatprep.subr.mxu0 %v5634_v37  ;;  %v690_v42 = vmul.f32 %v4552_v53, %v657_v41  ;;  %v842_v47 = vadd.f32 %v814_v20, %v779_v31  ;;  %v1001_v49 = vmul.f32 %v4261_v39, %v568_v28  ;;  %v4623_v5 = vadd.f32 %v4289_v23, %v1090_v58  ;;  %v658_v31 = vld [vmem:[#allocation2 + $0xc2] sm:$0xff] }
 0x142   :  { %453 = vst.msk [vmem:[#allocation2 + $0xf0] sm:$0xff] %vm422_vm3, %v408_v11  ;;  %3609 = vmatpush3.msra.mxu0 %v3148_v60  ;;  %v1091_v22 = vadd.f32 %v1063_v14, %v1028_v2  ;;  %v877_v60 = vmul.f32 %v4593_v57, %v657_v41  ;;  %v602_v7 = vmul.f32 %v4559_v55, %v569_v48  ;;  %v570_v11 = vld [vmem:[#allocation2 + $0xc9] sm:$0xff]  ;;  %v4634_v2 = vld [vmem:[%s5592_s2 + $0x7] ss:$0 sm:$0xff]  ;;  %vm1151_vm4 = vcmp.gt.f32.partialorder %v4541_v4, 0.0 }
 0x143   :  { %v3506_v24 = vpop.f32.mrf.mxu0  ;;  %3610 = vmatprep.subr.mxu0 %v5634_v37  ;;  %v718_v56 = vadd.f32 %v690_v42, %v629_v18  ;;  %v780_v20 = vadd.f32 %v752_v8, %v717_v34  ;;  %v753_v39 = vmul.f32 %v4567_v10, %v481_v46  ;;  %v815_v28 = vmul.f32 %v4599_v6, %v569_v48 }
 0x144   :  { %3611 = vmatpush3.msra.mxu0 %v3147_v36  ;;  %v967_v27 = vadd.f32 %v939_v17, %v904_v63  ;;  %v1064_v58 = vmul.f32 %v4274_v59, %v657_v41  ;;  %v630_v14 = vadd.f32 %v602_v7, %v513_v15  ;;  %v1002_v34 = vmul.f32 %v4634_v2, %v569_v48  ;;  %v482_v63 = vld [vmem:[#allocation2 + $0xd0] sm:$0xff] }
 0x145   :  { %v413_v24 = vpop.f32.mrf.mxu0  ;;  %3612 = vmatprep.subr.mxu0 %v5634_v37  ;;  %v905_v18 = vadd.f32 %v877_v60, %v842_v47  ;;  %v1029_v8 = vadd.f32 %v1001_v49, %v966_v12  ;;  %v514_v36 = vmul.f32 %v4579_v35, %v481_v46  ;;  %v940_v42 = vmul.f32 %v4611_v43, %v481_v46  ;;  %v659_v48 = vld [vmem:[#allocation2 + $0xca] sm:$0xff]  ;;  %v4651_v60 = vld [vmem:[%s5592_s2 + $0x8] ss:$0 sm:$0xff] }
 0x146   :  { %454 = vst.msk [vmem:[#allocation2 + $0xf8] sm:$0xff] %vm422_vm3, %v413_v24  ;;  %3613 = vmatpush3.msra.mxu0 %v3146_v21  ;;  %v691_v59 = vmul.f32 %v4552_v53, %v658_v31  ;;  %v843_v41 = vadd.f32 %v815_v28, %v780_v20  ;;  %v1030_v15 = vadd.f32 %v1002_v34, %v967_v27  ;;  %v571_v34 = vld [vmem:[#allocation2 + $0xd1] sm:$0xff]  ;;  %vm1152_vm5 = vcmp.gt.f32.partialorder %v4574_v1, 0.0 }
 0x147   :  { %v3509_v17 = vpop.f32.mrf.mxu0  ;;  %3614 = vmatprep.subr.mxu0 %v5634_v37  ;;  %v603_v7 = vmul.f32 %v4559_v55, %v570_v11  ;;  %v4644_v24 = vadd.f32 %v4289_v23, %v1091_v22  ;;  %v781_v47 = vadd.f32 %v753_v39, %v718_v56  ;;  %v878_v12 = vmul.f32 %v4593_v57, %v658_v31 }
 0x148   :  { %v816_v49 = vmul.f32 %v4599_v6, %v570_v11  ;;  %v719_v21 = vadd.f32 %v691_v59, %v630_v14  ;;  %v1065_v27 = vmul.f32 %v4651_v60, %v658_v31  ;;  %v754_v28 = vmul.f32 %v4567_v10, %v482_v63  ;;  %v483_v14 = vld [vmem:[#allocation2 + $0xd8] sm:$0xff] }
 0x149   :  { %v418_v46 = vpop.f32.mrf.mxu0  ;;  %v631_v20 = vadd.f32 %v603_v7, %v514_v36  ;;  %v4656_v23 = vadd.f32 %v1064_v58, %v1029_v8  ;;  %v968_v22 = vadd.f32 %v940_v42, %v905_v18  ;;  %v692_v56 = vmul.f32 %v4552_v53, %v659_v48  ;;  %v660_v8 = vld [vmem:[#allocation2 + $0xd2] sm:$0xff] }
 0x14a   :  { %455 = vst.msk [vmem:[#allocation2 + $0x100] sm:$0xff] %vm422_vm3, %v418_v46  ;;  %v844_v39 = vadd.f32 %v816_v49, %v781_v47  ;;  %v906_v59 = vadd.f32 %v878_v12, %v843_v41  ;;  %v1093_v37 = vadd.f32 %v1065_v27, %v1030_v15  ;;  %v515_v29 = vmul.f32 %v4579_v35, %v482_v63  ;;  %v572_v15 = vld [vmem:[#allocation2 + $0xd9] sm:$0xff] }
 0x14b   :  { %5635 = vst [vmem:[#allocation19_spill] sm:$0xff] %v4656_v23  ;;  %v3512_v17 = vpop.f32.mrf.mxu0  ;;  %v941_v31 = vmul.f32 %v4611_v43, %v482_v63  ;;  %v720_v36 = vadd.f32 %v692_v56, %v631_v20  ;;  %v879_v7 = vmul.f32 %v4593_v57, %v659_v48  ;;  %v1003_v26 = vmul.f32 %v4634_v2, %v570_v11  ;;  %v723_v27 = vld [vmem:[#allocation2 + $0xe0] sm:$0xff] }
 0x14c   :  { %v604_v58 = vmul.f32 %v4559_v55, %v571_v34  ;;  %v782_v18 = vadd.f32 %v754_v28, %v719_v21  ;;  %v1066_v42 = vmul.f32 %v4651_v60, %v659_v48  ;;  %v755_v47 = vmul.f32 %v4567_v10, %v483_v14  ;;  %v661_v28 = vld [vmem:[#allocation2 + $0xda] sm:$0xff] }
 0x14d   :  { %v817_v41 = vmul.f32 %v4599_v6, %v571_v34  ;;  %v907_v12 = vadd.f32 %v879_v7, %v844_v39  ;;  %v516_v49 = vmul.f32 %v4579_v35, %v483_v14  ;;  %v942_v46 = vmul.f32 %v4611_v43, %v483_v14  ;;  %v724_v14 = vld [vmem:[#allocation2 + $0xe8] sm:$0xff] }
 0x14e   :  { %v632_v63 = vadd.f32 %v604_v58, %v515_v29  ;;  %v969_v20 = vadd.f32 %v941_v31, %v906_v59  ;;  %v693_v11 = vmul.f32 %v4552_v53, %v660_v8  ;;  %v1004_v21 = vmul.f32 %v4634_v2, %v571_v34 }
 0x14f   :  { %v845_v56 = vadd.f32 %v817_v41, %v782_v18  ;;  %v1031_v48 = vadd.f32 %v1003_v26, %v968_v22  ;;  %v783_v17 = vadd.f32 %v755_v47, %v720_v36  ;;  %v880_v23 = vmul.f32 %v4593_v57, %v660_v8  ;;  %v786_v18 = vld [vmem:[#allocation2 + $0xe1] sm:$0xff] }
 0x150   :  { %v605_v33 = vmul.f32 %v4559_v55, %v572_v15  ;;  %v721_v39 = vadd.f32 %v693_v11, %v632_v63  ;;  %v1032_v7 = vadd.f32 %v1004_v21, %v969_v20  ;;  %v1067_v29 = vmul.f32 %v4651_v60, %v660_v8  ;;  %v849_v20 = vld [vmem:[#allocation2 + $0xe2] sm:$0xff] }
 0x151   :  { %v756_v35 = vmul.f32 %v4567_v10, %v723_v27  ;;  %v970_v59 = vadd.f32 %v942_v46, %v907_v12  ;;  %v694_v58 = vmul.f32 %v4552_v53, %v661_v28  ;;  %v818_v34 = vmul.f32 %v4599_v6, %v572_v15  ;;  %v787_v46 = vld [vmem:[#allocation2 + $0xe9] sm:$0xff] }
 0x152   :  { %v633_v31 = vadd.f32 %v605_v33, %v516_v49  ;;  %v908_v26 = vadd.f32 %v880_v23, %v845_v56  ;;  %v881_v22 = vmul.f32 %v4593_v57, %v661_v28  ;;  %v943_v36 = vmul.f32 %v4611_v43, %v723_v27  ;;  %v4684_v33 = vld [vmem:[%s5593_s3] ss:$0 sm:$0xff]  ;;  %v912_v56 = vld [vmem:[#allocation2 + $0xf0] sm:$0xff]  ;;  %s3905_s3 = smov [#allocation5]  }
 0x153   :  { %v1005_v55 = vmul.f32 %v4634_v2, %v572_v15  ;;  %v1095_v47 = vadd.f32 %v1067_v29, %v1032_v7  ;;  %v846_v8 = vadd.f32 %v818_v34, %v783_v17  ;;  %v757_v63 = vmul.f32 %v4567_v10, %v724_v14  ;;  %v850_v29 = vld [vmem:[#allocation2 + $0xea] sm:$0xff] }
 0x154   :  { %v722_v41 = vadd.f32 %v694_v58, %v633_v31  ;;  %v4687_v53 = vadd.f32 %v4684_v33, %v1093_v37  ;;  %v784_v23 = vadd.f32 %v756_v35, %v721_v39  ;;  %v819_v49 = vmul.f32 %v4599_v6, %v786_v18  ;;  %v975_v31 = vld [vmem:[#allocation2 + $0xf1] sm:$0xff] }
 0x155   :  { %v1033_v12 = vadd.f32 %v1005_v55, %v970_v59  ;;  %v4690_v15 = vadd.f32 %v1066_v42, %v1031_v48  ;;  %v909_v27 = vadd.f32 %v881_v22, %v846_v8  ;;  %v1068_v11 = vmul.f32 %v4651_v60, %v661_v28  ;;  %v913_v48 = vld [vmem:[#allocation2 + $0xf8] sm:$0xff] }
 0x156   :  { %v944_v10 = vmul.f32 %v4611_v43, %v724_v14  ;;  %v971_v21 = vadd.f32 %v943_v36, %v908_v26  ;;  %v847_v17 = vadd.f32 %v819_v49, %v784_v23  ;;  %v882_v7 = vmul.f32 %v4593_v57, %v849_v20  ;;  %v1038_v55 = vld [vmem:[#allocation2 + $0xf2] sm:$0xff] }
 0x157   :  { %v1006_v37 = vmul.f32 %v4634_v2, %v786_v18  ;;  %v4697_v39 = vadd.f32 %v4684_v33, %v1095_v47  ;;  %v1096_v35 = vadd.f32 %v1068_v11, %v1033_v12  ;;  %v785_v59 = vadd.f32 %v757_v63, %v722_v41  ;;  %v976_v11 = vld [vmem:[#allocation2 + $0xf9] sm:$0xff] }
 0x158   :  { %v820_v42 = vmul.f32 %v4599_v6, %v787_v46  ;;  %v910_v28 = vadd.f32 %v882_v7, %v847_v17  ;;  %v1069_v14 = vmul.f32 %v4651_v60, %v849_v20  ;;  %v945_v34 = vmul.f32 %v4611_v43, %v912_v56 }
 0x159   :  { %v1034_v58 = vadd.f32 %v1006_v37, %v971_v21  ;;  %v972_v26 = vadd.f32 %v944_v10, %v909_v27  ;;  %v883_v18 = vmul.f32 %v4593_v57, %v850_v29  ;;  %v1007_v36 = vmul.f32 %v4634_v2, %v787_v46 }
 0x15a   :  { %v848_v22 = vadd.f32 %v820_v42, %v785_v59  ;;  %v973_v8 = vadd.f32 %v945_v34, %v910_v28  ;;  %v946_v41 = vmul.f32 %v4611_v43, %v913_v48  ;;  %v1008_v6 = vmul.f32 %v4634_v2, %v975_v31  ;;  %v1039_v48 = vld [vmem:[#allocation2 + $0xfa] sm:$0xff] }
 0x15b   :  { %v1097_v47 = vadd.f32 %v1069_v14, %v1034_v58  ;;  %v4707_v63 = vadd.f32 %v4684_v33, %v1096_v35  ;;  %v1035_v20 = vadd.f32 %v1007_v36, %v972_v26  ;;  %v1070_v12 = vmul.f32 %v4651_v60, %v850_v29 }
 0x15c   :  { %v911_v23 = vadd.f32 %v883_v18, %v848_v22  ;;  %v1036_v57 = vadd.f32 %v1008_v6, %v973_v8  ;;  %v1071_v46 = vmul.f32 %v4651_v60, %v1038_v55  ;;  %vm1153_vm6 = vcmp.gt.f32.partialorder %v4623_v5, 0.0  ;;  %v5639_v22 = vld [vmem:[#allocation18_spill] sm:$0xff]  ;;  %v5640_v8 = vld [vmem:[#allocation17_spill] sm:$0xff]  ;;  %v5641_v6 = vld [vmem:[#allocation16_spill] sm:$0xff] }
 0x15d   :  { %v4711_v49 = vadd.f32 %v4684_v33, %v1097_v47  ;;  %v1098_v27 = vadd.f32 %v1070_v12, %v1035_v20  ;;  %v1179_v43 = vmul.f32 0.1, %v4541_v4  ;;  %vm1154_vm7 = vcmp.gt.f32.partialorder %v4644_v24, 0.0 }
 0x15e   :  { %v974_v10 = vadd.f32 %v946_v41, %v911_v23  ;;  %v1099_v56 = vadd.f32 %v1071_v46, %v1036_v57  ;;  %v1180_v21 = vmul.f32 0.1, %v4574_v1  ;;  %v1181_v7 = vmul.f32 0.1, %v4623_v5  ;;  %v5643_v46 = vld [vmem:[#allocation9_spill] sm:$0xff] }
 0x15f   :  { %v1133_v17 = vadd.f32 %v4684_v33, %v1098_v27  ;;  %v1182_v37 = vmul.f32 0.1, %v4644_v24  ;;  %v1207_v29 = vsel %vm1151_vm4, %v4541_v4, %v1179_v43  ;;  %vm1150_vm8 = vcmp.gt.f32.partialorder %v4522_v9, 0.0 }
 0x160   :  { %v4725_v35 = vadd.f32 %v4684_v33, %v1099_v56  ;;  %v1208_v59 = vsel %vm1152_vm5, %v4574_v1, %v1180_v21  ;;  %1235 = vst.msk [vmem:[#allocation3 + $0x78] sm:$0xff] %vm422_vm3, %v1207_v29  ;;  %v1009_v42 = vmul.f32 %v4634_v2, %v976_v11  ;;  %v1209_v28 = vsel %vm1153_vm6, %v4623_v5, %v1181_v7  ;;  %v5645_v21 = vld [vmem:[#allocation8_spill] sm:$0xff] }
 0x161   :  { %vm1161_vm9 = vcmp.gt.f32.partialorder %v1133_v17, 0.0  ;;  %v1189_v31 = vmul.f32 0.1, %v1133_v17  ;;  %v1210_v4 = vsel %vm1154_vm7, %v4644_v24, %v1182_v37  ;;  %1236 = vst.msk [vmem:[#allocation3 + $0x80] sm:$0xff] %vm422_vm3, %v1208_v59  ;;  %v4737_v58 = vmul.f32 0.1, %v4711_v49 }
 0x162   :  { %v4740_v1 = vmul.f32 0.1, %v4725_v35  ;;  %1237 = vst.msk [vmem:[#allocation3 + $0x88] sm:$0xff] %vm422_vm3, %v1209_v28  ;;  %1238 = vst.msk [vmem:[#allocation3 + $0x90] sm:$0xff] %vm422_vm3, %v1210_v4  ;;  %v1206_v2 = vsel %vm1150_vm8, %v4522_v9, %v4536_v52  ;;  %v1037_v14 = vadd.f32 %v1009_v42, %v974_v10  ;;  %vm1160_vm10 = vcmp.gt.f32.partialorder %v4711_v49, 0.0  ;;  %v5644_v10 = vld [vmem:[#allocation11_spill] sm:$0xff] }
 0x163   :  { %v1217_v5 = vsel %vm1161_vm9, %v1133_v17, %v1189_v31  ;;  %1234 = vst.msk [vmem:[#allocation3 + $0x70] sm:$0xff] %vm422_vm3, %v1206_v2  ;;  %v1072_v24 = vmul.f32 %v4651_v60, %v1039_v48  ;;  %vm1149_vm11 = vcmp.gt.f32.partialorder %v4512_v16, 0.0  ;;  %vm1148_vm12 = vcmp.gt.f32.partialorder %v4493_v54, 0.0  ;;  %v5646_v42 = vld [vmem:[#allocation10_spill] sm:$0xff] }
 0x164   :  { %1245 = vst.msk [vmem:[#allocation3 + $0xc8] sm:$0xff] %vm422_vm3, %v1217_v5  ;;  %v1205_v34 = vsel %vm1149_vm11, %v4512_v16, %v4528_v13  ;;  %v1204_v9 = vsel %vm1148_vm12, %v4493_v54, %v4509_v44  ;;  %vm1147_vm13 = vcmp.gt.f32.partialorder %v4490_v62, 0.0  ;;  %vm1146_vm14 = vcmp.gt.f32.partialorder %v4459_v0, 0.0  ;;  %v5636_v44 = vld [vmem:[#allocation15_spill] sm:$0xff]  ;;  %v5637_v16 = vld [vmem:[#allocation14_spill] sm:$0xff] }
 0x165   :  { %v1100_v52 = vadd.f32 %v1072_v24, %v1037_v14  ;;  %1233 = vst.msk [vmem:[#allocation3 + $0x68] sm:$0xff] %vm422_vm3, %v1205_v34  ;;  %1232 = vst.msk [vmem:[#allocation3 + $0x60] sm:$0xff] %vm422_vm3, %v1204_v9  ;;  %v1203_v60 = vsel %vm1147_vm13, %v4490_v62, %v4506_v25  ;;  %v1202_v26 = vsel %vm1146_vm14, %v4459_v0, %v4471_v40  ;;  %vm1145_vm15 = vcmp.gt.f32.partialorder %v4438_v19, 0.0  ;;  %v5648_v24 = vld [vmem:[#allocation19_spill] sm:$0xff] }
 0x166   :  { %1231 = vst.msk [vmem:[#allocation3 + $0x58] sm:$0xff] %vm422_vm3, %v1203_v60  ;;  %1230 = vst.msk [vmem:[#allocation3 + $0x50] sm:$0xff] %vm422_vm3, %v1202_v26  ;;  %v1201_v13 = vsel %vm1145_vm15, %v4438_v19, %v4454_v51  ;;  %vm1144_vm0 = vcmp.gt.f32.partialorder %v4426_v50, 0.0  ;;  %vm1143_vm2 = vcmp.gt.f32.partialorder %v4420_v45, 0.0  ;;  %vm1142_vm4 = vcmp.gt.f32.partialorder %v4394_v32, 0.0 }
 0x167   :  { %v1263_v54 = vld [vmem:[#allocation3 + $0x78] sm:$0xff]  ;;  %v1135_v62 = vadd.f32 %v4684_v33, %v1100_v52  ;;  %1229 = vst.msk [vmem:[#allocation3 + $0x48] sm:$0xff] %vm422_vm3, %v1201_v13  ;;  %v1200_v0 = vsel %vm1144_vm0, %v4426_v50, %v4446_v38  ;;  %v1199_v40 = vsel %vm1143_vm2, %v4420_v45, %v4443_v30  ;;  %v1198_v19 = vsel %vm1142_vm4, %v4394_v32, %v4406_v3  ;;  %v5638_v50 = vld [vmem:[#allocation12_spill] sm:$0xff] }
 0x168   :  { %v1289_v51 = vld [vmem:[#allocation3 + $0x79] sm:$0xff]  ;;  %1228 = vst.msk [vmem:[#allocation3 + $0x40] sm:$0xff] %vm422_vm3, %v1200_v0  ;;  %1227 = vst.msk [vmem:[#allocation3 + $0x38] sm:$0xff] %vm422_vm3, %v1199_v40  ;;  %vm1141_vm5 = vcmp.gt.f32.partialorder %v4373_v61, 0.0  ;;  %vm1140_vm6 = vcmp.gt.f32.partialorder %v5636_v44, 0.0  ;;  %vm1139_vm7 = vcmp.gt.f32.partialorder %v5637_v16, 0.0  ;;  %v1129_v17 = vadd.f32 %v4684_v33, %v4690_v15 }
 0x169   :  { %v1264_v25 = vld [vmem:[#allocation3 + $0x80] sm:$0xff]  ;;  %1226 = vst.msk [vmem:[#allocation3 + $0x30] sm:$0xff] %vm422_vm3, %v1198_v19  ;;  %vm1138_vm8 = vcmp.gt.f32.partialorder %v5638_v50, 0.0  ;;  %v1265_v45 = vld [vmem:[#allocation3 + $0x88] sm:$0xff]  ;;  %v1315_v38 = vmax.f32 %v1263_v54, %v1289_v51  ;;  %vm1163_vm9 = vcmp.gt.f32.partialorder %v1135_v62, 0.0  ;;  %v1197_v18 = vsel %vm1141_vm5, %v4373_v61, %v5639_v22 }
 0x16a   :  { %v1291_v30 = vld [vmem:[#allocation3 + $0x89] sm:$0xff]  ;;  %v1290_v32 = vld [vmem:[#allocation3 + $0x81] sm:$0xff]  ;;  %v1191_v3 = vmul.f32 0.1, %v1135_v62  ;;  %v1288_v55 = vld [vmem:[#allocation3 + $0x71] sm:$0xff]  ;;  %1225 = vst.msk [vmem:[#allocation3 + $0x28] sm:$0xff] %vm422_vm3, %v1197_v18  ;;  %v1196_v41 = vsel %vm1140_vm6, %v5636_v44, %v5640_v8  ;;  %v1195_v23 = vsel %vm1139_vm7, %v5637_v16, %v5641_v6  ;;  %v1216_v15 = vsel %vm1160_vm10, %v4711_v49, %v4737_v58 }
 0x16b   :  { %v4789_v36 = vmax.f32 %v1265_v45, %v1291_v30  ;;  %v4791_v47 = vmax.f32 %v1264_v25, %v1290_v32  ;;  %vm1162_vm11 = vcmp.gt.f32.partialorder %v4725_v35, 0.0  ;;  %v1262_v20 = vld [vmem:[#allocation3 + $0x70] sm:$0xff]  ;;  %1224 = vst.msk [vmem:[#allocation3 + $0x20] sm:$0xff] %vm422_vm3, %v1196_v41  ;;  %1223 = vst.msk [vmem:[#allocation3 + $0x18] sm:$0xff] %vm422_vm3, %v1195_v23  ;;  %vm1137_vm12 = vcmp.gt.f32.partialorder %v5643_v46, 0.0 }
 0x16c   :  { %v1219_v12 = vsel %vm1163_vm9, %v1135_v62, %v1191_v3  ;;  %v5642_v61 = vld [vmem:[#allocation13_spill] sm:$0xff]  ;;  %v1314_v43 = vmax.f32 %v1262_v20, %v1288_v55  ;;  %v1193_v56 = vsel %vm1137_vm12, %v5643_v46, %v5644_v10  ;;  %vm1136_vm13 = vcmp.gt.f32.partialorder %v5645_v21, 0.0  ;;  %v1286_v59 = vld [vmem:[#allocation3 + $0x61] sm:$0xff]  ;;  %1244 = vst.msk [vmem:[#allocation3 + $0xc0] sm:$0xff] %vm422_vm3, %v1216_v15 }
 0x16d   :  { %v1194_v57 = vsel %vm1138_vm8, %v5638_v50, %v5642_v61  ;;  %v1350_v27 = vmax.f32 %v1315_v38, %v4789_v36  ;;  %1247 = vst.msk [vmem:[#allocation3 + $0xd8] sm:$0xff] %vm422_vm3, %v1219_v12  ;;  %v1287_v11 = vld [vmem:[#allocation3 + $0x69] sm:$0xff]  ;;  %v1186_v7 = vmul.f32 0.1, %v4697_v39  ;;  %v1187_v37 = vmul.f32 0.1, %v4707_v63 }
 0x16e   :  { %1222 = vst.msk [vmem:[#allocation3 + $0x10] sm:$0xff] %vm422_vm3, %v1194_v57  ;;  %v1261_v29 = vld [vmem:[#allocation3 + $0x68] sm:$0xff]  ;;  %1221 = vst.msk [vmem:[#allocation3 + $0x8] sm:$0xff] %vm422_vm3, %v1193_v56  ;;  %v1192_v48 = vsel %vm1136_vm13, %v5645_v21, %v5646_v42  ;;  %v1349_v31 = vmax.f32 %v1314_v43, %v4791_v47  ;;  %v1218_v4 = vsel %vm1162_vm11, %v4725_v35, %v4740_v1  ;;  %v5647_v2 = vmov 0.0   ;;  %v1260_v14 = vld [vmem:[#allocation3 + $0x60] sm:$0xff] }
 0x16f   :  { %1407 = vmatpush1.msra.mxu1 %v1350_v27  ;;  %v1313_v28 = vmax.f32 %v1261_v29, %v1287_v11  ;;  %1220 = vst.msk [vmem:[#allocation3] sm:$0xff] %vm422_vm3, %v1192_v48  ;;  %v1285_v5 = vld [vmem:[#allocation3 + $0x59] sm:$0xff]  ;;  %1246 = vst.msk [vmem:[#allocation3 + $0xd0] sm:$0xff] %vm422_vm3, %v1218_v4  ;;  %vm1159_vm14 = vcmp.gt.f32.partialorder %v4707_v63, 0.0  ;;  %vm1158_vm15 = vcmp.gt.f32.partialorder %v4697_v39, 0.0  ;;  %v1127_v49 = vadd.f32 %v4684_v33, %v5648_v24  ;;  %v1284_v52 = vld [vmem:[#allocation3 + $0x51] sm:$0xff] }
 0x170   :  { %1408 = vmatprep.subr.mxu1 %v5647_v2  ;;  %v1312_v34 = vmax.f32 %v1260_v14, %v1286_v59  ;;  %v1184_v35 = vmul.f32 0.1, %v4687_v53  ;;  %v1185_v1 = vmul.f32 0.1, %v1129_v17  ;;  %v1259_v9 = vld [vmem:[#allocation3 + $0x58] sm:$0xff]  ;;  %v1215_v60 = vsel %vm1159_vm14, %v4707_v63, %v1187_v37  ;;  %v1258_v33 = vld [vmem:[#allocation3 + $0x50] sm:$0xff] }
 0x171   :  { %1409 = vmatpush1.msra.mxu1 %v1349_v31  ;;  %v1348_v58 = vmax.f32 %v1313_v28, %v1315_v38  ;;  %v1214_v26 = vsel %vm1158_vm15, %v4697_v39, %v1186_v7  ;;  %v1311_v54 = vmax.f32 %v1259_v9, %v1285_v5  ;;  %1243 = vst.msk [vmem:[#allocation3 + $0xb8] sm:$0xff] %vm422_vm3, %v1215_v60  ;;  %v1283_v62 = vld [vmem:[#allocation3 + $0x49] sm:$0xff]  ;;  %vm1157_vm10 = vcmp.gt.f32.partialorder %v1129_v17, 0.0  ;;  %v1282_v19 = vld [vmem:[#allocation3 + $0x41] sm:$0xff]  ;;  %v1281_v30 = vld [vmem:[#allocation3 + $0x39] sm:$0xff] }
 0x172   :  { %1410 = vmatprep.subr.mxu1 %v5647_v2  ;;  %v1347_v13 = vmax.f32 %v1312_v34, %v1314_v43  ;;  %1242 = vst.msk [vmem:[#allocation3 + $0xb0] sm:$0xff] %vm422_vm3, %v1214_v26  ;;  %vm1156_vm0 = vcmp.gt.f32.partialorder %v4687_v53, 0.0  ;;  %v1310_v40 = vmax.f32 %v1258_v33, %v1284_v52  ;;  %v1183_v63 = vmul.f32 0.1, %v1127_v49  ;;  %v1257_v39 = vld [vmem:[#allocation3 + $0x48] sm:$0xff]  ;;  %v1362_v50 = vld [vmem:[%s5594_s4 + $0x8] sm:$0xff] }
 0x173   :  { %1411 = vmatpush1.msra.mxu1 %v1348_v58  ;;  %v1346_v0 = vmax.f32 %v1311_v54, %v1313_v28  ;;  %v1213_v51 = vsel %vm1157_vm10, %v1129_v17, %v1185_v1  ;;  %v1212_v25 = vsel %vm1156_vm0, %v4687_v53, %v1184_v35  ;;  %v1309_v16 = vmax.f32 %v1257_v39, %v1283_v62  ;;  %v1256_v45 = vld [vmem:[#allocation3 + $0x40] sm:$0xff]  ;;  %v1255_v32 = vld [vmem:[#allocation3 + $0x38] sm:$0xff]  ;;  %v1254_v8 = vld [vmem:[#allocation3 + $0x30] sm:$0xff] }
 0x174   :  { %1412 = vmatprep.subr.mxu1 %v5647_v2  ;;  %v1345_v44 = vmax.f32 %v1310_v40, %v1312_v34  ;;  %1241 = vst.msk [vmem:[#allocation3 + $0xa8] sm:$0xff] %vm422_vm3, %v1213_v51  ;;  %1240 = vst.msk [vmem:[#allocation3 + $0xa0] sm:$0xff] %vm422_vm3, %v1212_v25  ;;  %vm1155_vm2 = vcmp.gt.f32.partialorder %v1127_v49, 0.0  ;;  %vm1377_vm4 = vcmask 629760   ;;  %v1308_v53 = vmax.f32 %v1256_v45, %v1282_v19  ;;  %v1280_v3 = vld [vmem:[#allocation3 + $0x31] sm:$0xff]  ;;  %v1279_v41 = vld [vmem:[#allocation3 + $0x29] sm:$0xff] }
 0x175   :  { %1413 = vmatpush1.msra.mxu1 %v1347_v13  ;;  %v1344_v38 = vmax.f32 %v1309_v16, %v1311_v54  ;;  %v1211_v22 = vsel %vm1155_vm2, %v1127_v49, %v1183_v63  ;;  %3103 = vmatprep.mubr.msk.f32.mxu1 %vm1377_vm4, %v1362_v50  ;;  %v1307_v55 = vmax.f32 %v1255_v32, %v1281_v30  ;;  %v1253_v20 = vld [vmem:[#allocation3 + $0x28] sm:$0xff]  ;;  %v1252_v46 = vld [vmem:[#allocation3 + $0x20] sm:$0xff]  ;;  %v1251_v10 = vld [vmem:[#allocation3 + $0x18] sm:$0xff]  ;;  %vm1402_vm5 = vcmask 1044480  }
 0x176   :  { %1414 = vmatprep.subr.mxu1 %v5647_v2  ;;  %v1343_v18 = vmax.f32 %v1308_v53, %v1310_v40  ;;  %1239 = vst.msk [vmem:[#allocation3 + $0x98] sm:$0xff] %vm422_vm3, %v1211_v22  ;;  %v1306_v23 = vmax.f32 %v1254_v8, %v1280_v3  ;;  %v1278_v12 = vld [vmem:[#allocation3 + $0x21] sm:$0xff]  ;;  %v1305_v57 = vmax.f32 %v1253_v20, %v1279_v41  ;;  %v1277_v27 = vld [vmem:[#allocation3 + $0x19] sm:$0xff]  ;;  %v1276_v56 = vld [vmem:[#allocation3 + $0x11] sm:$0xff]  ;;  %vm2683_vm9 = vcmask 261120  }
 0x177   :  { %1415 = vmatpush1.msra.mxu1 %v1346_v0  ;;  %v1342_v6 = vmax.f32 %v1307_v55, %v1309_v16  ;;  %v1304_v11 = vmax.f32 %v1252_v46, %v1278_v12  ;;  %v1303_v17 = vmax.f32 %v1251_v10, %v1277_v27  ;;  %v1250_v7 = vld [vmem:[#allocation3 + $0x10] sm:$0xff]  ;;  %v1328_v29 = vld [vmem:[#allocation3 + $0xd8] sm:$0x1f]  ;;  %v1273_v31 = vld [vmem:[#allocation3 + $0xc8] sm:$0x1f]  ;;  %vm2785_vm13 = vcmask 130048  }
 0x178   :  { %1416 = vmatprep.subr.mxu1 %v5647_v2  ;;  %v1341_v61 = vmax.f32 %v1306_v23, %v1308_v53  ;;  %v1340_v43 = vmax.f32 %v1305_v57, %v1307_v55  ;;  %v1275_v37 = vld [vmem:[#allocation3 + $0x9] sm:$0xff]  ;;  %v1331_v59 = vld [vmem:[#allocation3 + $0xd9] sm:$0x1f]  ;;  %v1302_v48 = vmax.f32 %v1250_v7, %v1276_v56  ;;  %v1274_v15 = vld [vmem:[#allocation3 + $0x1] sm:$0xff] }
 0x179   :  { %1417 = vmatpush1.msra.mxu1 %v1345_v44  ;;  %v1339_v21 = vmax.f32 %v1304_v11, %v1306_v23  ;;  %v1338_v42 = vmax.f32 %v1303_v17, %v1305_v57  ;;  %v1249_v28 = vld [vmem:[#allocation3 + $0x8] sm:$0xff]  ;;  %v1334_v24 = vmax.f32 %v1328_v29, %v1331_v59  ;;  %v1248_v49 = vld [vmem:[#allocation3] sm:$0xff]  ;;  %v1330_v58 = vld [vmem:[#allocation3 + $0xd1] sm:$0xff] }
 0x17a   :  { %1418 = vmatprep.subr.mxu1 %v5647_v2  ;;  %v1299_v4 = vld [vmem:[#allocation3 + $0xc9] sm:$0x1f]  ;;  %v1337_v14 = vmax.f32 %v1302_v48, %v1304_v11  ;;  %v1301_v5 = vmax.f32 %v1249_v28, %v1275_v37  ;;  %v1300_v35 = vmax.f32 %v1248_v49, %v1274_v15  ;;  %v1298_v9 = vld [vmem:[#allocation3 + $0xc1] sm:$0xff]  ;;  %v1327_v52 = vld [vmem:[#allocation3 + $0xd0] sm:$0xff] }
 0x17b   :  { %1419 = vmatpush1.msra.mxu1 %v1344_v38  ;;  %v1325_v1 = vmax.f32 %v1273_v31, %v1299_v4  ;;  %v1329_v60 = vld [vmem:[#allocation3 + $0xc9] sm:$0xff]  ;;  %v1333_v54 = vmax.f32 %v1327_v52, %v1330_v58  ;;  %v1272_v33 = vld [vmem:[#allocation3 + $0xc0] sm:$0xff]  ;;  %v1271_v39 = vld [vmem:[#allocation3 + $0xb8] sm:$0xff] }
 0x17c   :  { %1420 = vmatprep.subr.mxu1 %v5647_v2  ;;  %v1336_v34 = vmax.f32 %v1301_v5, %v1303_v17  ;;  %v1335_v26 = vmax.f32 %v1300_v35, %v1302_v48  ;;  %v1297_v62 = vld [vmem:[#allocation3 + $0xb9] sm:$0xff]  ;;  %v1326_v0 = vld [vmem:[#allocation3 + $0xc8] sm:$0xff]  ;;  %v1324_v40 = vmax.f32 %v1272_v33, %v1298_v9  ;;  %v1296_v19 = vld [vmem:[#allocation3 + $0xb1] sm:$0xff] }
 0x17d   :  { %1421 = vmatpush1.msra.mxu1 %v1343_v18  ;;  %v1360_v13 = vmax.f32 %v1325_v1, %v1334_v24  ;;  %v1332_v63 = vmax.f32 %v1326_v0, %v1329_v60  ;;  %v1323_v25 = vmax.f32 %v1271_v39, %v1297_v62  ;;  %v1270_v44 = vld [vmem:[#allocation3 + $0xb0] sm:$0xff]  ;;  %v1269_v30 = vld [vmem:[#allocation3 + $0xa8] sm:$0xff]  ;;  %v1268_v3 = vld [vmem:[#allocation3 + $0xa0] sm:$0xff] }
 0x17e   :  { %1422 = vmatprep.subr.mxu1 %v5647_v2  ;;  %v1359_v51 = vmax.f32 %v1324_v40, %v1333_v54  ;;  %v1295_v16 = vld [vmem:[#allocation3 + $0xa9] sm:$0xff]  ;;  %v1322_v45 = vmax.f32 %v1270_v44, %v1296_v19  ;;  %v1294_v38 = vld [vmem:[#allocation3 + $0xa1] sm:$0xff]  ;;  %v1293_v22 = vld [vmem:[#allocation3 + $0x99] sm:$0xff] }
 0x17f   :  { %1423 = vmatpush1.msra.mxu1 %v1342_v6  ;;  %v1358_v50 = vmax.f32 %v1323_v25, %v1332_v63  ;;  %v1321_v32 = vmax.f32 %v1269_v30, %v1295_v16  ;;  %v1320_v55 = vmax.f32 %v1268_v3, %v1294_v38  ;;  %v1267_v8 = vld [vmem:[#allocation3 + $0x98] sm:$0xff]  ;;  %v1266_v20 = vld [vmem:[#allocation3 + $0x90] sm:$0xff]  ;;  %v1366_v56 = vld [vmem:[%s5594_s4 + $0x28] sm:$0xff] }
 0x180   :  { %1424 = vmatprep.subr.mxu1 %v5647_v2  ;;  %v1357_v53 = vmax.f32 %v1322_v45, %v1324_v40  ;;  %v1292_v41 = vld [vmem:[#allocation3 + $0x91] sm:$0xff]  ;;  %v1319_v23 = vmax.f32 %v1267_v8, %v1293_v22  ;;  %v1367_v59 = vld [vmem:[%s5594_s4 + $0x30] sm:$0xff]  ;;  %v1374_v15 = vld [vmem:[%s5594_s4 + $0x68] sm:$0xff] }
 0x181   :  { %1425 = vmatpush1.msra.mxu1 %v1341_v61  ;;  %v1356_v18 = vmax.f32 %v1321_v32, %v1323_v25  ;;  %v1355_v6 = vmax.f32 %v1320_v55, %v1322_v45  ;;  %v1318_v61 = vmax.f32 %v1266_v20, %v1292_v41  ;;  %v1364_v11 = vld [vmem:[%s5594_s4 + $0x18] sm:$0xff]  ;;  %v3115_v17 = vld [vmem:[%s5595_s5 + $0x60] sm:$0xff]  ;;  %v1371_v28 = vld [vmem:[%s5594_s4 + $0x50] sm:$0xff] }
 0x182   :  { %1426 = vmatprep.subr.mxu1 %v5647_v2  ;;  %v1354_v12 = vmax.f32 %v1319_v23, %v1321_v32  ;;  %v1352_v46 = vmax.f32 %v4789_v36, %v1319_v23  ;;  %v3118_v10 = vld [vmem:[%s5595_s5 + $0x78] sm:$0xff]  ;;  %v3117_v36 = vld [vmem:[%s5595_s5 + $0x70] sm:$0xff]  ;;  %v1365_v7 = vld [vmem:[%s5594_s4 + $0x20] sm:$0xff] }
 0x183   :  { %1427 = vmatpush1.msra.mxu1 %v1340_v43  ;;  %v1353_v57 = vmax.f32 %v1318_v61, %v1320_v55  ;;  %v1351_v27 = vmax.f32 %v4791_v47, %v1318_v61  ;;  %v1361_v43 = vld [vmem:[%s5594_s4] sm:$0xff]  ;;  %v1363_v47 = vld [vmem:[%s5594_s4 + $0x10] sm:$0xff]  ;;  %v1368_v37 = vld [vmem:[%s5594_s4 + $0x38] sm:$0xff] }
 0x184   :  { %1428 = vmatprep.subr.mxu1 %v5647_v2  ;;  %v3114_v29 = vld [vmem:[%s5595_s5 + $0x58] sm:$0xff]  ;;  %v1369_v48 = vld [vmem:[%s5594_s4 + $0x40] sm:$0xff]  ;;  %v1375_v5 = vld [vmem:[%s5594_s4 + $0x70] sm:$0xff] }
 0x185   :  { %1429 = vmatpush1.msra.mxu1 %v1339_v21  ;;  %v3116_v21 = vld [vmem:[%s5595_s5 + $0x68] sm:$0xff]  ;;  %v1372_v31 = vld [vmem:[%s5594_s4 + $0x58] sm:$0xff]  ;;  %v1373_v4 = vld [vmem:[%s5594_s4 + $0x60] sm:$0xff] }
 0x186   :  { %1430 = vmatprep.subr.mxu1 %v5647_v2  ;;  %v3113_v24 = vld [vmem:[%s5595_s5 + $0x50] sm:$0xff]  ;;  %v3112_v49 = vld [vmem:[%s5595_s5 + $0x48] sm:$0xff]  ;;  %v3145_v58 = vld [vmem:[%s5595_s5 + $0xd8] sm:$0xff] }
 0x187   :  { %1431 = vmatpush1.msra.mxu1 %v1338_v42  ;;  %v1370_v42 = vld [vmem:[%s5594_s4 + $0x48] sm:$0xff]  ;;  %3615 = vmatpush3.msra.mxu0 %v3145_v58  ;;  %v3111_v35 = vld [vmem:[%s5595_s5 + $0x40] sm:$0xff]  ;;  %v1531_v62 = vld [vmem:[%s5595_s5 + $0x38] sm:$0xff] }
 0x188   :  { %1432 = vmatprep.subr.mxu1 %v5647_v2  ;;  %3616 = vmatprep.subr.mxu0 %v5647_v2  ;;  %v3143_v1 = vld [vmem:[%s5595_s5 + $0xc8] sm:$0xff]  ;;  %v3142_v9 = vld [vmem:[%s5595_s5 + $0xc0] sm:$0xff]  ;;  %v1530_v39 = vld [vmem:[%s5595_s5 + $0x30] sm:$0xff] }
 0x189   :  { %1433 = vmatpush1.msra.mxu1 %v1337_v14  ;;  %v1376_v14 = vld [vmem:[%s5594_s4 + $0x78] sm:$0xff]  ;;  %v1529_v25 = vld [vmem:[%s5595_s5 + $0x28] sm:$0xff]  ;;  %v3174_v30 = vld [vmem:[%s5595_s5 + $0x170] sm:$0xff] }
 0x18a   :  { %1434 = vmatprep.subr.mxu1 %v5647_v2  ;;  %v3175_v19 = vld [vmem:[%s5595_s5 + $0x178] sm:$0xff]  ;;  %v1528_v38 = vld [vmem:[%s5595_s5 + $0x20] sm:$0xff]  ;;  %v3173_v22 = vld [vmem:[%s5595_s5 + $0x168] sm:$0xff] }
 0x18b   :  { %1435 = vmatpush1.msra.mxu1 %v1336_v34  ;;  %v3144_v34 = vld [vmem:[%s5595_s5 + $0xd0] sm:$0xff]  ;;  %v3172_v8 = vld [vmem:[%s5595_s5 + $0x160] sm:$0xff]  ;;  %v3130_v58 = vld [vmem:[%s5595_s5 + $0x88] sm:$0xff] }
 0x18c   :  { %1436 = vmatprep.subr.mxu1 %v5647_v2  ;;  %3617 = vmatpush3.msra.mxu0 %v3144_v34  ;;  %v1526_v20 = vld [vmem:[%s5595_s5 + $0x10] sm:$0xff] }
 0x18d   :  { %1437 = vmatpush1.msra.mxu1 %v1335_v26  ;;  %3618 = vmatprep.subr.mxu0 %v5647_v2  ;;  %v3196_v34 = vld [vmem:[%s5595_s5 + $0x1d0] sm:$0xff] }
 0x18e   :  { %1450 = vmatprep.subr.mxu1 %v5647_v2  ;;  %3619 = vmatpush3.msra.mxu0 %v3143_v1  ;;  %v3195_v1 = vld [vmem:[%s5595_s5 + $0x1c8] sm:$0xff] }
 0x18f   :  { %3102 = vmatpush2.msk.msra.mxu1 %vm1402_vm5, %v1360_v13  ;;  %3620 = vmatprep.subr.mxu0 %v5647_v2 }
 0x190   :  { %1452 = vmatprep.subr.mxu1 %v5647_v2  ;;  %3621 = vmatpush3.msra.mxu0 %v3142_v9  ;;  %v3129_v9 = vld [vmem:[%s5595_s5 + $0x80] sm:$0xff] }
 0x191   :  { %1453 = vmatpush2.msra.mxu1 %v1359_v51  ;;  %3668 = vmatprep.subr.mxu0 %v5647_v2 }
 0x192   :  { %1454 = vmatprep.subr.mxu1 %v5647_v2 }
 0x193   :  { %1455 = vmatpush2.msra.mxu1 %v1358_v50 }
 0x194   :  { %1456 = vmatprep.subr.mxu1 %v5647_v2 }
 0x195   :  { %1457 = vmatpush2.msra.mxu1 %v1357_v53 }
 0x196   :  { %1458 = vmatprep.subr.mxu1 %v5647_v2 }
 0x197   :  { %1459 = vmatpush2.msra.mxu1 %v1356_v18  ;;  %v1527_v18 = vld [vmem:[%s5595_s5 + $0x18] sm:$0xff] }
 0x198   :  { %1460 = vmatprep.subr.mxu1 %v5647_v2 }
 0x199   :  { %1461 = vmatpush2.msra.mxu1 %v1355_v6 }
 0x19a   :  { %1462 = vmatprep.subr.mxu1 %v5647_v2 }
 0x19b   :  { %1463 = vmatpush2.msra.mxu1 %v1354_v12  ;;  %v3171_v12 = vld [vmem:[%s5595_s5 + $0x158] sm:$0xff] }
 0x19c   :  { %1464 = vmatprep.subr.mxu1 %v5647_v2 }
 0x19d   :  { %1465 = vmatpush2.msra.mxu1 %v1353_v57  ;;  %v1525_v57 = vld [vmem:[%s5595_s5 + $0x8] sm:$0xff] }
 0x19e   :  { %1466 = vmatprep.subr.mxu1 %v5647_v2 }
 0x19f   :  { %1467 = vmatpush2.msra.mxu1 %v1352_v46 }
 0x1a0   :  { %1468 = vmatprep.subr.mxu1 %v5647_v2 }
 0x1a1   :  { %1469 = vmatpush2.msra.mxu1 %v1351_v27  ;;  %v3170_v27 = vld [vmem:[%s5595_s5 + $0x150] sm:$0xff] }
 0x1a2   :  { %1471 = vmatmul.mubr.f32.vlgmr.msra.gmra.mxu1 %v1361_v43  ;;  %3513 = vmatprep.subr.mxu1 %v5647_v2 }
 0x1a3   :  { %3104 = vmatprep.mubr.msk.f32.mxu1 %vm1377_vm4, %v1364_v11  ;;  %3514 = vmatpush3.msra.mxu1 %v3118_v10 }
 0x1a4   :  { %3515 = vmatprep.subr.mxu1 %v5647_v2 }
 0x1a5   :  { %3516 = vmatpush3.msra.mxu1 %v3117_v36  ;;  %v3169_v36 = vld [vmem:[%s5595_s5 + $0x148] sm:$0xff] }
 0x1a6   :  { %1476 = vmatmul.mubr.f32.gmra.mxu1 %v1363_v47  ;;  %3517 = vmatprep.subr.mxu1 %v5647_v2  ;;  %v1524_v47 = vld [vmem:[%s5595_s5] sm:$0xff] }
 0x1a7   :  { %3105 = vmatprep.mubr.msk.f32.mxu1 %vm1377_vm4, %v1366_v56  ;;  %3518 = vmatpush3.msra.mxu1 %v3116_v21  ;;  %v3168_v56 = vld [vmem:[%s5595_s5 + $0x140] sm:$0xff]  ;;  %v3136_v21 = vld [vmem:[%s5595_s5 + $0xb8] sm:$0xff] }
 0x1a8   :  { %3519 = vmatprep.subr.mxu1 %v5647_v2 }
 0x1a9   :  { %3520 = vmatpush3.msra.mxu1 %v3115_v17 }
 0x1aa   :  { %1481 = vmatmul.mubr.f32.gmra.mxu1 %v1365_v7  ;;  %3521 = vmatprep.subr.mxu1 %v5647_v2 }
 0x1ab   :  { %3106 = vmatprep.mubr.msk.f32.mxu1 %vm1377_vm4, %v1368_v37  ;;  %3522 = vmatpush3.msra.mxu1 %v3114_v29  ;;  %v3135_v37 = vld [vmem:[%s5595_s5 + $0xb0] sm:$0xff]  ;;  %v3134_v29 = vld [vmem:[%s5595_s5 + $0xa8] sm:$0xff] }
 0x1ac   :  { %3523 = vmatprep.subr.mxu1 %v5647_v2 }
 0x1ad   :  { %3524 = vmatpush3.msra.mxu1 %v3113_v24  ;;  %v3197_v24 = vld [vmem:[%s5595_s5 + $0x1d8] sm:$0xff] }
 0x1ae   :  { %1486 = vmatmul.mubr.f32.gmra.mxu1 %v1367_v59  ;;  %3525 = vmatprep.subr.mxu1 %v5647_v2  ;;  %v3201_v59 = vld [vmem:[%s5595_s5 + $0x1f8] sm:$0xff] }
 0x1af   :  { %3107 = vmatprep.mubr.msk.f32.mxu1 %vm1377_vm4, %v1370_v42  ;;  %3526 = vmatpush3.msra.mxu1 %v3112_v49 }
 0x1b0   :  { %3527 = vmatprep.subr.mxu1 %v5647_v2 }
 0x1b1   :  { %3528 = vmatpush3.msra.mxu1 %v3111_v35 }
 0x1b2   :  { %1491 = vmatmul.mubr.f32.gmra.mxu1 %v1369_v48  ;;  %3544 = vmatprep.subr.mxu1 %v5647_v2  ;;  %v3200_v48 = vld [vmem:[%s5595_s5 + $0x1f0] sm:$0xff] }
 0x1b3   :  { %3108 = vmatprep.mubr.msk.f32.mxu1 %vm1377_vm4, %v1372_v31  ;;  %v3133_v31 = vld [vmem:[%s5595_s5 + $0xa0] sm:$0xff] }
 0x1b6   :  { %1496 = vmatmul.mubr.f32.gmra.mxu1 %v1371_v28 }
 0x1b7   :  { %3109 = vmatprep.mubr.msk.f32.mxu1 %vm1377_vm4, %v1374_v15  ;;  %v3199_v15 = vld [vmem:[%s5595_s5 + $0x1e8] sm:$0xff] }
 0x1ba   :  { %1501 = vmatmul.mubr.f32.gmra.mxu1 %v1373_v4  ;;  %v3132_v4 = vld [vmem:[%s5595_s5 + $0x98] sm:$0xff] }
 0x1bb   :  { %3110 = vmatprep.mubr.msk.f32.mxu1 %vm1377_vm4, %v1376_v14  ;;  %v3198_v14 = vld [vmem:[%s5595_s5 + $0x1e0] sm:$0xff] }
 0x1be   :  { %1506 = vmatmul.mubr.f32.gmra.mxu1 %v1375_v5  ;;  %v3131_v5 = vld [vmem:[%s5595_s5 + $0x90] sm:$0xff] }
 0x1bf   :  { %3529 = vmatprep.mubr.msk.f32.mxu1 %vm3903_vm1, %v5647_v2 }
 0x262   :  { %v1472_v52 = vpop.f32.mrf.mxu1 }
 0x263   :  { %1511 = vst.msk [vmem:[#allocation4] sm:$0xff] %vm422_vm3, %v1472_v52  ;;  %v3194_v52 = vld [vmem:[%s5595_s5 + $0x1c0] sm:$0xff] }
 0x264   :  { %v1474_v60 = vpop.f32.mrf.mxu1 }
 0x265   :  { %v3162_v60 = vld [vmem:[%s5595_s5 + $0x138] sm:$0xff] }
 0x266   :  { %v1477_v26 = vpop.f32.mrf.mxu1 }
 0x267   :  { %1512 = vst.msk [vmem:[#allocation4 + $0x8] sm:$0xff] %vm422_vm3, %v1477_v26 }
 0x268   :  { %v1479_v13 = vpop.f32.mrf.mxu1 }
 0x269   :  { %v3161_v13 = vld [vmem:[%s5595_s5 + $0x130] sm:$0xff] }
 0x26a   :  { %v1482_v54 = vpop.f32.mrf.mxu1  ;;  %v1519_v17 = vld [vmem:[#allocation4] sm:$0xff] }
 0x26b   :  { %1513 = vst.msk [vmem:[#allocation4 + $0x10] sm:$0xff] %vm422_vm3, %v1482_v54  ;;  %v3160_v54 = vld [vmem:[%s5595_s5 + $0x128] sm:$0xff] }
 0x26c   :  { %v1484_v33 = vpop.f32.mrf.mxu1 }
 0x26d   :  { %v3159_v33 = vld [vmem:[%s5595_s5 + $0x120] sm:$0xff] }
 0x26e   :  { %v1487_v0 = vpop.f32.mrf.mxu1  ;;  %v1532_v40 = vld [vmem:[#allocation4 + $0x1] sm:$0xff] }
 0x26f   :  { %v4985_v63 = vld [vmem:[#allocation4 + $0x8] sm:$0xff]  ;;  %1514 = vst.msk [vmem:[#allocation4 + $0x18] sm:$0xff] %vm422_vm3, %v1487_v0  ;;  %3530 = vmatmul.mubr.msk.f32.vlgmr.msra.gmra.mxu1 %vm422_vm3, %v1532_v40  ;;  %v2655_v0 = vld [vmem:[%s5597_s7] sm:$0xff] }
 0x270   :  { %3623 = vmatmul.mubr.msk.f32.vlgmr.msra.gmra.mxu0 %vm422_vm3, %v4985_v63  ;;  %3545 = vmatpush3.msra.mxu1 %v1531_v62  ;;  %v1489_v51 = vpop.f32.mrf.mxu1  ;;  %v1756_v26 = vld [vmem:[#allocation4 + $0x2] sm:$0xff]  ;;  %v3158_v62 = vld [vmem:[%s5595_s5 + $0x118] sm:$0xff] }
 0x271   :  { %3532 = vmatprep.mubr.msk.f32.mxu1 %vm3903_vm1, %v5647_v2  ;;  %3546 = vmatprep.subr.mxu1 %v5647_v2  ;;  %v3157_v40 = vld [vmem:[%s5595_s5 + $0x110] sm:$0xff]  ;;  %v3155_v51 = vld [vmem:[%s5595_s5 + $0x100] sm:$0xff] }
 0x272   :  { %3625 = vmatprep.mubr.msk.f32.mxu0 %vm3903_vm1, %v5647_v2  ;;  %v1492_v44 = vpop.f32.mrf.mxu1  ;;  %3547 = vmatpush3.msra.mxu1 %v1530_v39  ;;  %v5005_v16 = vld [vmem:[#allocation4 + $0x9] sm:$0xff] }
 0x273   :  { %v5007_v50 = vld [vmem:[#allocation4 + $0x10] sm:$0xff]  ;;  %3669 = vmatpush3.msra.mxu0 %v3175_v19  ;;  %1515 = vst.msk [vmem:[#allocation4 + $0x20] sm:$0xff] %vm422_vm3, %v1492_v44  ;;  %3533 = vmatmul.mubr.msk.f32.gmra.mxu1 %vm422_vm3, %v5005_v16  ;;  %v3156_v19 = vld [vmem:[%s5595_s5 + $0x108] sm:$0xff] }
 0x274   :  { %3548 = vmatprep.subr.mxu1 %v5647_v2  ;;  %3626 = vmatmul.mubr.msk.f32.gmra.mxu0 %vm422_vm3, %v5007_v50  ;;  %v1494_v45 = vpop.f32.mrf.mxu1  ;;  %v5111_v7 = vld [vmem:[#allocation4 + $0xa] sm:$0xff]  ;;  %v2656_v44 = vld [vmem:[%s5597_s7 + $0x8] sm:$0xff] }
 0x275   :  { %3549 = vmatpush3.msra.mxu1 %v1529_v25  ;;  %3670 = vmatprep.subr.mxu0 %v5647_v2  ;;  %v2657_v45 = vld [vmem:[%s5597_s7 + $0x10] sm:$0xff] }
 0x276   :  { %3535 = vmatprep.mubr.msk.f32.mxu1 %vm3903_vm1, %v5647_v2  ;;  %v1497_v53 = vpop.f32.mrf.mxu1  ;;  %3550 = vmatprep.subr.mxu1 %v5647_v2  ;;  %v5027_v32 = vld [vmem:[#allocation4 + $0x11] sm:$0xff] }
 0x277   :  { %3628 = vmatprep.mubr.msk.f32.mxu0 %vm3903_vm1, %v5647_v2  ;;  %v5029_v3 = vld [vmem:[#allocation4 + $0x18] sm:$0xff]  ;;  %1516 = vst.msk [vmem:[#allocation4 + $0x28] sm:$0xff] %vm422_vm3, %v1497_v53  ;;  %3671 = vmatpush3.msra.mxu0 %v3174_v30  ;;  %v3188_v30 = vld [vmem:[%s5595_s5 + $0x1b8] sm:$0xff]  ;;  %v3186_v53 = vld [vmem:[%s5595_s5 + $0x1a8] sm:$0xff] }
 0x278   :  { %3536 = vmatmul.mubr.msk.f32.gmra.mxu1 %vm422_vm3, %v5027_v32  ;;  %3629 = vmatmul.mubr.msk.f32.gmra.mxu0 %vm422_vm3, %v5029_v3  ;;  %v1499_v55 = vpop.f32.mrf.mxu1  ;;  %v5132_v42 = vld [vmem:[#allocation4 + $0x12] sm:$0xff] }
 0x279   :  { %3551 = vmatpush3.msra.mxu1 %v1528_v38  ;;  %3672 = vmatprep.subr.mxu0 %v5647_v2  ;;  %v3187_v38 = vld [vmem:[%s5595_s5 + $0x1b0] sm:$0xff]  ;;  %v3182_v55 = vld [vmem:[%s5595_s5 + $0x188] sm:$0xff] }
 0x27a   :  { %3552 = vmatprep.subr.mxu1 %v5647_v2  ;;  %3673 = vmatpush3.msra.mxu0 %v3173_v22  ;;  %v1502_v41 = vpop.f32.mrf.mxu1  ;;  %v5047_v6 = vld [vmem:[#allocation4 + $0x19] sm:$0xff] }
 0x27b   :  { %3553 = vmatpush3.msra.mxu1 %v1527_v18  ;;  %3674 = vmatprep.subr.mxu0 %v5647_v2  ;;  %1517 = vst.msk [vmem:[#allocation4 + $0x30] sm:$0xff] %vm422_vm3, %v1502_v41  ;;  %v5053_v23 = vld [vmem:[#allocation4 + $0x20] sm:$0xff]  ;;  %v3185_v22 = vld [vmem:[%s5595_s5 + $0x1a0] sm:$0xff]  ;;  %v3184_v18 = vld [vmem:[%s5595_s5 + $0x198] sm:$0xff] }
 0x27c   :  { %3538 = vmatprep.mubr.msk.f32.mxu1 %vm3903_vm1, %v5647_v2  ;;  %3631 = vmatprep.mubr.msk.f32.mxu0 %vm3903_vm1, %v5647_v2  ;;  %v1504_v61 = vpop.f32.mrf.mxu1  ;;  %v5151_v28 = vld [vmem:[#allocation4 + $0x1a] sm:$0xff]  ;;  %v3214_v41 = vld [vmem:[%s5595_s5 + $0x238] sm:$0xff] }
 0x27d   :  { %3675 = vmatpush3.msra.mxu0 %v3172_v8  ;;  %3539 = vmatmul.mubr.msk.f32.gmra.mxu1 %vm422_vm3, %v5047_v6  ;;  %v3181_v8 = vld [vmem:[%s5595_s5 + $0x180] sm:$0xff]  ;;  %v3208_v61 = vld [vmem:[%s5595_s5 + $0x208] sm:$0xff] }
 0x27e   :  { %3554 = vmatprep.subr.mxu1 %v5647_v2  ;;  %3632 = vmatmul.mubr.msk.f32.gmra.mxu0 %vm422_vm3, %v5053_v23  ;;  %v1507_v46 = vpop.f32.mrf.mxu1  ;;  %v5078_v43 = vld [vmem:[#allocation4 + $0x21] sm:$0xff] }
 0x27f   :  { %3676 = vmatprep.subr.mxu0 %v5647_v2  ;;  %3555 = vmatpush3.msra.mxu1 %v1526_v20  ;;  %1518 = vst.msk [vmem:[#allocation4 + $0x38] sm:$0xff] %vm422_vm3, %v1507_v46  ;;  %v5080_v11 = vld [vmem:[#allocation4 + $0x28] sm:$0xff]  ;;  %v3212_v20 = vld [vmem:[%s5595_s5 + $0x228] sm:$0xff] }
 0x280   :  { %3677 = vmatpush3.msra.mxu0 %v3171_v12  ;;  %3556 = vmatprep.subr.mxu1 %v5647_v2  ;;  %v1509_v10 = vpop.f32.mrf.mxu1  ;;  %v5180_v49 = vld [vmem:[#allocation4 + $0x22] sm:$0xff]  ;;  %v3210_v12 = vld [vmem:[%s5595_s5 + $0x218] sm:$0xff] }
 0x281   :  { %3678 = vmatprep.subr.mxu0 %v5647_v2  ;;  %3541 = vmatprep.mubr.msk.f32.mxu1 %vm3903_vm1, %v5647_v2 }
 0x282   :  { %3557 = vmatpush3.msra.mxu1 %v1525_v57  ;;  %3634 = vmatprep.mubr.msk.f32.mxu0 %vm3903_vm1, %v5647_v2  ;;  %v5197_v35 = vld [vmem:[#allocation4 + $0x2a] sm:$0xff] }
 0x283   :  { %3679 = vmatpush3.msra.mxu0 %v3170_v27  ;;  %3542 = vmatmul.mubr.msk.f32.gmra.mxu1 %vm422_vm3, %v5078_v43  ;;  %v2379_v39 = vld [vmem:[#allocation4 + $0x29] sm:$0xff] }
 0x284   :  { %3635 = vmatmul.mubr.msk.f32.gmra.mxu0 %vm422_vm3, %v5080_v11  ;;  %3680 = vmatprep.subr.mxu0 %v5647_v2  ;;  %v2256_v57 = vld [vmem:[#allocation4 + $0x30] sm:$0xff] }
 0x285   :  { %3558 = vmatprep.subr.mxu1 %v5647_v2  ;;  %3681 = vmatpush3.msra.mxu0 %v3169_v36 }
 0x286   :  { %3559 = vmatpush3.msra.mxu1 %v1524_v47  ;;  %3682 = vmatprep.subr.mxu0 %v5647_v2  ;;  %v2380_v25 = vld [vmem:[#allocation4 + $0x31] sm:$0xff] }
 0x287   :  { %3560 = vmatprep.mubr.msk.f32.mxu1 %vm3903_vm1, %v5647_v2  ;;  %3575 = vmatprep.subr.mxu1 %v5647_v2  ;;  %v2504_v46 = vld [vmem:[#allocation4 + $0x32] sm:$0xff] }
 0x288   :  { %3683 = vmatpush3.msra.mxu0 %v3168_v56  ;;  %3684 = vmatprep.mubr.msk.f32.mxu0 %vm3903_vm1, %v5647_v2 }
 0x289   :  { %3561 = vmatmul.mubr.msk.f32.vlgmr.msra.gmra.mxu1 %vm422_vm3, %v1519_v17  ;;  %3685 = vmatmul.mubr.msk.f32.vlgmr.msra.gmra.mxu0 %vm422_vm3, %v5111_v7 }
 0x28a   :  { %3576 = vmatpush3.msra.mxu1 %v3136_v21  ;;  %3563 = vmatprep.mubr.msk.f32.mxu1 %vm3903_vm1, %v5647_v2 }
 0x28b   :  { %3577 = vmatprep.subr.mxu1 %v5647_v2  ;;  %3687 = vmatprep.mubr.msk.f32.mxu0 %vm3903_vm1, %v5647_v2 }
 0x28c   :  { %3578 = vmatpush3.msra.mxu1 %v3135_v37  ;;  %3730 = vmatprep.subr.mxu0 %v5647_v2 }
 0x28d   :  { %3564 = vmatmul.mubr.msk.f32.gmra.mxu1 %vm422_vm3, %v4985_v63  ;;  %3579 = vmatprep.subr.mxu1 %v5647_v2  ;;  %v3904_v63 = vmov 0  }
 0x28e   :  { %3688 = vmatmul.mubr.msk.f32.gmra.mxu0 %vm422_vm3, %v5132_v42  ;;  %3580 = vmatpush3.msra.mxu1 %v3134_v29 }
 0x28f   :  { %3731 = vmatpush3.msra.mxu0 %v3201_v59  ;;  %3566 = vmatprep.mubr.msk.f32.mxu1 %vm3903_vm1, %v5647_v2 }
 0x290   :  { %3732 = vmatprep.subr.mxu0 %v5647_v2  ;;  %3581 = vmatprep.subr.mxu1 %v5647_v2 }
 0x291   :  { %3690 = vmatprep.mubr.msk.f32.mxu0 %vm3903_vm1, %v5647_v2  ;;  %3733 = vmatpush3.msra.mxu0 %v3200_v48 }
 0x292   :  { %3567 = vmatmul.mubr.msk.f32.gmra.mxu1 %vm422_vm3, %v5007_v50  ;;  %3691 = vmatmul.mubr.msk.f32.gmra.mxu0 %vm422_vm3, %v5151_v28 }
 0x293   :  { %3582 = vmatpush3.msra.mxu1 %v3133_v31  ;;  %3734 = vmatprep.subr.mxu0 %v5647_v2 }
 0x294   :  { %3583 = vmatprep.subr.mxu1 %v5647_v2  ;;  %3735 = vmatpush3.msra.mxu0 %v3199_v15 }
 0x295   :  { %3584 = vmatpush3.msra.mxu1 %v3132_v4  ;;  %3736 = vmatprep.subr.mxu0 %v5647_v2 }
 0x296   :  { %3569 = vmatprep.mubr.msk.f32.mxu1 %vm3903_vm1, %v5647_v2  ;;  %3693 = vmatprep.mubr.msk.f32.mxu0 %vm3903_vm1, %v5647_v2 }
 0x297   :  { %3737 = vmatpush3.msra.mxu0 %v3198_v14  ;;  %3570 = vmatmul.mubr.msk.f32.gmra.mxu1 %vm422_vm3, %v5029_v3 }
 0x298   :  { %3585 = vmatprep.subr.mxu1 %v5647_v2  ;;  %3694 = vmatmul.mubr.msk.f32.gmra.mxu0 %vm422_vm3, %v5180_v49 }
 0x299   :  { %3738 = vmatprep.subr.mxu0 %v5647_v2  ;;  %3586 = vmatpush3.msra.mxu1 %v3131_v5 }
 0x29a   :  { %3739 = vmatpush3.msra.mxu0 %v3197_v24  ;;  %3587 = vmatprep.subr.mxu1 %v5647_v2 }
 0x29b   :  { %3740 = vmatprep.subr.mxu0 %v5647_v2  ;;  %3572 = vmatprep.mubr.msk.f32.mxu1 %vm3903_vm1, %v5647_v2 }
 0x29c   :  { %3588 = vmatpush3.msra.mxu1 %v3130_v58  ;;  %3696 = vmatprep.mubr.msk.f32.mxu0 %vm3903_vm1, %v5647_v2  ;;  %v2702_v58 = vld [vmem:[%s5599_s9 + $0x18] sm:$0xff] }
 0x29d   :  { %3741 = vmatpush3.msra.mxu0 %v3196_v34  ;;  %3573 = vmatmul.mubr.msk.f32.gmra.mxu1 %vm422_vm3, %v5053_v23  ;;  %v2701_v34 = vld [vmem:[%s5599_s9 + $0x10] sm:$0xff] }
 0x29e   :  { %3697 = vmatmul.mubr.msk.f32.gmra.mxu0 %vm422_vm3, %v5197_v35  ;;  %3742 = vmatprep.subr.mxu0 %v5647_v2 }
 0x29f   :  { %3589 = vmatprep.subr.mxu1 %v5647_v2  ;;  %3743 = vmatpush3.msra.mxu0 %v3195_v1 }
 0x2a0   :  { %3590 = vmatpush3.msra.mxu1 %v3129_v9  ;;  %3744 = vmatprep.subr.mxu0 %v5647_v2  ;;  %v2700_v9 = vld [vmem:[%s5599_s9 + $0x8] sm:$0xff] }
 0x2a1   :  { %3591 = vmatprep.mubr.msk.f32.mxu1 %vm3903_vm1, %v5647_v2  ;;  %3637 = vmatprep.subr.mxu1 %v5647_v2 }
 0x2a2   :  { %3745 = vmatpush3.msra.mxu0 %v3194_v52  ;;  %3746 = vmatprep.mubr.msk.f32.mxu0 %vm3903_vm1, %v5647_v2 }
 0x2a3   :  { %3592 = vmatmul.mubr.msk.f32.vlgmr.msra.gmra.mxu1 %vm422_vm3, %v1756_v26  ;;  %3747 = vmatmul.mubr.msk.f32.vlgmr.msra.gmra.mxu0 %vm422_vm3, %v5027_v32 }
 0x2a4   :  { %3638 = vmatpush3.msra.mxu1 %v3162_v60  ;;  %3594 = vmatprep.mubr.msk.f32.mxu1 %vm3903_vm1, %v5647_v2 }
 0x2a5   :  { %3639 = vmatprep.subr.mxu1 %v5647_v2  ;;  %3749 = vmatprep.mubr.msk.f32.mxu0 %vm3903_vm1, %v5647_v2 }
 0x2a6   :  { %3640 = vmatpush3.msra.mxu1 %v3161_v13  ;;  %3868 = vset.pattern.permute.xlu0 %v3904_v63  ;;  %v2699_v13 = vld [vmem:[%s5599_s9] sm:$0xff] }
 0x2a7   :  { %3595 = vmatmul.mubr.msk.f32.gmra.mxu1 %vm422_vm3, %v5111_v7  ;;  %3641 = vmatprep.subr.mxu1 %v5647_v2 }
 0x2a8   :  { %3750 = vmatmul.mubr.msk.f32.gmra.mxu0 %vm422_vm3, %v5047_v6  ;;  %3642 = vmatpush3.msra.mxu1 %v3160_v54 }
 0x2a9   :  { %3597 = vmatprep.mubr.msk.f32.mxu1 %vm3903_vm1, %v5647_v2  ;;  %3643 = vmatprep.subr.mxu1 %v5647_v2 }
 0x2aa   :  { %3752 = vmatprep.mubr.msk.f32.mxu0 %vm3903_vm1, %v5647_v2  ;;  %3644 = vmatpush3.msra.mxu1 %v3159_v33 }
 0x2ab   :  { %3598 = vmatmul.mubr.msk.f32.gmra.mxu1 %vm422_vm3, %v5132_v42  ;;  %3645 = vmatprep.subr.mxu1 %v5647_v2 }
 0x2ac   :  { %3753 = vmatmul.mubr.msk.f32.gmra.mxu0 %vm422_vm3, %v5078_v43  ;;  %3646 = vmatpush3.msra.mxu1 %v3158_v62 }
 0x2ad   :  { %3600 = vmatprep.mubr.msk.f32.mxu1 %vm3903_vm1, %v5647_v2  ;;  %3755 = vmatprep.mubr.msk.f32.mxu0 %vm3903_vm1, %v5647_v2 }
 0x2ae   :  { %3647 = vmatprep.subr.mxu1 %v5647_v2  ;;  %2661 = vperm.xlu0 %3868, %v2655_v0  }
 0x2af   :  { %3601 = vmatmul.mubr.msk.f32.gmra.mxu1 %vm422_vm3, %v5151_v28  ;;  %3869 = vset.pattern.permute.xlu1 %v3904_v63 }
 0x2b0   :  { %3756 = vmatmul.mubr.msk.f32.gmra.mxu0 %vm422_vm3, %v2379_v39  ;;  %3648 = vmatpush3.msra.mxu1 %v3157_v40 }
 0x2b1   :  { %3649 = vmatprep.subr.mxu1 %v5647_v2  ;;  %3603 = vmatprep.mubr.msk.f32.mxu1 %vm3903_vm1, %v5647_v2 }
 0x2b2   :  { %3650 = vmatpush3.msra.mxu1 %v3156_v19  ;;  %3758 = vmatprep.mubr.msk.f32.mxu0 %vm3903_vm1, %v5647_v2 }
 0x2b3   :  { %3604 = vmatmul.mubr.msk.f32.gmra.mxu1 %vm422_vm3, %v5180_v49  ;;  %3651 = vmatprep.subr.mxu1 %v5647_v2 }
 0x2b4   :  { %3652 = vmatpush3.msra.mxu1 %v3155_v51  ;;  %3653 = vmatprep.mubr.msk.f32.mxu1 %vm3903_vm1, %v5647_v2 }
 0x2b5   :  { %3699 = vmatprep.subr.mxu1 %v5647_v2  ;;  %3759 = vmatmul.mubr.msk.f32.gmra.mxu0 %vm422_vm3, %v2380_v25 }
 0x2b6   :  { %2666 = vperm.xlu0 %3868, %v2656_v44   ;;  %2671 = vperm.xlu1 %3869, %v2657_v45  }
 0x2b7   :  { %3654 = vmatmul.mubr.msk.f32.vlgmr.msra.gmra.mxu1 %vm422_vm3, %v5005_v16  ;;  %3792 = vmatprep.subr.mxu0 %v5647_v2  ;;  %v2658_v16 = vld [vmem:[%s5597_s7 + $0x18] sm:$0xff] }
 0x2b8   :  { %3700 = vmatpush3.msra.mxu1 %v3188_v30  ;;  %3656 = vmatprep.mubr.msk.f32.mxu1 %vm3903_vm1, %v5647_v2 }
 0x2b9   :  { %3701 = vmatprep.subr.mxu1 %v5647_v2  ;;  %3800 = vmatprep.mubr.msk.f32.mxu0 %vm3903_vm1, %v5647_v2 }
 0x2ba   :  { %3702 = vmatpush3.msra.mxu1 %v3187_v38  ;;  %2676 = vperm.xlu1 %3869, %v2658_v16  }
 0x2bb   :  { %3657 = vmatmul.mubr.msk.f32.gmra.mxu1 %vm422_vm3, %v5027_v32  ;;  %3703 = vmatprep.subr.mxu1 %v5647_v2  ;;  %v3183_v32 = vld [vmem:[%s5595_s5 + $0x190] sm:$0xff] }
 0x2bc   :  { %3704 = vmatpush3.msra.mxu1 %v3186_v53  ;;  %3659 = vmatprep.mubr.msk.f32.mxu1 %vm3903_vm1, %v5647_v2 }
 0x2bd   :  { %3705 = vmatprep.subr.mxu1 %v5647_v2  ;;  %3793 = vmatpush3.msra.mxu0 %v2702_v58 }
 0x2be   :  { %3706 = vmatpush3.msra.mxu1 %v3185_v22  ;;  %3794 = vmatprep.subr.mxu0 %v5647_v2 }
 0x2bf   :  { %3660 = vmatmul.mubr.msk.f32.gmra.mxu1 %vm422_vm3, %v5047_v6  ;;  %3707 = vmatprep.subr.mxu1 %v5647_v2  ;;  %v3213_v6 = vld [vmem:[%s5595_s5 + $0x230] sm:$0xff] }
 0x2c0   :  { %3708 = vmatpush3.msra.mxu1 %v3184_v18  ;;  %3662 = vmatprep.mubr.msk.f32.mxu1 %vm3903_vm1, %v5647_v2 }
 0x2c1   :  { %3709 = vmatprep.subr.mxu1 %v5647_v2  ;;  %3795 = vmatpush3.msra.mxu0 %v2701_v34 }
 0x2c2   :  { %3710 = vmatpush3.msra.mxu1 %v3183_v32  ;;  %3796 = vmatprep.subr.mxu0 %v5647_v2 }
 0x2c3   :  { %3663 = vmatmul.mubr.msk.f32.gmra.mxu1 %vm422_vm3, %v5078_v43  ;;  %3711 = vmatprep.subr.mxu1 %v5647_v2 }
 0x2c4   :  { %3665 = vmatprep.mubr.msk.f32.mxu1 %vm3903_vm1, %v5647_v2  ;;  %3712 = vmatpush3.msra.mxu1 %v3182_v55 }
 0x2c5   :  { %3713 = vmatprep.subr.mxu1 %v5647_v2  ;;  %3797 = vmatpush3.msra.mxu0 %v2700_v9 }
 0x2c6   :  { %3714 = vmatpush3.msra.mxu1 %v3181_v8  ;;  %3798 = vmatprep.subr.mxu0 %v5647_v2 }
 0x2c7   :  { %3666 = vmatmul.mubr.msk.f32.gmra.mxu1 %vm422_vm3, %v2379_v39  ;;  %3761 = vmatprep.subr.mxu1 %v5647_v2 }
 0x2c8   :  { %3715 = vmatprep.mubr.msk.f32.mxu1 %vm3903_vm1, %v5647_v2  ;;  %3799 = vmatpush3.msra.mxu0 %v2699_v13 }
 0x2c9   :  { %3803 = vmatprep.subr.mxu0 %v5647_v2 }
 0x2cb   :  { %3716 = vmatmul.mubr.msk.f32.vlgmr.msra.gmra.mxu1 %vm422_vm3, %v5007_v50  ;;  %v3211_v50 = vld [vmem:[%s5595_s5 + $0x220] sm:$0xff] }
 0x2cc   :  { %3762 = vmatpush3.msra.mxu1 %v3214_v41  ;;  %3718 = vmatprep.mubr.msk.f32.mxu1 %vm3903_vm1, %v5647_v2 }
 0x2cd   :  { %3763 = vmatprep.subr.mxu1 %v5647_v2 }
 0x2ce   :  { %3764 = vmatpush3.msra.mxu1 %v3213_v6 }
 0x2cf   :  { %3719 = vmatmul.mubr.msk.f32.gmra.mxu1 %vm422_vm3, %v5029_v3  ;;  %3765 = vmatprep.subr.mxu1 %v5647_v2  ;;  %v3209_v3 = vld [vmem:[%s5595_s5 + $0x210] sm:$0xff] }
 0x2d0   :  { %3766 = vmatpush3.msra.mxu1 %v3212_v20  ;;  %3721 = vmatprep.mubr.msk.f32.mxu1 %vm3903_vm1, %v5647_v2 }
 0x2d1   :  { %3767 = vmatprep.subr.mxu1 %v5647_v2 }
 0x2d2   :  { %3768 = vmatpush3.msra.mxu1 %v3211_v50 }
 0x2d3   :  { %3722 = vmatmul.mubr.msk.f32.gmra.mxu1 %vm422_vm3, %v5053_v23  ;;  %3769 = vmatprep.subr.mxu1 %v5647_v2  ;;  %v3207_v23 = vld [vmem:[%s5595_s5 + $0x200] sm:$0xff] }
 0x2d4   :  { %3770 = vmatpush3.msra.mxu1 %v3210_v12  ;;  %3724 = vmatprep.mubr.msk.f32.mxu1 %vm3903_vm1, %v5647_v2 }
 0x2d5   :  { %3771 = vmatprep.subr.mxu1 %v5647_v2 }
 0x2d6   :  { %3772 = vmatpush3.msra.mxu1 %v3209_v3 }
 0x2d7   :  { %3725 = vmatmul.mubr.msk.f32.gmra.mxu1 %vm422_vm3, %v5080_v11  ;;  %3773 = vmatprep.subr.mxu1 %v5647_v2 }
 0x2d8   :  { %3727 = vmatprep.mubr.msk.f32.mxu1 %vm3903_vm1, %v5647_v2  ;;  %3774 = vmatpush3.msra.mxu1 %v3208_v61 }
 0x2d9   :  { %3775 = vmatprep.subr.mxu1 %v5647_v2 }
 0x2da   :  { %3776 = vmatpush3.msra.mxu1 %v3207_v23 }
 0x2db   :  { %3728 = vmatmul.mubr.msk.f32.gmra.mxu1 %vm422_vm3, %v2256_v57  ;;  %3810 = vmatprep.subr.mxu1 %v5647_v2 }
 0x2dc   :  { %3777 = vmatprep.mubr.msk.f32.mxu1 %vm3903_vm1, %v5647_v2 }
 0x2df   :  { %3778 = vmatmul.mubr.msk.f32.vlgmr.msra.gmra.mxu1 %vm422_vm3, %v5132_v42 }
 0x2e0   :  { %3780 = vmatprep.mubr.msk.f32.mxu1 %vm3903_vm1, %v5647_v2 }
 0x2e3   :  { %3781 = vmatmul.mubr.msk.f32.gmra.mxu1 %vm422_vm3, %v5151_v28 }
 0x2e4   :  { %3783 = vmatprep.mubr.msk.f32.mxu1 %vm3903_vm1, %v5647_v2 }
 0x2e7   :  { %3784 = vmatmul.mubr.msk.f32.gmra.mxu1 %vm422_vm3, %v5180_v49 }
 0x2e8   :  { %3786 = vmatprep.mubr.msk.f32.mxu1 %vm3903_vm1, %v5647_v2 }
 0x2eb   :  { %3787 = vmatmul.mubr.msk.f32.gmra.mxu1 %vm422_vm3, %v5197_v35 }
 0x2ec   :  { %3789 = vmatprep.mubr.msk.f32.mxu1 %vm3903_vm1, %v5647_v2 }
 0x2ef   :  { %3790 = vmatmul.mubr.msk.f32.gmra.mxu1 %vm422_vm3, %v2504_v46 }
 0x2f0   :  { %3842 = vmatprep.mubr.msk.f32.mxu1 %vm3903_vm1, %v5647_v2 }
 0x32f   :  { %v1627_v27 = vpop.f32.mrf.mxu1 }
 0x330   :  { %v1975_v43 = vpop.f32.mrf.mxu0 }
 0x331   :  { %v3531_v11 = vpop.f32.mrf.mxu1 }
 0x332   :  { %v3624_v10 = vpop.f32.mrf.mxu0 }
 0x333   :  { %v1632_v36 = vpop.f32.mrf.mxu1 }
 0x334   :  { %v5423_v47 = vpop.f32.mrf.mxu0 }
 0x335   :  { %v3534_v56 = vpop.f32.mrf.mxu1 }
 0x336   :  { %v3627_v21 = vpop.f32.mrf.mxu0 }
 0x338   :  { %v1637_v17 = vpop.f32.mrf.mxu1  ;;  %v5425_v7 = vpop.f32.mrf.mxu0 }
 0x33a   :  { %v3537_v37 = vpop.f32.mrf.mxu1  ;;  %v3630_v29 = vpop.f32.mrf.mxu0 }
 0x33d   :  { %v1642_v59 = vpop.f32.mrf.mxu1 }
 0x33e   :  { %v5427_v42 = vpop.f32.mrf.mxu0 }
 0x33f   :  { %v3540_v48 = vpop.f32.mrf.mxu1 }
 0x340   :  { %v3633_v31 = vpop.f32.mrf.mxu0 }
 0x343   :  { %v1647_v28 = vpop.f32.mrf.mxu1 }
 0x344   :  { %v5429_v15 = vpop.f32.mrf.mxu0 }
 0x345   :  { %v3543_v4 = vpop.f32.mrf.mxu1 }
 0x346   :  { %v3636_v14 = vpop.f32.mrf.mxu0 }
 0x349   :  { %v1732_v5 = vpop.f32.mrf.mxu1  ;;  %v5431_v49 = vpop.f32.mrf.mxu0 }
 0x34a   :  { %v1733_v24 = vadd.f32 %v1732_v5, %v1627_v27 }
 0x34b   :  { %v3562_v35 = vpop.f32.mrf.mxu1  ;;  %v3686_v1 = vpop.f32.mrf.mxu0 }
 0x34d   :  { %v1737_v52 = vpop.f32.mrf.mxu1 }
 0x34e   :  { %v1738_v60 = vadd.f32 %v1737_v52, %v1632_v36  ;;  %v2228_v26 = vpop.f32.mrf.mxu0 }
 0x34f   :  { %v3565_v54 = vpop.f32.mrf.mxu1 }
 0x350   :  { %v3689_v33 = vpop.f32.mrf.mxu0 }
 0x352   :  { %v1742_v62 = vpop.f32.mrf.mxu1  ;;  %v2233_v40 = vpop.f32.mrf.mxu0 }
 0x353   :  { %v1743_v0 = vadd.f32 %v1742_v62, %v1637_v17 }
 0x354   :  { %v3568_v63 = vpop.f32.mrf.mxu1  ;;  %v3692_v39 = vpop.f32.mrf.mxu0 }
 0x357   :  { %v1747_v19 = vpop.f32.mrf.mxu1 }
 0x358   :  { %v1748_v51 = vadd.f32 %v1747_v19, %v1642_v59  ;;  %v2238_v25 = vpop.f32.mrf.mxu0 }
 0x359   :  { %v3571_v44 = vpop.f32.mrf.mxu1 }
 0x35a   :  { %v3695_v45 = vpop.f32.mrf.mxu0 }
 0x35d   :  { %v1752_v30 = vpop.f32.mrf.mxu1 }
 0x35e   :  { %v2243_v38 = vpop.f32.mrf.mxu0  ;;  %v1753_v53 = vadd.f32 %v1752_v30, %v1647_v28 }
 0x35f   :  { %v3574_v16 = vpop.f32.mrf.mxu1 }
 0x360   :  { %v3698_v22 = vpop.f32.mrf.mxu0 }
 0x363   :  { %v1851_v18 = vpop.f32.mrf.mxu1  ;;  %v2471_v55 = vpop.f32.mrf.mxu0 }
 0x364   :  { %v1875_v32 = vadd.f32 %v1851_v18, %v1733_v24 }
 0x365   :  { %v3593_v8 = vpop.f32.mrf.mxu1  ;;  %v3748_v41 = vpop.f32.mrf.mxu0 }
 0x366   :  { %v1999_v6 = vadd.f32 %v1975_v43, %v1875_v32 }
 0x367   :  { %v1856_v20 = vpop.f32.mrf.mxu1 }
 0x368   :  { %v1876_v50 = vadd.f32 %v1856_v20, %v1738_v60  ;;  %v2476_v12 = vpop.f32.mrf.mxu0 }
 0x369   :  { %v3596_v3 = vpop.f32.mrf.mxu1 }
 0x36a   :  { %v3751_v61 = vpop.f32.mrf.mxu0  ;;  %v2000_v23 = vadd.f32 %v5423_v47, %v1876_v50 }
 0x36b   :  { %v1861_v57 = vpop.f32.mrf.mxu1 }
 0x36c   :  { %v1877_v46 = vadd.f32 %v1861_v57, %v1743_v0  ;;  %v2481_v27 = vpop.f32.mrf.mxu0 }
 0x36d   :  { %v3599_v11 = vpop.f32.mrf.mxu1 }
 0x36e   :  { %v3754_v10 = vpop.f32.mrf.mxu0  ;;  %v2001_v36 = vadd.f32 %v5425_v7, %v1877_v46 }
 0x36f   :  { %v1866_v56 = vpop.f32.mrf.mxu1 }
 0x370   :  { %v1878_v21 = vadd.f32 %v1866_v56, %v1748_v51  ;;  %v5451_v17 = vpop.f32.mrf.mxu0  ;;  %v2662_v56 = vpop.permute.xlu0 %2661 }
 0x371   :  { %v3602_v37 = vpop.f32.mrf.mxu1 }
 0x372   :  { %v3757_v43 = vpop.f32.mrf.mxu0  ;;  %v2002_v29 = vadd.f32 %v5427_v42, %v1878_v21 }
 0x373   :  { %v1871_v59 = vpop.f32.mrf.mxu1 }
 0x374   :  { %v1879_v48 = vadd.f32 %v1871_v59, %v1753_v53 }
 0x375   :  { %v3605_v31 = vpop.f32.mrf.mxu1  ;;  %v5454_v28 = vpop.f32.mrf.mxu0 }
 0x376   :  { %v2003_v47 = vadd.f32 %v5429_v15, %v1879_v48 }
 0x377   :  { %v2099_v4 = vpop.f32.mrf.mxu1  ;;  %v3760_v14 = vpop.f32.mrf.mxu0 }
 0x378   :  { %v2123_v5 = vadd.f32 %v2099_v4, %v1999_v6 }
 0x379   :  { %v3655_v24 = vpop.f32.mrf.mxu1 }
 0x37a   :  { %v2247_v7 = vadd.f32 %v5431_v49, %v2123_v5 }
 0x37b   :  { %v2104_v58 = vpop.f32.mrf.mxu1 }
 0x37c   :  { %v2124_v34 = vadd.f32 %v2104_v58, %v2000_v23  ;;  %v2667_v58 = vpop.permute.xlu0 %2666 }
 0x37d   :  { %v3658_v35 = vpop.f32.mrf.mxu1 }
 0x37e   :  { %v2248_v1 = vadd.f32 %v2228_v26, %v2124_v34 }
 0x37f   :  { %v2109_v9 = vpop.f32.mrf.mxu1 }
 0x380   :  { %v2125_v52 = vadd.f32 %v2109_v9, %v2001_v36 }
 0x381   :  { %v3661_v42 = vpop.f32.mrf.mxu1 }
 0x382   :  { %v2249_v60 = vadd.f32 %v2233_v40, %v2125_v52 }
 0x383   :  { %v2114_v13 = vpop.f32.mrf.mxu1 }
 0x384   :  { %v2126_v54 = vadd.f32 %v2114_v13, %v2002_v29  ;;  %v2672_v13 = vpop.permute.xlu1 %2671 }
 0x385   :  { %v3664_v33 = vpop.f32.mrf.mxu1 }
 0x386   :  { %v2250_v62 = vadd.f32 %v2238_v25, %v2126_v54  ;;  %v3220_v25 = vld [vmem:[%s5596_s6] ss:$0 sm:$0xff] }
 0x387   :  { %v2119_v0 = vpop.f32.mrf.mxu1 }
 0x388   :  { %v2127_v15 = vadd.f32 %v2119_v0, %v2003_v47 }
 0x389   :  { %v3667_v63 = vpop.f32.mrf.mxu1 }
 0x38a   :  { %v2251_v39 = vadd.f32 %v2243_v38, %v2127_v15 }
 0x38b   :  { %v2347_v19 = vpop.f32.mrf.mxu1 }
 0x38c   :  { %v2371_v51 = vadd.f32 %v2347_v19, %v2247_v7 }
 0x38d   :  { %v3717_v44 = vpop.f32.mrf.mxu1 }
 0x38e   :  { %v2495_v49 = vadd.f32 %v2471_v55, %v2371_v51  ;;  %v2677_v44 = vpop.permute.xlu1 %2676 }
 0x38f   :  { %v2352_v45 = vpop.f32.mrf.mxu1 }
 0x390   :  { %v2372_v30 = vadd.f32 %v2352_v45, %v2248_v1 }
 0x391   :  { %v3720_v53 = vpop.f32.mrf.mxu1 }
 0x392   :  { %v2496_v26 = vadd.f32 %v2476_v12, %v2372_v30 }
 0x393   :  { %v2357_v16 = vpop.f32.mrf.mxu1 }
 0x394   :  { %v2373_v20 = vadd.f32 %v2357_v16, %v2249_v60 }
 0x395   :  { %v3723_v22 = vpop.f32.mrf.mxu1 }
 0x396   :  { %v2497_v46 = vadd.f32 %v2481_v27, %v2373_v20  ;;  %v2874_v20 = vld [vmem:[%s5602_s12 + $0x70] sm:$0xff] }
 0x397   :  { %v2362_v18 = vpop.f32.mrf.mxu1 }
 0x398   :  { %v2374_v61 = vadd.f32 %v2362_v18, %v2250_v62 }
 0x399   :  { %v3726_v40 = vpop.f32.mrf.mxu1 }
 0x39a   :  { %v2498_v37 = vadd.f32 %v5451_v17, %v2374_v61  ;;  %v2870_v61 = vld [vmem:[%s5602_s12 + $0x50] sm:$0xff] }
 0x39b   :  { %v2367_v32 = vpop.f32.mrf.mxu1 }
 0x39c   :  { %v2375_v43 = vadd.f32 %v2367_v32, %v2251_v39  ;;  %v2697_v32 = vld [vmem:[%s5598_s8] sm:$0x3] }
 0x39d   :  { %v3729_v8 = vpop.f32.mrf.mxu1 }
 0x39e   :  { %v2499_v24 = vadd.f32 %v5454_v28, %v2375_v43  ;;  %v2861_v43 = vld [vmem:[%s5602_s12 + $0x8] sm:$0xff] }
 0x39f   :  { %v2595_v41 = vpop.f32.mrf.mxu1 }
 0x3a0   :  { %v2619_v38 = vadd.f32 %v2595_v41, %v2495_v49 }
 0x3a1   :  { %v3779_v6 = vpop.f32.mrf.mxu1 }
 0x3a2   :  { %v2631_v50 = vadd.f32 %v3220_v25, %v2619_v38  ;;  %v2776_v38 = vld [vmem:[%s5600_s10] sm:$0xff]  ;;  %v2875_v6 = vld [vmem:[%s5602_s12 + $0x78] sm:$0xff] }
 0x3a3   :  { %v2600_v55 = vpop.f32.mrf.mxu1  ;;  %3811 = vmatpush3.msra.mxu1 %v2875_v6 }
 0x3a4   :  { %v2620_v3 = vadd.f32 %v2600_v55, %v2496_v26  ;;  %v2641_v12 = vmul.f32 0.1, %v2631_v50  ;;  %vm2636_vm6 = vcmp.gt.f32.partialorder %v2631_v50, 0.0  ;;  %3812 = vmatprep.subr.mxu1 %v5647_v2  ;;  %v2872_v55 = vld [vmem:[%s5602_s12 + $0x60] sm:$0xff] }
 0x3a5   :  { %v3782_v23 = vpop.f32.mrf.mxu1  ;;  %3813 = vmatpush3.msra.mxu1 %v2874_v20 }
 0x3a6   :  { %v2632_v57 = vadd.f32 %v3220_v25, %v2620_v3  ;;  %v2646_v59 = vsel %vm2636_vm6, %v2631_v50, %v2641_v12  ;;  %v2873_v50 = vld [vmem:[%s5602_s12 + $0x68] sm:$0xff]  ;;  %3814 = vmatprep.subr.mxu1 %v5647_v2  ;;  %v2871_v3 = vld [vmem:[%s5602_s12 + $0x58] sm:$0xff]  ;;  %v2868_v12 = vld [vmem:[%s5602_s12 + $0x40] sm:$0xff] }
 0x3a7   :  { %v2605_v11 = vpop.f32.mrf.mxu1  ;;  %3815 = vmatpush3.msra.mxu1 %v2873_v50  ;;  %v2869_v23 = vld [vmem:[%s5602_s12 + $0x48] sm:$0xff] }
 0x3a8   :  { %v2642_v10 = vmul.f32 0.1, %v2632_v57  ;;  %v2621_v36 = vadd.f32 %v2605_v11, %v2497_v46  ;;  %vm2637_vm7 = vcmp.gt.f32.partialorder %v2632_v57, 0.0  ;;  %3816 = vmatprep.subr.mxu1 %v5647_v2  ;;  %v2866_v46 = vld [vmem:[%s5602_s12 + $0x30] sm:$0xff]  ;;  %v2865_v11 = vld [vmem:[%s5602_s12 + $0x28] sm:$0xff] }
 0x3a9   :  { %v3785_v21 = vpop.f32.mrf.mxu1  ;;  %3817 = vmatpush3.msra.mxu1 %v2872_v55 }
 0x3aa   :  { %v2633_v29 = vadd.f32 %v3220_v25, %v2621_v36  ;;  %v2647_v48 = vsel %vm2637_vm7, %v2632_v57, %v2642_v10  ;;  %3818 = vmatprep.subr.mxu1 %v5647_v2  ;;  %v2867_v57 = vld [vmem:[%s5602_s12 + $0x38] sm:$0xff]  ;;  %v2864_v10 = vld [vmem:[%s5602_s12 + $0x20] sm:$0xff] }
 0x3ab   :  { %v2610_v31 = vpop.f32.mrf.mxu1  ;;  %v2651_v47 = vmax.f32 %v2646_v59, %v2647_v48  ;;  %3819 = vmatpush3.msra.mxu1 %v2871_v3  ;;  %v2863_v36 = vld [vmem:[%s5602_s12 + $0x18] sm:$0xff] }
 0x3ac   :  { %v2643_v4 = vmul.f32 0.1, %v2633_v29  ;;  %v2622_v14 = vadd.f32 %v2610_v31, %v2498_v37  ;;  %vm2638_vm8 = vcmp.gt.f32.partialorder %v2633_v29, 0.0  ;;  %3820 = vmatprep.subr.mxu1 %v5647_v2  ;;  %v2862_v37 = vld [vmem:[%s5602_s12 + $0x10] sm:$0xff]  ;;  %v2961_v59 = vld [vmem:[%s5604_s14 + $0x38] sm:$0xff]  ;;  %v2959_v31 = vld [vmem:[%s5604_s14 + $0x28] sm:$0xff] }
 0x3ad   :  { %v3788_v5 = vpop.f32.mrf.mxu1  ;;  %v2679_v34 = vmul.f32 %v2662_v56, %v2651_v47  ;;  %3821 = vmatpush3.msra.mxu1 %v2870_v61  ;;  %v2958_v47 = vld [vmem:[%s5604_s14 + $0x20] sm:$0xff] }
 0x3ae   :  { %v2634_v27 = vadd.f32 %v3220_v25, %v2622_v14  ;;  %v2648_v7 = vsel %vm2638_vm8, %v2633_v29, %v2643_v4  ;;  %3822 = vmatprep.subr.mxu1 %v5647_v2  ;;  %v2860_v29 = vld [vmem:[%s5602_s12] sm:$0xff]  ;;  %v2957_v4 = vld [vmem:[%s5604_s14 + $0x18] sm:$0xff] }
 0x3af   :  { %v2615_v35 = vpop.f32.mrf.mxu1  ;;  %v2652_v1 = vmax.f32 %v2647_v48, %v2648_v7  ;;  %v2684_v33 = vsel %vm2683_vm9, %v2679_v34, 0.0  ;;  %3823 = vmatpush3.msra.mxu1 %v2869_v23  ;;  %v2960_v48 = vld [vmem:[%s5604_s14 + $0x30] sm:$0xff]  ;;  %v3222_v14 = vld [vmem:[%s5601_s11] ss:$0 sm:$0xff]  ;;  %v2955_v34 = vld [vmem:[%s5604_s14 + $0x8] sm:$0xff] }
 0x3b0   :  { %v2644_v9 = vmul.f32 0.1, %v2634_v27  ;;  %v2623_v17 = vadd.f32 %v2615_v35, %v2499_v24  ;;  %vm2639_vm11 = vcmp.gt.f32.partialorder %v2634_v27, 0.0  ;;  %3824 = vmatprep.subr.mxu1 %v5647_v2  ;;  %v2954_v35 = vld [vmem:[%s5604_s14] sm:$0xff] }
 0x3b1   :  { %v2680_v52 = vmul.f32 %v2667_v58, %v2652_v1  ;;  %v3791_v42 = vpop.f32.mrf.mxu1  ;;  %3825 = vmatpush3.msra.mxu1 %v2868_v12  ;;  %v2956_v58 = vld [vmem:[%s5604_s14 + $0x10] sm:$0xff]  ;;  %v3224_v1 = vld [vmem:[%s5603_s13] ss:$0 sm:$0xff]  ;;  %s3050_s14 = sshll.u32 %s3905_s3, 4  ;;  %s3051_s14 = int_to_ptr.vmem [resolvable:$true] %s3050_s14 }
 0x3b2   :  { %v2635_v60 = vadd.f32 %v3220_v25, %v2623_v17  ;;  %v2649_v54 = vsel %vm2639_vm11, %v2634_v27, %v2644_v9  ;;  %v2777_v25 = vld [vmem:[%s5600_s10 + $0x8] sm:$0xff]  ;;  %3826 = vmatprep.subr.mxu1 %v5647_v2  ;;  %s3880_s28 = scalar_lea.vmem %s3051_s14, 32  ;;  %p3885_p1 = scmp.lt.s32.totalorder %s3051_s14, %s3051_s14 }
 0x3b3   :  { %v2653_v62 = vmax.f32 %v2648_v7, %v2649_v54  ;;  %v2685_v0 = vsel %vm2683_vm9, %v2680_v52, 0.0  ;;  %3827 = vmatpush3.msra.mxu1 %v2867_v57  ;;  %p3881_p0 = scmp.ne.s32.totalorder %s3051_s14, %s3880_s28  ;;  %p3886_p2 = scmp.lt.s32.totalorder %s3880_s28, %s3880_s28 }
 0x3b4   :  { %v2645_v28 = vmul.f32 0.1, %v2635_v60  ;;  %v2686_v15 = vadd.f32 %v2685_v0, %v2684_v33  ;;  %vm2640_vm12 = vcmp.gt.f32.partialorder %v2635_v60, 0.0  ;;  %3828 = vmatprep.subr.mxu1 %v5647_v2 }
 0x3b5   :  { %v2681_v63 = vmul.f32 %v2672_v13, %v2653_v62  ;;  %3829 = vmatpush3.msra.mxu1 %v2866_v46  ;;  %p3887_p3 = por %p3886_p2, %p3885_p1 }
 0x3b6   :  { %v2650_v39 = vsel %vm2640_vm12, %v2635_v60, %v2645_v28  ;;  %3830 = vmatprep.subr.mxu1 %v5647_v2  ;;  %v3225_v60 = vld [vmem:[%s5605_s15] ss:$0 sm:$0xff] }
 0x3b7   :  { %v2687_v19 = vsel %vm2683_vm9, %v2681_v63, 0.0  ;;  %v2654_v51 = vmax.f32 %v2649_v54, %v2650_v39  ;;  %3831 = vmatpush3.msra.mxu1 %v2865_v11  ;;  %p3888_p4 = pnand %p3887_p3, %p3881_p0 }
 0x3b8   :  { %v2688_v49 = vadd.f32 %v2687_v19, %v2686_v15  ;;  %3832 = vmatprep.subr.mxu1 %v5647_v2 }
 0x3b9   :  { %v2682_v45 = vmul.f32 %v2677_v44, %v2654_v51  ;;  %3833 = vmatpush3.msra.mxu1 %v2864_v10 }
 0x3ba   :  { %3834 = vmatprep.subr.mxu1 %v5647_v2 }
 0x3bb   :  { %v2689_v30 = vsel %vm2683_vm9, %v2682_v45, 0.0  ;;  %3835 = vmatpush3.msra.mxu1 %v2863_v36 }
 0x3bc   :  { %v2690_v53 = vadd.f32 %v2689_v30, %v2688_v49  ;;  %3836 = vmatprep.subr.mxu1 %v5647_v2 }
 0x3bd   :  { %3837 = vmatpush3.msra.mxu1 %v2862_v37 }
 0x3be   :  { %v2691_v26 = vrot.slane %v2690_v53, 4  ;;  %3838 = vmatprep.subr.mxu1 %v5647_v2 }
 0x3bf   :  { %3839 = vmatpush3.msra.mxu1 %v2861_v43 }
 0x3c0   :  { %v2692_v16 = vadd.f32 %v2691_v26, %v2690_v53  ;;  %3840 = vmatprep.subr.mxu1 %v5647_v2 }
 0x3c1   :  { %3841 = vmatpush3.msra.mxu1 %v2860_v29 }
 0x3c2   :  { %v2693_v22 = vrot.slane %v2692_v16, 2 }
 0x3c4   :  { %v2694_v18 = vadd.f32 %v2693_v22, %v2692_v16 }
 0x3c6   :  { %v2695_v40 = vrot.slane %v2694_v18, 1 }
 0x3c8   :  { %v2696_v8 = vadd.f32 %v2695_v40, %v2694_v18 }
 0x3ca   :  { %v2698_v41 = vmul.f32 %v2697_v32, %v2696_v8 }
 0x3cc   :  { %3801 = vmatmul.mubr.msk.f32.vlgmr.msra.gmra.mxu0 %vm2683_vm9, %v2698_v41 }
 0x3cd   :  { %3804 = vmatpush3.msra.mxu0 %v2777_v25  ;;  %3807 = vmatprep.mubr.msk.f32.mxu0 %vm3903_vm1, %v5647_v2 }
 0x3ce   :  { %3805 = vmatprep.subr.mxu0 %v5647_v2 }
 0x3cf   :  { %3806 = vmatpush3.msra.mxu0 %v2776_v38 }
 0x3d0   :  { %3845 = vmatprep.subr.mxu0 %v5647_v2 }
 0x48c   :  { %v2772_v56 = vpop.f32.mrf.mxu0 }
 0x48d   :  { %3808 = vmatmul.mubr.msk.f32.vlgmr.msra.gmra.mxu0 %vm2785_vm13, %v2772_v56 }
 0x48e   :  { %v3802_v21 = vpop.f32.mrf.mxu0  ;;  %3861 = vmatprep.mubr.msk.f32.mxu0 %vm3903_vm1, %v5647_v2  ;;  %3846 = vmatpush3.msra.mxu0 %v2961_v59  ;;  %vm3042_vm1 = vcmask 9216  }
 0x48f   :  { %3847 = vmatprep.subr.mxu0 %v5647_v2 }
 0x490   :  { %3848 = vmatpush3.msra.mxu0 %v2960_v48 }
 0x491   :  { %3849 = vmatprep.subr.mxu0 %v5647_v2 }
 0x492   :  { %3850 = vmatpush3.msra.mxu0 %v2959_v31 }
 0x493   :  { %3851 = vmatprep.subr.mxu0 %v5647_v2 }
 0x494   :  { %3852 = vmatpush3.msra.mxu0 %v2958_v47 }
 0x495   :  { %3853 = vmatprep.subr.mxu0 %v5647_v2 }
 0x496   :  { %3854 = vmatpush3.msra.mxu0 %v2957_v4 }
 0x497   :  { %3855 = vmatprep.subr.mxu0 %v5647_v2 }
 0x498   :  { %3856 = vmatpush3.msra.mxu0 %v2956_v58 }
 0x499   :  { %3857 = vmatprep.subr.mxu0 %v5647_v2 }
 0x49a   :  { %3858 = vmatpush3.msra.mxu0 %v2955_v34 }
 0x49b   :  { %3859 = vmatprep.subr.mxu0 %v5647_v2 }
 0x49c   :  { %3860 = vmatpush3.msra.mxu0 %v2954_v35 }
 0x54d   :  { %v2855_v5 = vpop.f32.mrf.mxu0 }
 0x54e   :  { %v2856_v27 = vadd.f32 %v3222_v14, %v2855_v5 }
 0x54f   :  { %v3809_v24 = vpop.f32.mrf.mxu0 }
 0x550   :  { %v2859_v7 = vmax.f32 %v2856_v27, 0.0 }
 0x552   :  { %3843 = vmatmul.mubr.f32.vlgmr.msra.gmra.mxu1 %v2859_v7 }
 0x612   :  { %v2949_v9 = vpop.f32.mrf.mxu1 }
 0x613   :  { %v2950_v17 = vadd.f32 %v3224_v1, %v2949_v9 }
 0x614   :  { %v3844_v52 = vpop.f32.mrf.mxu1 }
 0x615   :  { %v2953_v42 = vmax.f32 %v2950_v17, 0.0 }
 0x617   :  { %3862 = vmatmul.mubr.msk.f32.vlgmr.msra.gmra.mxu0 %vm422_vm3, %v2953_v42 }
 0x6d7   :  { %v3038_v13 = vpop.f32.mrf.mxu0 }
 0x6d8   :  { %v3039_v2 = vadd.f32 %v3225_v60, %v3038_v13 }
 0x6d9   :  { %v3863_v54 = vpop.f32.mrf.mxu0 }
 0x6da   :  { %3043 = vst.msk [vmem:[#allocation5] sm:$0x3] %vm3042_vm1, %v3039_v2 }
 0x6db   :  { %3891 = shalt.err (!%p3888_p4)
}
 0x6dc   :  { %3053 = dma.vmem_to_hbm [thread:$0]  %s3051_s14, 32, %s5606_s16, [#allocation6]  }
 0x6dd   :  { %3900 = dma.done.wait [#allocation6], 32  }
 0x6de   :  { %3901 = vsyncadd [#allocation6], 4294967264 }
 0x6df   :  { %3057 = vsyncpa [#allocation6], 1 }

</bundles_post_ra>
